<compile_context>
chip_gen: v7x
topology: tpu7x:2x2x1
jax: 0.10.0
libtpu: 0.0.40
codegen_flags: <defaults>
</compile_context>

<pallas_src>
import jax
import jax.numpy as jnp
from jax import lax
from jax.experimental import pallas as pl
from jax.experimental.pallas import tpu as pltpu


def _round_up(x, m):
    return -(-x // m) * m


def _pick_batch_block(n, max_blk=8):
    # Largest divisor of n (<= max_blk) that still leaves >= 2 grid steps, so both
    # TensorCores of a megacore / v7x chip get work; fall back to n itself.
    cands = [b for b in range(1, min(n, max_blk) + 1) if n % b == 0 and n // b >= 2]
    return max(cands) if cands else n


def _build_kernel(B, Cin, Cout, H, W):
    """Fused DecoderBlock kernel for one batch block of B images."""
    HP, WP = H + 2, W + 2                 # padded per-phase spatial grid
    COLS = B * HP * WP                    # flattened padded grid (lane axis)
    BUFCOLS = _round_up(COLS + 3 * WP + 3, 128)
    f32 = jnp.float32
    cdt = jnp.bfloat16                    # MXU operand dtype (f32 accumulate)

    def kernel(x_ref, mask_ref, w1_ref, b1_ref, w2_ref, b2_ref, w3_ref, b3_ref,
               out_ref, ybuf, zbuf):
        mask = mask_ref[...]                                   # (1, COLS) f32

        # Zero only the head (top padding ring) and tail columns that the interior
        # scatter never writes -- NOT the full buffers (cheap, and megacore-safe).
        zhead = jnp.zeros((4 * Cout, WP + 1), f32)
        ztail = jnp.zeros((4 * Cout, BUFCOLS - COLS - WP - 1), f32)
        for buf in (ybuf, zbuf):
            buf[:, :WP + 1] = zhead
            buf[:, WP + 1 + COLS:] = ztail

        # ---- c1: polyphase decomposition of ConvTranspose2d(k=4, s=2, p=1) ------
        # x_ref holds 2*Cin rows: rows [0:Cin] = padded input, rows [Cin:2Cin] = the
        # same shifted left by one column, so each phase's im2col is 2 aligned
        # sublane blocks (taps ordered (dh, dw, ci), matching the weight layout).
        for p in range(2):
            for q in range(2):
                pieces = [x_ref[0, :, (p + dh) * WP + q:(p + dh) * WP + q + COLS]
                          for dh in range(2)]
                patches = jnp.concatenate(pieces, axis=0).astype(cdt)  # (4*Cin, COLS)
                acc = jnp.dot(w1_ref[2 * p + q], patches,
                              preferred_element_type=f32)              # (Cout, COLS)
                yv = jnp.maximum(acc + b1_ref[...], 0.0) * mask        # ReLU + kill garbage
                rb = (2 * p + q) * Cout
                ybuf[rb:rb + Cout, WP + 1:WP + 1 + COLS] = yv

        # ---- 3x3 transposed conv (== conv with flipped kernel), phase-separated ----
        def conv3x3(src, w):
            outs = []
            for p in range(2):
                for q in range(2):
                    taps = []
                    for dh in range(3):
                        for dw in range(3):
                            rh, rw = p + dh - 1, q + dw - 1
                            sph = (rh % 2) * 2 + (rw % 2)              # source phase
                            off = (rh // 2 + 1) * WP + (rw // 2 + 1)   # lane offset
                            rb_s = sph * Cout
                            taps.append(src[rb_s:rb_s + Cout, off:off + COLS])
                    patches = jnp.concatenate(taps, axis=0).astype(cdt)  # (9*Cout, COLS)
                    outs.append(jnp.dot(w, patches, preferred_element_type=f32))
            return outs                                        # 4 x (Cout, COLS) f32

        # c2 + ReLU -> zbuf
        for ph, acc in enumerate(conv3x3(ybuf, w2_ref[...])):
            zv = jnp.maximum(acc + b2_ref[...], 0.0) * mask
            rb = ph * Cout
            zbuf[rb:rb + Cout, WP + 1:WP + 1 + COLS] = zv

        # c3 + residual + ReLU -> lane-dense output slab (garbage columns are
        # simply discarded by the wrapper).
        for ph, acc in enumerate(conv3x3(zbuf, w3_ref[...])):
            rb = ph * Cout
            yv = ybuf[rb:rb + Cout, WP + 1:WP + 1 + COLS]
            o = jnp.maximum(yv + acc + b3_ref[...], 0.0)
            out_ref[0, rb:rb + Cout, :] = o.astype(out_ref.dtype)

    return kernel, COLS, BUFCOLS


def decoder_block_forward(x_nchw, params, *, batch_block=None):
    """PyTorch-compatible forward: NCHW in -> NCHW out."""
    W1, b1, W2, b2, W3, b3 = params
    N, Cin, H, W = x_nchw.shape
    Cout = W1.shape[1]
    if batch_block is None:
        batch_block = _pick_batch_block(N)
    if N % batch_block != 0:
        raise ValueError("batch_block must divide N")
    B = batch_block
    G = N // B
    HP, WP = H + 2, W + 2
    f32, cdt = jnp.float32, jnp.bfloat16

    kernel, COLS, BUFCOLS = _build_kernel(B, Cin, Cout, H, W)

    # ---- input: pad spatially by 1, flatten (b,row,col) onto lanes, append a
    #      1-column-shifted channel copy (so c1 im2col pieces are 8-row aligned) ----
    xp = jnp.pad(x_nchw.astype(f32), ((0, 0), (0, 0), (1, 1), (1, 1)))
    xp = xp.reshape(G, B, Cin, HP * WP)
    xp = jnp.transpose(xp, (0, 2, 1, 3)).reshape(G, Cin, COLS)
    xsh = jnp.pad(xp[:, :, 1:], ((0, 0), (0, 0), (0, 1)))
    x2 = jnp.concatenate([xp, xsh], axis=1)                       # (G, 2*Cin, COLS)
    x2 = jnp.pad(x2, ((0, 0), (0, 0), (0, BUFCOLS - COLS)))       # zero tail

    # ---- interior mask over the flattened padded grid (valid output columns) ----
    t = jnp.arange(COLS)
    r = t % (HP * WP)
    mask = (((r // WP) < H) & ((r % WP) < W)).astype(f32)[None, :]   # (1, COLS)

    # ---- weights ----
    # c1 polyphase: phase (p,q), tap (dh,dw) uses W1[:, :, (3-p)-2dh, (3-q)-2dw]
    w1p = []
    for p in range(2):
        for q in range(2):
            sub = W1[:, :, (3 - p)::-2, (3 - q)::-2]                  # (Cin,Cout,2,2)
            w1p.append(jnp.transpose(sub, (2, 3, 0, 1)).reshape(4 * Cin, Cout).T)
    w1f = jnp.stack(w1p, axis=0).astype(cdt)                          # (4, Cout, 4*Cin)
    # c2/c3: transposed conv (k=3, p=1) == conv with spatially flipped kernel
    w2f = jnp.transpose(W2[:, :, ::-1, ::-1], (2, 3, 0, 1)).reshape(9 * Cout, Cout).T.astype(cdt)
    w3f = jnp.transpose(W3[:, :, ::-1, ::-1], (2, 3, 0, 1)).reshape(9 * Cout, Cout).T.astype(cdt)
    b1r = b1.reshape(Cout, 1).astype(f32)
    b2r = b2.reshape(Cout, 1).astype(f32)
    b3r = b3.reshape(Cout, 1).astype(f32)

    out = pl.pallas_call(
        kernel,
        out_shape=jax.ShapeDtypeStruct((G, 4 * Cout, COLS), f32),
        grid_spec=pltpu.PrefetchScalarGridSpec(
            num_scalar_prefetch=0,
            grid=(G,),
            in_specs=[
                pl.BlockSpec((1, 2 * Cin, BUFCOLS), lambda g: (g, 0, 0)),
                pl.BlockSpec((1, COLS), lambda g: (0, 0)),
                pl.BlockSpec((4, Cout, 4 * Cin), lambda g: (0, 0, 0)),
                pl.BlockSpec((Cout, 1), lambda g: (0, 0)),
                pl.BlockSpec((Cout, 9 * Cout), lambda g: (0, 0)),
                pl.BlockSpec((Cout, 1), lambda g: (0, 0)),
                pl.BlockSpec((Cout, 9 * Cout), lambda g: (0, 0)),
                pl.BlockSpec((Cout, 1), lambda g: (0, 0)),
            ],
            out_specs=pl.BlockSpec((1, 4 * Cout, COLS), lambda g: (g, 0, 0)),
            scratch_shapes=[
                pltpu.VMEM((4 * Cout, BUFCOLS), jnp.float32),  # phase-separated padded y
                pltpu.VMEM((4 * Cout, BUFCOLS), jnp.float32),  # phase-separated padded z
            ],
        ),
        compiler_params=pltpu.CompilerParams(dimension_semantics=("parallel",)),
    )(x2, mask, w1f, b1r, w2f, b2r, w3f, b3r)

    # ---- decode (wrapper-side layout plumbing): un-pad the flattened grid and
    #      interleave the 4 output phases back to NCHW ----
    out = out.reshape(G, 2, 2, Cout, B, HP, WP)[..., :H, :W]     # (G,2,2,Cout,B,H,W)
    out = jnp.transpose(out, (0, 4, 3, 5, 1, 6, 2))              # (G,B,Cout,H,2,W,2)
    return out.reshape(N, Cout, 2 * H, 2 * W).astype(x_nchw.dtype)


# ----------------------- pure-JAX reference (for checking) -----------------------
def _conv_transpose_ref(x, Wt, b, stride, pad):
    k = Wt.shape[-1]
    w_hwio = jnp.transpose(Wt[:, :, ::-1, ::-1], (2, 3, 0, 1))
    out = lax.conv_general_dilated(
        x, w_hwio, window_strides=(1, 1),
        padding=[(k - 1 - pad, k - 1 - pad)] * 2,
        lhs_dilation=(stride, stride),
        dimension_numbers=("NCHW", "HWIO", "NCHW"),
        precision=lax.Precision.HIGHEST)
    return out + b[None, :, None, None]


def decoder_block_ref(x, params):
    W1, b1, W2, b2, W3, b3 = params
    x = jax.nn.relu(_conv_transpose_ref(x, W1, b1, 2, 1))
    y = x
    x = jax.nn.relu(_conv_transpose_ref(x, W2, b2, 1, 1))
    x = _conv_transpose_ref(x, W3, b3, 1, 1)
    return jax.nn.relu(y + x)


if __name__ == "__main__":
    key = jax.random.PRNGKey(0)
    N, Cin, Cout, H, W = 4, 4, 8, 16, 16
    ks = jax.random.split(key, 7)

    x = jax.random.normal(ks[0], (N, Cin, H, W), jnp.float32)
    # PyTorch ConvTranspose2d weight layout: (Cin, Cout, k, k)
    W1 = 0.1 * jax.random.normal(ks[1], (Cin, Cout, 4, 4), jnp.float32)
    b1 = 0.1 * jax.random.normal(ks[2], (Cout,), jnp.float32)
    W2 = 0.1 * jax.random.normal(ks[3], (Cout, Cout, 3, 3), jnp.float32)
    b2 = 0.1 * jax.random.normal(ks[4], (Cout,), jnp.float32)
    W3 = 0.1 * jax.random.normal(ks[5], (Cout, Cout, 3, 3), jnp.float32)
    b3 = 0.1 * jax.random.normal(ks[6], (Cout,), jnp.float32)
    params = (W1, b1, W2, b2, W3, b3)

    out = jax.block_until_ready(decoder_block_forward(x, params))
    ref = decoder_block_ref(x, params)

    assert out.shape == (N, Cout, 2 * H, 2 * W), out.shape
    err = float(jnp.max(jnp.abs(out - ref)))
    # bf16 MXU operands (f32 accumulation) -> tolerance widened accordingly.
    assert jnp.allclose(out, ref, atol=3e-2, rtol=2e-2), err
    print("KERNEL_OK")
</pallas_src>

<mosaic_0001>
module attributes {stable_mosaic.version = 11 : i64} {
  func.func @kernel(%arg0: i32, %arg1: memref<1x8x768xf32, #tpu.memory_space<vmem>>, %arg2: memref<1x648xf32, #tpu.memory_space<vmem>>, %arg3: memref<4x8x16xbf16, #tpu.memory_space<vmem>>, %arg4: memref<8x1xf32, #tpu.memory_space<vmem>>, %arg5: memref<8x72xbf16, #tpu.memory_space<vmem>>, %arg6: memref<8x1xf32, #tpu.memory_space<vmem>>, %arg7: memref<8x72xbf16, #tpu.memory_space<vmem>>, %arg8: memref<8x1xf32, #tpu.memory_space<vmem>>, %arg9: memref<1x32x648xf32, #tpu.memory_space<vmem>>, %arg10: memref<32x768xf32, #tpu.memory_space<vmem>>, %arg11: memref<32x768xf32, #tpu.memory_space<vmem>>) attributes {dimension_semantics = [#tpu.dimension_semantics<parallel>], iteration_bounds = array<i64: 2>, scalar_prefetch = 0 : i64, scratch_operands = 2 : i64, tpu.core_type = #tpu.core_type<tc>, window_params = [{transform_indices = @transform_0, window_bounds = array<i64: 1, 8, 768>}, {pipeline_mode = #tpu.pipeline_mode<synchronous>, transform_indices = @transform_1, window_bounds = array<i64: 1, 648>}, {pipeline_mode = #tpu.pipeline_mode<synchronous>, transform_indices = @transform_2, window_bounds = array<i64: 4, 8, 16>}, {pipeline_mode = #tpu.pipeline_mode<synchronous>, transform_indices = @transform_3, window_bounds = array<i64: 8, 1>}, {pipeline_mode = #tpu.pipeline_mode<synchronous>, transform_indices = @transform_4, window_bounds = array<i64: 8, 72>}, {pipeline_mode = #tpu.pipeline_mode<synchronous>, transform_indices = @transform_5, window_bounds = array<i64: 8, 1>}, {pipeline_mode = #tpu.pipeline_mode<synchronous>, transform_indices = @transform_6, window_bounds = array<i64: 8, 72>}, {pipeline_mode = #tpu.pipeline_mode<synchronous>, transform_indices = @transform_7, window_bounds = array<i64: 8, 1>}, {transform_indices = @transform_8, window_bounds = array<i64: 1, 32, 648>}]} {
    %c0 = arith.constant 0 : index
    %c0_0 = arith.constant 0 : index
    %0 = vector.load %arg2[%c0, %c0_0] : memref<1x648xf32, #tpu.memory_space<vmem>>, vector<1x648xf32>
    %cst = arith.constant 0.000000e+00 : f32
    %1 = vector.broadcast %cst : f32 to vector<32x19xf32>
    %cst_1 = arith.constant 0.000000e+00 : f32
    %2 = vector.broadcast %cst_1 : f32 to vector<32x101xf32>
    %c0_2 = arith.constant 0 : index
    %c0_3 = arith.constant 0 : index
    %3 = vector.load %arg10[%c0_2, %c0_3] : memref<32x768xf32, #tpu.memory_space<vmem>>, vector<32x19xf32>
    tpu.vector_store %arg10[%c0_2, %c0_3], %1 {strides = array<i32>} : memref<32x768xf32, #tpu.memory_space<vmem>>, vector<32x19xf32>,
    %c0_4 = arith.constant 0 : index
    %c667 = arith.constant 667 : index
    %4 = vector.load %arg10[%c0_4, %c667] : memref<32x768xf32, #tpu.memory_space<vmem>>, vector<32x101xf32>
    tpu.vector_store %arg10[%c0_4, %c667], %2 {strides = array<i32>} : memref<32x768xf32, #tpu.memory_space<vmem>>, vector<32x101xf32>,
    %c0_5 = arith.constant 0 : index
    %c0_6 = arith.constant 0 : index
    %5 = vector.load %arg11[%c0_5, %c0_6] : memref<32x768xf32, #tpu.memory_space<vmem>>, vector<32x19xf32>
    tpu.vector_store %arg11[%c0_5, %c0_6], %1 {strides = array<i32>} : memref<32x768xf32, #tpu.memory_space<vmem>>, vector<32x19xf32>,
    %c0_7 = arith.constant 0 : index
    %c667_8 = arith.constant 667 : index
    %6 = vector.load %arg11[%c0_7, %c667_8] : memref<32x768xf32, #tpu.memory_space<vmem>>, vector<32x101xf32>
    tpu.vector_store %arg11[%c0_7, %c667_8], %2 {strides = array<i32>} : memref<32x768xf32, #tpu.memory_space<vmem>>, vector<32x101xf32>,
    %c0_9 = arith.constant 0 : index
    %c0_10 = arith.constant 0 : index
    %c0_11 = arith.constant 0 : index
    %7 = vector.load %arg1[%c0_9, %c0_10, %c0_11] : memref<1x8x768xf32, #tpu.memory_space<vmem>>, vector<1x8x648xf32>
    %8 = vector.shape_cast %7 : vector<1x8x648xf32> to vector<8x648xf32>
    %c0_12 = arith.constant 0 : index
    %c0_13 = arith.constant 0 : index
    %c18 = arith.constant 18 : index
    %9 = vector.load %arg1[%c0_12, %c0_13, %c18] : memref<1x8x768xf32, #tpu.memory_space<vmem>>, vector<1x8x648xf32>
    %10 = vector.shape_cast %9 : vector<1x8x648xf32> to vector<8x648xf32>
    %11 = tpu.concatenate %8, %10 in 0 : vector<8x648xf32>, vector<8x648xf32> -> vector<16x648xf32>
    %12 = arith.truncf %11 : vector<16x648xf32> to vector<16x648xbf16>
    %c0_14 = arith.constant 0 : index
    %c0_15 = arith.constant 0 : index
    %c0_16 = arith.constant 0 : index
    %13 = vector.load %arg3[%c0_14, %c0_15, %c0_16] : memref<4x8x16xbf16, #tpu.memory_space<vmem>>, vector<1x8x16xbf16>
    %14 = vector.shape_cast %13 : vector<1x8x16xbf16> to vector<8x16xbf16>
    %cst_17 = arith.constant dense<0.000000e+00> : vector<8x648xf32>
    %15 = tpu.matmul %14, %12, %cst_17 {dimension_numbers = #tpu.dot_dimension_numbers<[1], [0], [0], [1], [0, 0, 1, 1], [], []>} : vector<8x16xbf16>, vector<16x648xbf16>, vector<8x648xf32> -> vector<8x648xf32>
    %c0_18 = arith.constant 0 : index
    %c0_19 = arith.constant 0 : index
    %16 = vector.load %arg4[%c0_18, %c0_19] : memref<8x1xf32, #tpu.memory_space<vmem>>, vector<8x1xf32>
    %17 = vector.broadcast %16 : vector<8x1xf32> to vector<8x648xf32>
    %18 = arith.addf %15, %17 : vector<8x648xf32>
    %cst_20 = arith.constant 0.000000e+00 : f32
    %19 = vector.broadcast %cst_20 : f32 to vector<8x648xf32>
    %20 = arith.maximumf %18, %19 : vector<8x648xf32>
    %21 = vector.broadcast %0 : vector<1x648xf32> to vector<8x648xf32>
    %22 = arith.mulf %20, %21 : vector<8x648xf32>
    %c0_21 = arith.constant 0 : index
    %c19 = arith.constant 19 : index
    %23 = vector.load %arg10[%c0_21, %c19] : memref<32x768xf32, #tpu.memory_space<vmem>>, vector<8x648xf32>
    tpu.vector_store %arg10[%c0_21, %c19], %22 {strides = array<i32>} : memref<32x768xf32, #tpu.memory_space<vmem>>, vector<8x648xf32>,
    %c0_22 = arith.constant 0 : index
    %c0_23 = arith.constant 0 : index
    %c1 = arith.constant 1 : index
    %24 = vector.load %arg1[%c0_22, %c0_23, %c1] : memref<1x8x768xf32, #tpu.memory_space<vmem>>, vector<1x8x648xf32>
    %25 = vector.shape_cast %24 : vector<1x8x648xf32> to vector<8x648xf32>
    %c0_24 = arith.constant 0 : index
    %c0_25 = arith.constant 0 : index
    %c19_26 = arith.constant 19 : index
    %26 = vector.load %arg1[%c0_24, %c0_25, %c19_26] : memref<1x8x768xf32, #tpu.memory_space<vmem>>, vector<1x8x648xf32>
    %27 = vector.shape_cast %26 : vector<1x8x648xf32> to vector<8x648xf32>
    %28 = tpu.concatenate %25, %27 in 0 : vector<8x648xf32>, vector<8x648xf32> -> vector<16x648xf32>
    %29 = arith.truncf %28 : vector<16x648xf32> to vector<16x648xbf16>
    %c1_27 = arith.constant 1 : index
    %c0_28 = arith.constant 0 : index
    %c0_29 = arith.constant 0 : index
    %30 = vector.load %arg3[%c1_27, %c0_28, %c0_29] : memref<4x8x16xbf16, #tpu.memory_space<vmem>>, vector<1x8x16xbf16>
    %31 = vector.shape_cast %30 : vector<1x8x16xbf16> to vector<8x16xbf16>
    %cst_30 = arith.constant dense<0.000000e+00> : vector<8x648xf32>
    %32 = tpu.matmul %31, %29, %cst_30 {dimension_numbers = #tpu.dot_dimension_numbers<[1], [0], [0], [1], [0, 0, 1, 1], [], []>} : vector<8x16xbf16>, vector<16x648xbf16>, vector<8x648xf32> -> vector<8x648xf32>
    %c0_31 = arith.constant 0 : index
    %c0_32 = arith.constant 0 : index
    %33 = vector.load %arg4[%c0_31, %c0_32] : memref<8x1xf32, #tpu.memory_space<vmem>>, vector<8x1xf32>
    %34 = vector.broadcast %33 : vector<8x1xf32> to vector<8x648xf32>
    %35 = arith.addf %32, %34 : vector<8x648xf32>
    %cst_33 = arith.constant 0.000000e+00 : f32
    %36 = vector.broadcast %cst_33 : f32 to vector<8x648xf32>
    %37 = arith.maximumf %35, %36 : vector<8x648xf32>
    %38 = vector.broadcast %0 : vector<1x648xf32> to vector<8x648xf32>
    %39 = arith.mulf %37, %38 : vector<8x648xf32>
    %c8 = arith.constant 8 : index
    %c19_34 = arith.constant 19 : index
    %40 = vector.load %arg10[%c8, %c19_34] : memref<32x768xf32, #tpu.memory_space<vmem>>, vector<8x648xf32>
    tpu.vector_store %arg10[%c8, %c19_34], %39 {strides = array<i32>} : memref<32x768xf32, #tpu.memory_space<vmem>>, vector<8x648xf32>,
    %c0_35 = arith.constant 0 : index
    %c0_36 = arith.constant 0 : index
    %c18_37 = arith.constant 18 : index
    %41 = vector.load %arg1[%c0_35, %c0_36, %c18_37] : memref<1x8x768xf32, #tpu.memory_space<vmem>>, vector<1x8x648xf32>
    %42 = vector.shape_cast %41 : vector<1x8x648xf32> to vector<8x648xf32>
    %c0_38 = arith.constant 0 : index
    %c0_39 = arith.constant 0 : index
    %c36 = arith.constant 36 : index
    %43 = vector.load %arg1[%c0_38, %c0_39, %c36] : memref<1x8x768xf32, #tpu.memory_space<vmem>>, vector<1x8x648xf32>
    %44 = vector.shape_cast %43 : vector<1x8x648xf32> to vector<8x648xf32>
    %45 = tpu.concatenate %42, %44 in 0 : vector<8x648xf32>, vector<8x648xf32> -> vector<16x648xf32>
    %46 = arith.truncf %45 : vector<16x648xf32> to vector<16x648xbf16>
    %c2 = arith.constant 2 : index
    %c0_40 = arith.constant 0 : index
    %c0_41 = arith.constant 0 : index
    %47 = vector.load %arg3[%c2, %c0_40, %c0_41] : memref<4x8x16xbf16, #tpu.memory_space<vmem>>, vector<1x8x16xbf16>
    %48 = vector.shape_cast %47 : vector<1x8x16xbf16> to vector<8x16xbf16>
    %cst_42 = arith.constant dense<0.000000e+00> : vector<8x648xf32>
    %49 = tpu.matmul %48, %46, %cst_42 {dimension_numbers = #tpu.dot_dimension_numbers<[1], [0], [0], [1], [0, 0, 1, 1], [], []>} : vector<8x16xbf16>, vector<16x648xbf16>, vector<8x648xf32> -> vector<8x648xf32>
    %c0_43 = arith.constant 0 : index
    %c0_44 = arith.constant 0 : index
    %50 = vector.load %arg4[%c0_43, %c0_44] : memref<8x1xf32, #tpu.memory_space<vmem>>, vector<8x1xf32>
    %51 = vector.broadcast %50 : vector<8x1xf32> to vector<8x648xf32>
    %52 = arith.addf %49, %51 : vector<8x648xf32>
    %cst_45 = arith.constant 0.000000e+00 : f32
    %53 = vector.broadcast %cst_45 : f32 to vector<8x648xf32>
    %54 = arith.maximumf %52, %53 : vector<8x648xf32>
    %55 = vector.broadcast %0 : vector<1x648xf32> to vector<8x648xf32>
    %56 = arith.mulf %54, %55 : vector<8x648xf32>
    %c16 = arith.constant 16 : index
    %c19_46 = arith.constant 19 : index
    %57 = vector.load %arg10[%c16, %c19_46] : memref<32x768xf32, #tpu.memory_space<vmem>>, vector<8x648xf32>
    tpu.vector_store %arg10[%c16, %c19_46], %56 {strides = array<i32>} : memref<32x768xf32, #tpu.memory_space<vmem>>, vector<8x648xf32>,
    %c0_47 = arith.constant 0 : index
    %c0_48 = arith.constant 0 : index
    %c19_49 = arith.constant 19 : index
    %58 = vector.load %arg1[%c0_47, %c0_48, %c19_49] : memref<1x8x768xf32, #tpu.memory_space<vmem>>, vector<1x8x648xf32>
    %59 = vector.shape_cast %58 : vector<1x8x648xf32> to vector<8x648xf32>
    %c0_50 = arith.constant 0 : index
    %c0_51 = arith.constant 0 : index
    %c37 = arith.constant 37 : index
    %60 = vector.load %arg1[%c0_50, %c0_51, %c37] : memref<1x8x768xf32, #tpu.memory_space<vmem>>, vector<1x8x648xf32>
    %61 = vector.shape_cast %60 : vector<1x8x648xf32> to vector<8x648xf32>
    %62 = tpu.concatenate %59, %61 in 0 : vector<8x648xf32>, vector<8x648xf32> -> vector<16x648xf32>
    %63 = arith.truncf %62 : vector<16x648xf32> to vector<16x648xbf16>
    %c3 = arith.constant 3 : index
    %c0_52 = arith.constant 0 : index
    %c0_53 = arith.constant 0 : index
    %64 = vector.load %arg3[%c3, %c0_52, %c0_53] : memref<4x8x16xbf16, #tpu.memory_space<vmem>>, vector<1x8x16xbf16>
    %65 = vector.shape_cast %64 : vector<1x8x16xbf16> to vector<8x16xbf16>
    %cst_54 = arith.constant dense<0.000000e+00> : vector<8x648xf32>
    %66 = tpu.matmul %65, %63, %cst_54 {dimension_numbers = #tpu.dot_dimension_numbers<[1], [0], [0], [1], [0, 0, 1, 1], [], []>} : vector<8x16xbf16>, vector<16x648xbf16>, vector<8x648xf32> -> vector<8x648xf32>
    %c0_55 = arith.constant 0 : index
    %c0_56 = arith.constant 0 : index
    %67 = vector.load %arg4[%c0_55, %c0_56] : memref<8x1xf32, #tpu.memory_space<vmem>>, vector<8x1xf32>
    %68 = vector.broadcast %67 : vector<8x1xf32> to vector<8x648xf32>
    %69 = arith.addf %66, %68 : vector<8x648xf32>
    %cst_57 = arith.constant 0.000000e+00 : f32
    %70 = vector.broadcast %cst_57 : f32 to vector<8x648xf32>
    %71 = arith.maximumf %69, %70 : vector<8x648xf32>
    %72 = vector.broadcast %0 : vector<1x648xf32> to vector<8x648xf32>
    %73 = arith.mulf %71, %72 : vector<8x648xf32>
    %c24 = arith.constant 24 : index
    %c19_58 = arith.constant 19 : index
    %74 = vector.load %arg10[%c24, %c19_58] : memref<32x768xf32, #tpu.memory_space<vmem>>, vector<8x648xf32>
    tpu.vector_store %arg10[%c24, %c19_58], %73 {strides = array<i32>} : memref<32x768xf32, #tpu.memory_space<vmem>>, vector<8x648xf32>,
    %c0_59 = arith.constant 0 : index
    %c0_60 = arith.constant 0 : index
    %75 = vector.load %arg5[%c0_59, %c0_60] : memref<8x72xbf16, #tpu.memory_space<vmem>>, vector<8x72xbf16>
    %c24_61 = arith.constant 24 : index
    %c0_62 = arith.constant 0 : index
    %76 = vector.load %arg10[%c24_61, %c0_62] : memref<32x768xf32, #tpu.memory_space<vmem>>, vector<8x648xf32>
    %c16_63 = arith.constant 16 : index
    %c1_64 = arith.constant 1 : index
    %77 = vector.load %arg10[%c16_63, %c1_64] : memref<32x768xf32, #tpu.memory_space<vmem>>, vector<8x648xf32>
    %c24_65 = arith.constant 24 : index
    %c1_66 = arith.constant 1 : index
    %78 = vector.load %arg10[%c24_65, %c1_66] : memref<32x768xf32, #tpu.memory_space<vmem>>, vector<8x648xf32>
    %c8_67 = arith.constant 8 : index
    %c18_68 = arith.constant 18 : index
    %79 = vector.load %arg10[%c8_67, %c18_68] : memref<32x768xf32, #tpu.memory_space<vmem>>, vector<8x648xf32>
    %c0_69 = arith.constant 0 : index
    %c19_70 = arith.constant 19 : index
    %80 = vector.load %arg10[%c0_69, %c19_70] : memref<32x768xf32, #tpu.memory_space<vmem>>, vector<8x648xf32>
    %c8_71 = arith.constant 8 : index
    %c19_72 = arith.constant 19 : index
    %81 = vector.load %arg10[%c8_71, %c19_72] : memref<32x768xf32, #tpu.memory_space<vmem>>, vector<8x648xf32>
    %c24_73 = arith.constant 24 : index
    %c18_74 = arith.constant 18 : index
    %82 = vector.load %arg10[%c24_73, %c18_74] : memref<32x768xf32, #tpu.memory_space<vmem>>, vector<8x648xf32>
    %c16_75 = arith.constant 16 : index
    %c19_76 = arith.constant 19 : index
    %83 = vector.load %arg10[%c16_75, %c19_76] : memref<32x768xf32, #tpu.memory_space<vmem>>, vector<8x648xf32>
    %c24_77 = arith.constant 24 : index
    %c19_78 = arith.constant 19 : index
    %84 = vector.load %arg10[%c24_77, %c19_78] : memref<32x768xf32, #tpu.memory_space<vmem>>, vector<8x648xf32>
    %85 = tpu.concatenate %76, %77, %78, %79, %80, %81, %82, %83, %84 in 0 : vector<8x648xf32>, vector<8x648xf32>, vector<8x648xf32>, vector<8x648xf32>, vector<8x648xf32>, vector<8x648xf32>, vector<8x648xf32>, vector<8x648xf32>, vector<8x648xf32> -> vector<72x648xf32>
    %86 = arith.truncf %85 : vector<72x648xf32> to vector<72x648xbf16>
    %cst_79 = arith.constant dense<0.000000e+00> : vector<8x648xf32>
    %87 = tpu.matmul %75, %86, %cst_79 {dimension_numbers = #tpu.dot_dimension_numbers<[1], [0], [0], [1], [0, 0, 1, 1], [], []>} : vector<8x72xbf16>, vector<72x648xbf16>, vector<8x648xf32> -> vector<8x648xf32>
    %c16_80 = arith.constant 16 : index
    %c1_81 = arith.constant 1 : index
    %88 = vector.load %arg10[%c16_80, %c1_81] : memref<32x768xf32, #tpu.memory_space<vmem>>, vector<8x648xf32>
    %c24_82 = arith.constant 24 : index
    %c1_83 = arith.constant 1 : index
    %89 = vector.load %arg10[%c24_82, %c1_83] : memref<32x768xf32, #tpu.memory_space<vmem>>, vector<8x648xf32>
    %c16_84 = arith.constant 16 : index
    %c2_85 = arith.constant 2 : index
    %90 = vector.load %arg10[%c16_84, %c2_85] : memref<32x768xf32, #tpu.memory_space<vmem>>, vector<8x648xf32>
    %c0_86 = arith.constant 0 : index
    %c19_87 = arith.constant 19 : index
    %91 = vector.load %arg10[%c0_86, %c19_87] : memref<32x768xf32, #tpu.memory_space<vmem>>, vector<8x648xf32>
    %c8_88 = arith.constant 8 : index
    %c19_89 = arith.constant 19 : index
    %92 = vector.load %arg10[%c8_88, %c19_89] : memref<32x768xf32, #tpu.memory_space<vmem>>, vector<8x648xf32>
    %c0_90 = arith.constant 0 : index
    %c20 = arith.constant 20 : index
    %93 = vector.load %arg10[%c0_90, %c20] : memref<32x768xf32, #tpu.memory_space<vmem>>, vector<8x648xf32>
    %c16_91 = arith.constant 16 : index
    %c19_92 = arith.constant 19 : index
    %94 = vector.load %arg10[%c16_91, %c19_92] : memref<32x768xf32, #tpu.memory_space<vmem>>, vector<8x648xf32>
    %c24_93 = arith.constant 24 : index
    %c19_94 = arith.constant 19 : index
    %95 = vector.load %arg10[%c24_93, %c19_94] : memref<32x768xf32, #tpu.memory_space<vmem>>, vector<8x648xf32>
    %c16_95 = arith.constant 16 : index
    %c20_96 = arith.constant 20 : index
    %96 = vector.load %arg10[%c16_95, %c20_96] : memref<32x768xf32, #tpu.memory_space<vmem>>, vector<8x648xf32>
    %97 = tpu.concatenate %88, %89, %90, %91, %92, %93, %94, %95, %96 in 0 : vector<8x648xf32>, vector<8x648xf32>, vector<8x648xf32>, vector<8x648xf32>, vector<8x648xf32>, vector<8x648xf32>, vector<8x648xf32>, vector<8x648xf32>, vector<8x648xf32> -> vector<72x648xf32>
    %98 = arith.truncf %97 : vector<72x648xf32> to vector<72x648xbf16>
    %cst_97 = arith.constant dense<0.000000e+00> : vector<8x648xf32>
    %99 = tpu.matmul %75, %98, %cst_97 {dimension_numbers = #tpu.dot_dimension_numbers<[1], [0], [0], [1], [0, 0, 1, 1], [], []>} : vector<8x72xbf16>, vector<72x648xbf16>, vector<8x648xf32> -> vector<8x648xf32>
    %c8_98 = arith.constant 8 : index
    %c18_99 = arith.constant 18 : index
    %100 = vector.load %arg10[%c8_98, %c18_99] : memref<32x768xf32, #tpu.memory_space<vmem>>, vector<8x648xf32>
    %c0_100 = arith.constant 0 : index
    %c19_101 = arith.constant 19 : index
    %101 = vector.load %arg10[%c0_100, %c19_101] : memref<32x768xf32, #tpu.memory_space<vmem>>, vector<8x648xf32>
    %c8_102 = arith.constant 8 : index
    %c19_103 = arith.constant 19 : index
    %102 = vector.load %arg10[%c8_102, %c19_103] : memref<32x768xf32, #tpu.memory_space<vmem>>, vector<8x648xf32>
    %c24_104 = arith.constant 24 : index
    %c18_105 = arith.constant 18 : index
    %103 = vector.load %arg10[%c24_104, %c18_105] : memref<32x768xf32, #tpu.memory_space<vmem>>, vector<8x648xf32>
    %c16_106 = arith.constant 16 : index
    %c19_107 = arith.constant 19 : index
    %104 = vector.load %arg10[%c16_106, %c19_107] : memref<32x768xf32, #tpu.memory_space<vmem>>, vector<8x648xf32>
    %c24_108 = arith.constant 24 : index
    %c19_109 = arith.constant 19 : index
    %105 = vector.load %arg10[%c24_108, %c19_109] : memref<32x768xf32, #tpu.memory_space<vmem>>, vector<8x648xf32>
    %c8_110 = arith.constant 8 : index
    %c36_111 = arith.constant 36 : index
    %106 = vector.load %arg10[%c8_110, %c36_111] : memref<32x768xf32, #tpu.memory_space<vmem>>, vector<8x648xf32>
    %c0_112 = arith.constant 0 : index
    %c37_113 = arith.constant 37 : index
    %107 = vector.load %arg10[%c0_112, %c37_113] : memref<32x768xf32, #tpu.memory_space<vmem>>, vector<8x648xf32>
    %c8_114 = arith.constant 8 : index
    %c37_115 = arith.constant 37 : index
    %108 = vector.load %arg10[%c8_114, %c37_115] : memref<32x768xf32, #tpu.memory_space<vmem>>, vector<8x648xf32>
    %109 = tpu.concatenate %100, %101, %102, %103, %104, %105, %106, %107, %108 in 0 : vector<8x648xf32>, vector<8x648xf32>, vector<8x648xf32>, vector<8x648xf32>, vector<8x648xf32>, vector<8x648xf32>, vector<8x648xf32>, vector<8x648xf32>, vector<8x648xf32> -> vector<72x648xf32>
    %110 = arith.truncf %109 : vector<72x648xf32> to vector<72x648xbf16>
    %cst_116 = arith.constant dense<0.000000e+00> : vector<8x648xf32>
    %111 = tpu.matmul %75, %110, %cst_116 {dimension_numbers = #tpu.dot_dimension_numbers<[1], [0], [0], [1], [0, 0, 1, 1], [], []>} : vector<8x72xbf16>, vector<72x648xbf16>, vector<8x648xf32> -> vector<8x648xf32>
    %c0_117 = arith.constant 0 : index
    %c19_118 = arith.constant 19 : index
    %112 = vector.load %arg10[%c0_117, %c19_118] : memref<32x768xf32, #tpu.memory_space<vmem>>, vector<8x648xf32>
    %c8_119 = arith.constant 8 : index
    %c19_120 = arith.constant 19 : index
    %113 = vector.load %arg10[%c8_119, %c19_120] : memref<32x768xf32, #tpu.memory_space<vmem>>, vector<8x648xf32>
    %c0_121 = arith.constant 0 : index
    %c20_122 = arith.constant 20 : index
    %114 = vector.load %arg10[%c0_121, %c20_122] : memref<32x768xf32, #tpu.memory_space<vmem>>, vector<8x648xf32>
    %c16_123 = arith.constant 16 : index
    %c19_124 = arith.constant 19 : index
    %115 = vector.load %arg10[%c16_123, %c19_124] : memref<32x768xf32, #tpu.memory_space<vmem>>, vector<8x648xf32>
    %c24_125 = arith.constant 24 : index
    %c19_126 = arith.constant 19 : index
    %116 = vector.load %arg10[%c24_125, %c19_126] : memref<32x768xf32, #tpu.memory_space<vmem>>, vector<8x648xf32>
    %c16_127 = arith.constant 16 : index
    %c20_128 = arith.constant 20 : index
    %117 = vector.load %arg10[%c16_127, %c20_128] : memref<32x768xf32, #tpu.memory_space<vmem>>, vector<8x648xf32>
    %c0_129 = arith.constant 0 : index
    %c37_130 = arith.constant 37 : index
    %118 = vector.load %arg10[%c0_129, %c37_130] : memref<32x768xf32, #tpu.memory_space<vmem>>, vector<8x648xf32>
    %c8_131 = arith.constant 8 : index
    %c37_132 = arith.constant 37 : index
    %119 = vector.load %arg10[%c8_131, %c37_132] : memref<32x768xf32, #tpu.memory_space<vmem>>, vector<8x648xf32>
    %c0_133 = arith.constant 0 : index
    %c38 = arith.constant 38 : index
    %120 = vector.load %arg10[%c0_133, %c38] : memref<32x768xf32, #tpu.memory_space<vmem>>, vector<8x648xf32>
    %121 = tpu.concatenate %112, %113, %114, %115, %116, %117, %118, %119, %120 in 0 : vector<8x648xf32>, vector<8x648xf32>, vector<8x648xf32>, vector<8x648xf32>, vector<8x648xf32>, vector<8x648xf32>, vector<8x648xf32>, vector<8x648xf32>, vector<8x648xf32> -> vector<72x648xf32>
    %122 = arith.truncf %121 : vector<72x648xf32> to vector<72x648xbf16>
    %cst_134 = arith.constant dense<0.000000e+00> : vector<8x648xf32>
    %123 = tpu.matmul %75, %122, %cst_134 {dimension_numbers = #tpu.dot_dimension_numbers<[1], [0], [0], [1], [0, 0, 1, 1], [], []>} : vector<8x72xbf16>, vector<72x648xbf16>, vector<8x648xf32> -> vector<8x648xf32>
    %c0_135 = arith.constant 0 : index
    %c0_136 = arith.constant 0 : index
    %124 = vector.load %arg6[%c0_135, %c0_136] : memref<8x1xf32, #tpu.memory_space<vmem>>, vector<8x1xf32>
    %125 = vector.broadcast %124 : vector<8x1xf32> to vector<8x648xf32>
    %126 = arith.addf %87, %125 : vector<8x648xf32>
    %cst_137 = arith.constant 0.000000e+00 : f32
    %127 = vector.broadcast %cst_137 : f32 to vector<8x648xf32>
    %128 = arith.maximumf %126, %127 : vector<8x648xf32>
    %129 = vector.broadcast %0 : vector<1x648xf32> to vector<8x648xf32>
    %130 = arith.mulf %128, %129 : vector<8x648xf32>
    %c0_138 = arith.constant 0 : index
    %c19_139 = arith.constant 19 : index
    %131 = vector.load %arg11[%c0_138, %c19_139] : memref<32x768xf32, #tpu.memory_space<vmem>>, vector<8x648xf32>
    tpu.vector_store %arg11[%c0_138, %c19_139], %130 {strides = array<i32>} : memref<32x768xf32, #tpu.memory_space<vmem>>, vector<8x648xf32>,
    %c0_140 = arith.constant 0 : index
    %c0_141 = arith.constant 0 : index
    %132 = vector.load %arg6[%c0_140, %c0_141] : memref<8x1xf32, #tpu.memory_space<vmem>>, vector<8x1xf32>
    %133 = vector.broadcast %132 : vector<8x1xf32> to vector<8x648xf32>
    %134 = arith.addf %99, %133 : vector<8x648xf32>
    %cst_142 = arith.constant 0.000000e+00 : f32
    %135 = vector.broadcast %cst_142 : f32 to vector<8x648xf32>
    %136 = arith.maximumf %134, %135 : vector<8x648xf32>
    %137 = vector.broadcast %0 : vector<1x648xf32> to vector<8x648xf32>
    %138 = arith.mulf %136, %137 : vector<8x648xf32>
    %c8_143 = arith.constant 8 : index
    %c19_144 = arith.constant 19 : index
    %139 = vector.load %arg11[%c8_143, %c19_144] : memref<32x768xf32, #tpu.memory_space<vmem>>, vector<8x648xf32>
    tpu.vector_store %arg11[%c8_143, %c19_144], %138 {strides = array<i32>} : memref<32x768xf32, #tpu.memory_space<vmem>>, vector<8x648xf32>,
    %c0_145 = arith.constant 0 : index
    %c0_146 = arith.constant 0 : index
    %140 = vector.load %arg6[%c0_145, %c0_146] : memref<8x1xf32, #tpu.memory_space<vmem>>, vector<8x1xf32>
    %141 = vector.broadcast %140 : vector<8x1xf32> to vector<8x648xf32>
    %142 = arith.addf %111, %141 : vector<8x648xf32>
    %cst_147 = arith.constant 0.000000e+00 : f32
    %143 = vector.broadcast %cst_147 : f32 to vector<8x648xf32>
    %144 = arith.maximumf %142, %143 : vector<8x648xf32>
    %145 = vector.broadcast %0 : vector<1x648xf32> to vector<8x648xf32>
    %146 = arith.mulf %144, %145 : vector<8x648xf32>
    %c16_148 = arith.constant 16 : index
    %c19_149 = arith.constant 19 : index
    %147 = vector.load %arg11[%c16_148, %c19_149] : memref<32x768xf32, #tpu.memory_space<vmem>>, vector<8x648xf32>
    tpu.vector_store %arg11[%c16_148, %c19_149], %146 {strides = array<i32>} : memref<32x768xf32, #tpu.memory_space<vmem>>, vector<8x648xf32>,
    %c0_150 = arith.constant 0 : index
    %c0_151 = arith.constant 0 : index
    %148 = vector.load %arg6[%c0_150, %c0_151] : memref<8x1xf32, #tpu.memory_space<vmem>>, vector<8x1xf32>
    %149 = vector.broadcast %148 : vector<8x1xf32> to vector<8x648xf32>
    %150 = arith.addf %123, %149 : vector<8x648xf32>
    %cst_152 = arith.constant 0.000000e+00 : f32
    %151 = vector.broadcast %cst_152 : f32 to vector<8x648xf32>
    %152 = arith.maximumf %150, %151 : vector<8x648xf32>
    %153 = vector.broadcast %0 : vector<1x648xf32> to vector<8x648xf32>
    %154 = arith.mulf %152, %153 : vector<8x648xf32>
    %c24_153 = arith.constant 24 : index
    %c19_154 = arith.constant 19 : index
    %155 = vector.load %arg11[%c24_153, %c19_154] : memref<32x768xf32, #tpu.memory_space<vmem>>, vector<8x648xf32>
    tpu.vector_store %arg11[%c24_153, %c19_154], %154 {strides = array<i32>} : memref<32x768xf32, #tpu.memory_space<vmem>>, vector<8x648xf32>,
    %c0_155 = arith.constant 0 : index
    %c0_156 = arith.constant 0 : index
    %156 = vector.load %arg7[%c0_155, %c0_156] : memref<8x72xbf16, #tpu.memory_space<vmem>>, vector<8x72xbf16>
    %c24_157 = arith.constant 24 : index
    %c0_158 = arith.constant 0 : index
    %157 = vector.load %arg11[%c24_157, %c0_158] : memref<32x768xf32, #tpu.memory_space<vmem>>, vector<8x648xf32>
    %c16_159 = arith.constant 16 : index
    %c1_160 = arith.constant 1 : index
    %158 = vector.load %arg11[%c16_159, %c1_160] : memref<32x768xf32, #tpu.memory_space<vmem>>, vector<8x648xf32>
    %c24_161 = arith.constant 24 : index
    %c1_162 = arith.constant 1 : index
    %159 = vector.load %arg11[%c24_161, %c1_162] : memref<32x768xf32, #tpu.memory_space<vmem>>, vector<8x648xf32>
    %c8_163 = arith.constant 8 : index
    %c18_164 = arith.constant 18 : index
    %160 = vector.load %arg11[%c8_163, %c18_164] : memref<32x768xf32, #tpu.memory_space<vmem>>, vector<8x648xf32>
    %c0_165 = arith.constant 0 : index
    %c19_166 = arith.constant 19 : index
    %161 = vector.load %arg11[%c0_165, %c19_166] : memref<32x768xf32, #tpu.memory_space<vmem>>, vector<8x648xf32>
    %c8_167 = arith.constant 8 : index
    %c19_168 = arith.constant 19 : index
    %162 = vector.load %arg11[%c8_167, %c19_168] : memref<32x768xf32, #tpu.memory_space<vmem>>, vector<8x648xf32>
    %c24_169 = arith.constant 24 : index
    %c18_170 = arith.constant 18 : index
    %163 = vector.load %arg11[%c24_169, %c18_170] : memref<32x768xf32, #tpu.memory_space<vmem>>, vector<8x648xf32>
    %c16_171 = arith.constant 16 : index
    %c19_172 = arith.constant 19 : index
    %164 = vector.load %arg11[%c16_171, %c19_172] : memref<32x768xf32, #tpu.memory_space<vmem>>, vector<8x648xf32>
    %c24_173 = arith.constant 24 : index
    %c19_174 = arith.constant 19 : index
    %165 = vector.load %arg11[%c24_173, %c19_174] : memref<32x768xf32, #tpu.memory_space<vmem>>, vector<8x648xf32>
    %166 = tpu.concatenate %157, %158, %159, %160, %161, %162, %163, %164, %165 in 0 : vector<8x648xf32>, vector<8x648xf32>, vector<8x648xf32>, vector<8x648xf32>, vector<8x648xf32>, vector<8x648xf32>, vector<8x648xf32>, vector<8x648xf32>, vector<8x648xf32> -> vector<72x648xf32>
    %167 = arith.truncf %166 : vector<72x648xf32> to vector<72x648xbf16>
    %cst_175 = arith.constant dense<0.000000e+00> : vector<8x648xf32>
    %168 = tpu.matmul %156, %167, %cst_175 {dimension_numbers = #tpu.dot_dimension_numbers<[1], [0], [0], [1], [0, 0, 1, 1], [], []>} : vector<8x72xbf16>, vector<72x648xbf16>, vector<8x648xf32> -> vector<8x648xf32>
    %c16_176 = arith.constant 16 : index
    %c1_177 = arith.constant 1 : index
    %169 = vector.load %arg11[%c16_176, %c1_177] : memref<32x768xf32, #tpu.memory_space<vmem>>, vector<8x648xf32>
    %c24_178 = arith.constant 24 : index
    %c1_179 = arith.constant 1 : index
    %170 = vector.load %arg11[%c24_178, %c1_179] : memref<32x768xf32, #tpu.memory_space<vmem>>, vector<8x648xf32>
    %c16_180 = arith.constant 16 : index
    %c2_181 = arith.constant 2 : index
    %171 = vector.load %arg11[%c16_180, %c2_181] : memref<32x768xf32, #tpu.memory_space<vmem>>, vector<8x648xf32>
    %c0_182 = arith.constant 0 : index
    %c19_183 = arith.constant 19 : index
    %172 = vector.load %arg11[%c0_182, %c19_183] : memref<32x768xf32, #tpu.memory_space<vmem>>, vector<8x648xf32>
    %c8_184 = arith.constant 8 : index
    %c19_185 = arith.constant 19 : index
    %173 = vector.load %arg11[%c8_184, %c19_185] : memref<32x768xf32, #tpu.memory_space<vmem>>, vector<8x648xf32>
    %c0_186 = arith.constant 0 : index
    %c20_187 = arith.constant 20 : index
    %174 = vector.load %arg11[%c0_186, %c20_187] : memref<32x768xf32, #tpu.memory_space<vmem>>, vector<8x648xf32>
    %c16_188 = arith.constant 16 : index
    %c19_189 = arith.constant 19 : index
    %175 = vector.load %arg11[%c16_188, %c19_189] : memref<32x768xf32, #tpu.memory_space<vmem>>, vector<8x648xf32>
    %c24_190 = arith.constant 24 : index
    %c19_191 = arith.constant 19 : index
    %176 = vector.load %arg11[%c24_190, %c19_191] : memref<32x768xf32, #tpu.memory_space<vmem>>, vector<8x648xf32>
    %c16_192 = arith.constant 16 : index
    %c20_193 = arith.constant 20 : index
    %177 = vector.load %arg11[%c16_192, %c20_193] : memref<32x768xf32, #tpu.memory_space<vmem>>, vector<8x648xf32>
    %178 = tpu.concatenate %169, %170, %171, %172, %173, %174, %175, %176, %177 in 0 : vector<8x648xf32>, vector<8x648xf32>, vector<8x648xf32>, vector<8x648xf32>, vector<8x648xf32>, vector<8x648xf32>, vector<8x648xf32>, vector<8x648xf32>, vector<8x648xf32> -> vector<72x648xf32>
    %179 = arith.truncf %178 : vector<72x648xf32> to vector<72x648xbf16>
    %cst_194 = arith.constant dense<0.000000e+00> : vector<8x648xf32>
    %180 = tpu.matmul %156, %179, %cst_194 {dimension_numbers = #tpu.dot_dimension_numbers<[1], [0], [0], [1], [0, 0, 1, 1], [], []>} : vector<8x72xbf16>, vector<72x648xbf16>, vector<8x648xf32> -> vector<8x648xf32>
    %c8_195 = arith.constant 8 : index
    %c18_196 = arith.constant 18 : index
    %181 = vector.load %arg11[%c8_195, %c18_196] : memref<32x768xf32, #tpu.memory_space<vmem>>, vector<8x648xf32>
    %c0_197 = arith.constant 0 : index
    %c19_198 = arith.constant 19 : index
    %182 = vector.load %arg11[%c0_197, %c19_198] : memref<32x768xf32, #tpu.memory_space<vmem>>, vector<8x648xf32>
    %c8_199 = arith.constant 8 : index
    %c19_200 = arith.constant 19 : index
    %183 = vector.load %arg11[%c8_199, %c19_200] : memref<32x768xf32, #tpu.memory_space<vmem>>, vector<8x648xf32>
    %c24_201 = arith.constant 24 : index
    %c18_202 = arith.constant 18 : index
    %184 = vector.load %arg11[%c24_201, %c18_202] : memref<32x768xf32, #tpu.memory_space<vmem>>, vector<8x648xf32>
    %c16_203 = arith.constant 16 : index
    %c19_204 = arith.constant 19 : index
    %185 = vector.load %arg11[%c16_203, %c19_204] : memref<32x768xf32, #tpu.memory_space<vmem>>, vector<8x648xf32>
    %c24_205 = arith.constant 24 : index
    %c19_206 = arith.constant 19 : index
    %186 = vector.load %arg11[%c24_205, %c19_206] : memref<32x768xf32, #tpu.memory_space<vmem>>, vector<8x648xf32>
    %c8_207 = arith.constant 8 : index
    %c36_208 = arith.constant 36 : index
    %187 = vector.load %arg11[%c8_207, %c36_208] : memref<32x768xf32, #tpu.memory_space<vmem>>, vector<8x648xf32>
    %c0_209 = arith.constant 0 : index
    %c37_210 = arith.constant 37 : index
    %188 = vector.load %arg11[%c0_209, %c37_210] : memref<32x768xf32, #tpu.memory_space<vmem>>, vector<8x648xf32>
    %c8_211 = arith.constant 8 : index
    %c37_212 = arith.constant 37 : index
    %189 = vector.load %arg11[%c8_211, %c37_212] : memref<32x768xf32, #tpu.memory_space<vmem>>, vector<8x648xf32>
    %190 = tpu.concatenate %181, %182, %183, %184, %185, %186, %187, %188, %189 in 0 : vector<8x648xf32>, vector<8x648xf32>, vector<8x648xf32>, vector<8x648xf32>, vector<8x648xf32>, vector<8x648xf32>, vector<8x648xf32>, vector<8x648xf32>, vector<8x648xf32> -> vector<72x648xf32>
    %191 = arith.truncf %190 : vector<72x648xf32> to vector<72x648xbf16>
    %cst_213 = arith.constant dense<0.000000e+00> : vector<8x648xf32>
    %192 = tpu.matmul %156, %191, %cst_213 {dimension_numbers = #tpu.dot_dimension_numbers<[1], [0], [0], [1], [0, 0, 1, 1], [], []>} : vector<8x72xbf16>, vector<72x648xbf16>, vector<8x648xf32> -> vector<8x648xf32>
    %c0_214 = arith.constant 0 : index
    %c19_215 = arith.constant 19 : index
    %193 = vector.load %arg11[%c0_214, %c19_215] : memref<32x768xf32, #tpu.memory_space<vmem>>, vector<8x648xf32>
    %c8_216 = arith.constant 8 : index
    %c19_217 = arith.constant 19 : index
    %194 = vector.load %arg11[%c8_216, %c19_217] : memref<32x768xf32, #tpu.memory_space<vmem>>, vector<8x648xf32>
    %c0_218 = arith.constant 0 : index
    %c20_219 = arith.constant 20 : index
    %195 = vector.load %arg11[%c0_218, %c20_219] : memref<32x768xf32, #tpu.memory_space<vmem>>, vector<8x648xf32>
    %c16_220 = arith.constant 16 : index
    %c19_221 = arith.constant 19 : index
    %196 = vector.load %arg11[%c16_220, %c19_221] : memref<32x768xf32, #tpu.memory_space<vmem>>, vector<8x648xf32>
    %c24_222 = arith.constant 24 : index
    %c19_223 = arith.constant 19 : index
    %197 = vector.load %arg11[%c24_222, %c19_223] : memref<32x768xf32, #tpu.memory_space<vmem>>, vector<8x648xf32>
    %c16_224 = arith.constant 16 : index
    %c20_225 = arith.constant 20 : index
    %198 = vector.load %arg11[%c16_224, %c20_225] : memref<32x768xf32, #tpu.memory_space<vmem>>, vector<8x648xf32>
    %c0_226 = arith.constant 0 : index
    %c37_227 = arith.constant 37 : index
    %199 = vector.load %arg11[%c0_226, %c37_227] : memref<32x768xf32, #tpu.memory_space<vmem>>, vector<8x648xf32>
    %c8_228 = arith.constant 8 : index
    %c37_229 = arith.constant 37 : index
    %200 = vector.load %arg11[%c8_228, %c37_229] : memref<32x768xf32, #tpu.memory_space<vmem>>, vector<8x648xf32>
    %c0_230 = arith.constant 0 : index
    %c38_231 = arith.constant 38 : index
    %201 = vector.load %arg11[%c0_230, %c38_231] : memref<32x768xf32, #tpu.memory_space<vmem>>, vector<8x648xf32>
    %202 = tpu.concatenate %193, %194, %195, %196, %197, %198, %199, %200, %201 in 0 : vector<8x648xf32>, vector<8x648xf32>, vector<8x648xf32>, vector<8x648xf32>, vector<8x648xf32>, vector<8x648xf32>, vector<8x648xf32>, vector<8x648xf32>, vector<8x648xf32> -> vector<72x648xf32>
    %203 = arith.truncf %202 : vector<72x648xf32> to vector<72x648xbf16>
    %cst_232 = arith.constant dense<0.000000e+00> : vector<8x648xf32>
    %204 = tpu.matmul %156, %203, %cst_232 {dimension_numbers = #tpu.dot_dimension_numbers<[1], [0], [0], [1], [0, 0, 1, 1], [], []>} : vector<8x72xbf16>, vector<72x648xbf16>, vector<8x648xf32> -> vector<8x648xf32>
    %c0_233 = arith.constant 0 : index
    %c19_234 = arith.constant 19 : index
    %205 = vector.load %arg10[%c0_233, %c19_234] : memref<32x768xf32, #tpu.memory_space<vmem>>, vector<8x648xf32>
    %206 = arith.addf %205, %168 : vector<8x648xf32>
    %c0_235 = arith.constant 0 : index
    %c0_236 = arith.constant 0 : index
    %207 = vector.load %arg8[%c0_235, %c0_236] : memref<8x1xf32, #tpu.memory_space<vmem>>, vector<8x1xf32>
    %208 = vector.broadcast %207 : vector<8x1xf32> to vector<8x648xf32>
    %209 = arith.addf %206, %208 : vector<8x648xf32>
    %cst_237 = arith.constant 0.000000e+00 : f32
    %210 = vector.broadcast %cst_237 : f32 to vector<8x648xf32>
    %211 = arith.maximumf %209, %210 : vector<8x648xf32>
    %c0_238 = arith.constant 0 : index
    %c0_239 = arith.constant 0 : index
    %c0_240 = arith.constant 0 : index
    %212 = vector.load %arg9[%c0_238, %c0_239, %c0_240] : memref<1x32x648xf32, #tpu.memory_space<vmem>>, vector<1x8x648xf32>
    %213 = vector.shape_cast %212 : vector<1x8x648xf32> to vector<8x648xf32>
    %214 = vector.shape_cast %211 : vector<8x648xf32> to vector<1x8x648xf32>
    tpu.vector_store %arg9[%c0_238, %c0_239, %c0_240], %214 {strides = array<i32>} : memref<1x32x648xf32, #tpu.memory_space<vmem>>, vector<1x8x648xf32>,
    %c8_241 = arith.constant 8 : index
    %c19_242 = arith.constant 19 : index
    %215 = vector.load %arg10[%c8_241, %c19_242] : memref<32x768xf32, #tpu.memory_space<vmem>>, vector<8x648xf32>
    %216 = arith.addf %215, %180 : vector<8x648xf32>
    %c0_243 = arith.constant 0 : index
    %c0_244 = arith.constant 0 : index
    %217 = vector.load %arg8[%c0_243, %c0_244] : memref<8x1xf32, #tpu.memory_space<vmem>>, vector<8x1xf32>
    %218 = vector.broadcast %217 : vector<8x1xf32> to vector<8x648xf32>
    %219 = arith.addf %216, %218 : vector<8x648xf32>
    %cst_245 = arith.constant 0.000000e+00 : f32
    %220 = vector.broadcast %cst_245 : f32 to vector<8x648xf32>
    %221 = arith.maximumf %219, %220 : vector<8x648xf32>
    %c0_246 = arith.constant 0 : index
    %c8_247 = arith.constant 8 : index
    %c0_248 = arith.constant 0 : index
    %222 = vector.load %arg9[%c0_246, %c8_247, %c0_248] : memref<1x32x648xf32, #tpu.memory_space<vmem>>, vector<1x8x648xf32>
    %223 = vector.shape_cast %222 : vector<1x8x648xf32> to vector<8x648xf32>
    %224 = vector.shape_cast %221 : vector<8x648xf32> to vector<1x8x648xf32>
    tpu.vector_store %arg9[%c0_246, %c8_247, %c0_248], %224 {strides = array<i32>} : memref<1x32x648xf32, #tpu.memory_space<vmem>>, vector<1x8x648xf32>,
    %c16_249 = arith.constant 16 : index
    %c19_250 = arith.constant 19 : index
    %225 = vector.load %arg10[%c16_249, %c19_250] : memref<32x768xf32, #tpu.memory_space<vmem>>, vector<8x648xf32>
    %226 = arith.addf %225, %192 : vector<8x648xf32>
    %c0_251 = arith.constant 0 : index
    %c0_252 = arith.constant 0 : index
    %227 = vector.load %arg8[%c0_251, %c0_252] : memref<8x1xf32, #tpu.memory_space<vmem>>, vector<8x1xf32>
    %228 = vector.broadcast %227 : vector<8x1xf32> to vector<8x648xf32>
    %229 = arith.addf %226, %228 : vector<8x648xf32>
    %cst_253 = arith.constant 0.000000e+00 : f32
    %230 = vector.broadcast %cst_253 : f32 to vector<8x648xf32>
    %231 = arith.maximumf %229, %230 : vector<8x648xf32>
    %c0_254 = arith.constant 0 : index
    %c16_255 = arith.constant 16 : index
    %c0_256 = arith.constant 0 : index
    %232 = vector.load %arg9[%c0_254, %c16_255, %c0_256] : memref<1x32x648xf32, #tpu.memory_space<vmem>>, vector<1x8x648xf32>
    %233 = vector.shape_cast %232 : vector<1x8x648xf32> to vector<8x648xf32>
    %234 = vector.shape_cast %231 : vector<8x648xf32> to vector<1x8x648xf32>
    tpu.vector_store %arg9[%c0_254, %c16_255, %c0_256], %234 {strides = array<i32>} : memref<1x32x648xf32, #tpu.memory_space<vmem>>, vector<1x8x648xf32>,
    %c24_257 = arith.constant 24 : index
    %c19_258 = arith.constant 19 : index
    %235 = vector.load %arg10[%c24_257, %c19_258] : memref<32x768xf32, #tpu.memory_space<vmem>>, vector<8x648xf32>
    %236 = arith.addf %235, %204 : vector<8x648xf32>
    %c0_259 = arith.constant 0 : index
    %c0_260 = arith.constant 0 : index
    %237 = vector.load %arg8[%c0_259, %c0_260] : memref<8x1xf32, #tpu.memory_space<vmem>>, vector<8x1xf32>
    %238 = vector.broadcast %237 : vector<8x1xf32> to vector<8x648xf32>
    %239 = arith.addf %236, %238 : vector<8x648xf32>
    %cst_261 = arith.constant 0.000000e+00 : f32
    %240 = vector.broadcast %cst_261 : f32 to vector<8x648xf32>
    %241 = arith.maximumf %239, %240 : vector<8x648xf32>
    %c0_262 = arith.constant 0 : index
    %c24_263 = arith.constant 24 : index
    %c0_264 = arith.constant 0 : index
    %242 = vector.load %arg9[%c0_262, %c24_263, %c0_264] : memref<1x32x648xf32, #tpu.memory_space<vmem>>, vector<1x8x648xf32>
    %243 = vector.shape_cast %242 : vector<1x8x648xf32> to vector<8x648xf32>
    %244 = vector.shape_cast %241 : vector<8x648xf32> to vector<1x8x648xf32>
    tpu.vector_store %arg9[%c0_262, %c24_263, %c0_264], %244 {strides = array<i32>} : memref<1x32x648xf32, #tpu.memory_space<vmem>>, vector<1x8x648xf32>,
    return
  }
  func.func @transform_0(%arg0: i32) -> (i32, i32, i32) {
    %c0_i32 = arith.constant 0 : i32
    %c0_i32_0 = arith.constant 0 : i32
    %c0_i32_1 = arith.constant 0 : i32
    return %arg0, %c0_i32, %c0_i32_0 : i32, i32, i32
  }
  func.func @transform_1(%arg0: i32) -> (i32, i32) {
    %c0_i32 = arith.constant 0 : i32
    %c0_i32_0 = arith.constant 0 : i32
    %c0_i32_1 = arith.constant 0 : i32
    return %c0_i32, %c0_i32_0 : i32, i32
  }
  func.func @transform_2(%arg0: i32) -> (i32, i32, i32) {
    %c0_i32 = arith.constant 0 : i32
    %c0_i32_0 = arith.constant 0 : i32
    %c0_i32_1 = arith.constant 0 : i32
    %c0_i32_2 = arith.constant 0 : i32
    return %c0_i32, %c0_i32_0, %c0_i32_1 : i32, i32, i32
  }
  func.func @transform_3(%arg0: i32) -> (i32, i32) {
    %c0_i32 = arith.constant 0 : i32
    %c0_i32_0 = arith.constant 0 : i32
    %c0_i32_1 = arith.constant 0 : i32
    return %c0_i32, %c0_i32_0 : i32, i32
  }
  func.func @transform_4(%arg0: i32) -> (i32, i32) {
    %c0_i32 = arith.constant 0 : i32
    %c0_i32_0 = arith.constant 0 : i32
    %c0_i32_1 = arith.constant 0 : i32
    return %c0_i32, %c0_i32_0 : i32, i32
  }
  func.func @transform_5(%arg0: i32) -> (i32, i32) {
    %c0_i32 = arith.constant 0 : i32
    %c0_i32_0 = arith.constant 0 : i32
    %c0_i32_1 = arith.constant 0 : i32
    return %c0_i32, %c0_i32_0 : i32, i32
  }
  func.func @transform_6(%arg0: i32) -> (i32, i32) {
    %c0_i32 = arith.constant 0 : i32
    %c0_i32_0 = arith.constant 0 : i32
    %c0_i32_1 = arith.constant 0 : i32
    return %c0_i32, %c0_i32_0 : i32, i32
  }
  func.func @transform_7(%arg0: i32) -> (i32, i32) {
    %c0_i32 = arith.constant 0 : i32
    %c0_i32_0 = arith.constant 0 : i32
    %c0_i32_1 = arith.constant 0 : i32
    return %c0_i32, %c0_i32_0 : i32, i32
  }
  func.func @transform_8(%arg0: i32) -> (i32, i32, i32) {
    %c0_i32 = arith.constant 0 : i32
    %c0_i32_0 = arith.constant 0 : i32
    %c0_i32_1 = arith.constant 0 : i32
    return %arg0, %c0_i32, %c0_i32_0 : i32, i32, i32
  }
}

</mosaic_0001>

<bundles_post_ra>
// kernel: tpu_custom_call.1
= control target key start
LH: loop header
LB: loop body
LE: loop exit
PB: predicated region body
PF: predicated region fallthrough
CT: control target
= control target key end

     0   :  { %13 = vsyncpa [#allocation5], 0  ;;  %s8510_s0 = inlined_call_operand.hbm [shape: f32[2,8,768], index: 0, kind: input, shape index: {}]   ;;  %s8511_s1 = inlined_call_operand.vmem [shape: f32[1,648], index: 1, kind: input, shape index: {}]   ;;  %s8512_s2 = inlined_call_operand.vmem [shape: bf16[4,8,16], index: 2, kind: input, shape index: {}]   ;;  %s8513_s3 = inlined_call_operand.vmem [shape: f32[8,1], index: 3, kind: input, shape index: {}]   ;;  %s8514_s4 = inlined_call_operand.vmem [shape: bf16[8,72], index: 4, kind: input, shape index: {}]   ;;  %s8515_s5 = inlined_call_operand.vmem [shape: f32[8,1], index: 5, kind: input, shape index: {}]   ;;  %s8516_s6 = inlined_call_operand.vmem [shape: bf16[8,72], index: 6, kind: input, shape index: {}]   ;;  %s8517_s7 = inlined_call_operand.vmem [shape: f32[8,1], index: 7, kind: input, shape index: {}]   ;;  %s8518_s8 = inlined_call_operand.hbm [shape: f32[2,32,648], index: 8, kind: output, shape index: {}]  }
   0x1   :  { %15 = vsyncpa [#allocation5 + $0x1], 0 }
   0x2   :  { %16 = vsyncpa [#allocation6], 0 }
   0x3   :  { %18 = vsyncpa [#allocation6 + $0x1], 0  ;;  %s5568_s27 = smov 0   ;;  %s5570_s28 = smov 0  }
   0x4   :  { %s5572_s29 = smov 0   ;;  %s5574_s30 = smov 0  }
   0x5 LB: > { %s5589_s9 = sadd.s32 4294967295, %s5511_s30   ;;  %s4856_s10 = sadd.s32 4294967294, %s5511_s30   ;;  %s5511_s30 = sphi %s5574_s30, %s8880_s30   ;;  %s5507_s29 = sphi %s5572_s29, %s8879_s29   ;;  %s5503_s28 = sphi %s5570_s28, %s8878_s28   ;;  %s5499_s27 = sphi %s5568_s27, %s8877_s27  }
   0x6   : > { %s5593_s11 = sadd.s32 1, %s5511_s30   ;;  %s31_s12 = sadd.s32 1, %s5507_s29 }
   0x7   : > { %s28_s13 = ssub.s32 %s5511_s30, %s5593_s11  ;;  %p38_p0 = scmp.ne.s32.totalorder %s5507_s29, %s5503_s28 }
   0x8   : > { %p29_p1 = scmp.eq.s32.totalorder %s28_s13, 0  ;;  %p39_p2 = scmp.eq.s32.totalorder %s5511_s30, 0 }
   0x9   : > { %p44_p3 = scmp.ne.s32.totalorder %s5503_s28, %s5499_s27  ;;  %p45_p4 = scmp.eq.s32.totalorder %s5589_s9, 0 }
   0xa   : > { %s5605_s14 = scalar_select %p29_p1, %s5507_s29, %s31_s12  }
   0xb   : > { %p40_p5 = por %p39_p2, %p38_p0  ;;  %p5607_p6 = por %p45_p4, %p44_p3 }
   0xc   : > { %8636 = sst [smem:[#allocation10_spill]] %s5605_s14  ;;  %p215_p7 = scmp.eq.s32.totalorder %s5589_s9, 1 }
   0xd   : > { %p221_p8 = scmp.eq.s32.totalorder %s4856_s10, 1  ;;  %p4944_p10 = scmp.lt.s32.totalorder %s5511_s30, 2 }
   0xe   : > { %p5614_p11 = por %p215_p7, %p38_p0  ;;  %s262_s18 = sand.u32 1, %s5507_s29  }
   0xf   : > { %p5618_p12 = por %p221_p8, %p44_p3  ;;  %s4928_s19 = smul.u32 768, %s5511_s30 }
  0x10   : > { %s8638_s16 = scalar_select %p5614_p11, 1, 0 }
  0x11   : > { %s8639_s17 = scalar_select %p5618_p12, 1, 0 }
  0x12   : > { %s4927_s20 = smul.u32 48, %s262_s18  ;;  %s5627_s23 = scalar_lea.hbm %s8510_s0, %s4928_s19 }
  0x13   : > { %p5629_p13 = pnand %p4944_p10, %p40_p5  ;;  %s263_s10 = scalar_lea.sflag [#allocation5], %s262_s18 }
  0x14   : > { %s266_s25 = scalar_lea.vmem [#allocation4], %s4927_s20  ;;  %s5415_s12 = scalar_lea.hbm %s5627_s23, 768 }
  0x15   : > { %s274_s26 = sshll.u32 %s266_s25, 4  ;;  %p5416_p2 = scmp.ne.s32.totalorder %s5627_s23, %s5415_s12  ;;  %s5634_s26 = int_to_ptr.vmem [resolvable:$true] %s274_s26 }
  0x16   : > { %p5417_p3 = pneg %p5629_p13  ;;  %s5420_s21 = scalar_lea.hbm %s8510_s0, 1536 }
  0x17   : > { %p5421_p7 = scmp.lt.u32.totalorder %s5627_s23, %s8510_s0  ;;  %p5422_p8 = scmp.lt.u32.totalorder %s5420_s21, %s5415_s12 }
  0x18   : > { %p5418_p4 = pnand %p5417_p3, %p5416_p2  ;;  %p5424_p9 = scmp.lt.u32.totalorder %s5415_s12, %s5627_s23 }
  0x19   : > { %p5423_p10 = por %p5422_p8, %p5421_p7 }
  0x1a   : > { %p5419_p5 = pneg %p5418_p4 }
  0x1b   : > { %p5425_p0 = por %p5424_p9, %p5423_p10 }
  0x1d   : > { %p5426_p1 = pnand %p5425_p0, %p5419_p5 }
  0x1f   : > { %5429 = shalt.err (!%p5426_p1)
}
  0x20   : > { %s5430_s18 = scalar_lea.vmem %s5634_s26, 768  ;;  %s5513_s20 = smov [#allocation4]  }
  0x21   : > { %p5431_p2 = scmp.ne.s32.totalorder %s5634_s26, %s5430_s18  ;;  %s5435_s25 = sshll.u32 %s5513_s20, 4  ;;  %s5436_s25 = int_to_ptr.vmem [resolvable:$false] %s5435_s25 }
  0x22   : > { %s5437_s14 = scalar_lea.vmem %s5436_s25, 1536  ;;  %p5438_p11 = scmp.lt.s32.totalorder %s5634_s26, %s5436_s25 }
  0x23   : > { %p5433_p4 = pnand %p5431_p2, %p5417_p3  ;;  %p5439_p7 = scmp.lt.s32.totalorder %s5437_s14, %s5430_s18 }
  0x25   : > { %p5434_p12 = pneg %p5433_p4  ;;  %p5440_p8 = por %p5439_p7, %p5438_p11 }
  0x27   : > { %p5441_p9 = pnand %p5440_p8, %p5434_p12 }
  0x29   : > { %5444 = shalt.err (!%p5441_p9)
}
  0x2a   : > { %4939 = dma.hbm_to_vmem [thread:$0]  (!%p5629_p13), %s5627_s23, 768, %s5634_s26, %s263_s10  }
  0x2b   : > { %p8641_p0 = scmp.lt.s32.totalorder %s5511_s30, 3  ;;  %p8642_p1 = scmp.ge.s32.totalorder %s5511_s30, 1 }
  0x2d   : > { %p280_p3 = pnand %p8642_p1, %p8641_p0 }
  0x2f   : > { %283 = sbr.rel (%p280_p3) target bundleno = 2339 (0x923), region = 52 }
  0x36   : > { %s5667_s12 = sand.u32 1, %s5503_s28  }
  0x37   : > { %s4929_s13 = smul.u32 48, %s5667_s12  ;;  %s286_s19 = scalar_lea.sflag [#allocation5], %s5667_s12 }
  0x39   : > { %s289_s21 = scalar_lea.vmem [#allocation4], %s4929_s13 }
  0x3a   : > { %5490 = dma.done.wait (%p5607_p6), %s286_s19, 768  }
  0x3b   : > { %5492 = vsyncadd (%p5607_p6), %s286_s19, 4294966528  ;;  %v5675_v0 = vld [vmem:[%s289_s21 + $0x20] sm:$0xff]  ;;  %v5677_v1 = vld [vmem:[%s289_s21 + $0x28] sm:$0xff]  ;;  %s5514_s15 = smov 110   ;;  %v8524_v11 = vmov 0   ;;  %vm366_vm0 = vcmask 900096  }
  0x3c   : > { %v5679_v2 = vld [vmem:[%s289_s21 + $0x8] sm:$0xff]  ;;  %v4996_v3 = vpack.i.bf16 %v5677_v1, %v5675_v0  ;;  %v5683_v4 = vld [vmem:[%s289_s21 + $0x10] sm:$0xff]  ;;  %v5685_v5 = vld [vmem:[%s289_s21] sm:$0xff]  ;;  %427 = vmatprep.mubr.bf16.mxu0 %v8524_v11  ;;  %468 = vmatprep.mubr.bf16.mxu1 %v8524_v11  ;;  %s5516_s23 = smov 127   ;;  %vm391_vm1 = vcmask 130048   ;;  %s5517_s10 = smov 109  }
  0x3d   : > { %v5687_v6 = vld [vmem:[%s289_s21 + $0x18] sm:$0xff]  ;;  %v4986_v7 = vpack.i.bf16 %v5683_v4, %v5679_v2  ;;  %v5011_v9 = vpack.i.bf16 %v5685_v5, %v5677_v1  ;;  %5042 = vset.pattern.permute.xlu0 %v8524_v11  ;;  %5041 = vset.pattern.permute.xlu1 %v8524_v11  ;;  %vm665_vm2 = vcmask 1039360   ;;  %vm1169_vm3 = vcmask 891904   ;;  %s5519_s22 = smov 19   ;;  %s4930_s21 = smul.u32 192, %s5667_s12 }
  0x3e   : > { %4997 = vrot.lane.b32.xlu1 %v4996_v3, %s5514_s15  ;;  %v4991_v8 = vpack.i.bf16 %v5685_v5, %v5687_v6  ;;  %v5006_v10 = vpack.i.bf16 %v5675_v0, %v5687_v6  ;;  %vm324_vm4 = vcmask 154624   ;;  %vm329_vm5 = vcmask 1047768   ;;  %p8873_p11 = scmp.ne.s32.totalorder %s8638_s16, 0  ;;  %s5520_s14 = smov [#allocation7]  }
  0x3f   : > { %4987 = vrot.lane.b32.xlu0 %v4986_v7, %s5514_s15  ;;  %vm590_vm6 = vcmask 1047704   ;;  %vm596_vm7 = vcmask 220160   ;;  %vm1799_vm8 = vcmask 1043456   ;;  %vm1795_vm9 = vcmask 588800   ;;  %s8408_s24 = scalar_lea.vmem [#allocation7], %s4930_s21  ;;  %s5449_s13 = sshll.u32 %s5520_s14, 4  ;;  %s5450_s13 = int_to_ptr.vmem [resolvable:$false] %s5449_s13 }
  0x40   : > { %vm4485_vm10 = vcmask 64512   ;;  %s4783_s26 = sshll.u32 %s8408_s24, 4  ;;  %s5451_s19 = scalar_lea.vmem %s5450_s13, 6144  ;;  %s8461_s26 = int_to_ptr.vmem [resolvable:$true] %s4783_s26 }
  0x41   : > { %s5445_s25 = scalar_lea.vmem %s8461_s26, 3072  ;;  %p5452_p5 = scmp.lt.s32.totalorder %s8461_s26, %s5450_s13 }
  0x42   : > { %5002 = vrot.lane.b32.xlu1 %v4986_v7, %s5514_s15  ;;  %p5446_p6 = scmp.ne.s32.totalorder %s8461_s26, %s5445_s25  ;;  %p5453_p10 = scmp.lt.s32.totalorder %s5451_s19, %s5445_s25 }
  0x43   : > { %4992 = vrot.lane.b32.xlu0 %v4991_v8, %s5514_s15 }
  0x44   : > { %p5447_p12 = pnand %p5446_p6, %p8873_p11  ;;  %p5454_p2 = por %p5453_p10, %p5452_p5 }
  0x46   : > { %5012 = vrot.lane.b32.xlu1 %v5011_v9, %s5514_s15  ;;  %p5448_p13 = pneg %p5447_p12 }
  0x47   : > { %5007 = vrot.lane.b32.xlu0 %v5006_v10, %s5514_s15 }
  0x48   : > { %p5455_p4 = pnand %p5454_p2, %p5448_p13 }
  0x4a   : > { %5022 = vrot.lane.b32.xlu1 %v4991_v8, %s5514_s15 }
  0x4b   : > { %5017 = vrot.lane.b32.xlu0 %v4986_v7, %s5514_s15 }
  0x4e   : > { %5032 = vrot.lane.b32.xlu1 %v4986_v7, %s5514_s15 }
  0x4f   : > { %5027 = vrot.lane.b32.xlu0 %v4996_v3, %s5514_s15 }
  0x52   : > { %354 = vrot.lane.b32.xlu1 %v5685_v5, %s5514_s15 }
  0x53   : > { %5037 = vrot.lane.b32.xlu0 %v5006_v10, %s5514_s15 }
  0x57   : > { %364 = vrot.lane.b32.xlu0 %v5677_v1, %s5514_s15 }
  0xb0   : > { %v4998_v12 = vpop.permute.xlu1 %4997 }
  0xb1   : > { %v4988_v13 = vpop.permute.xlu0 %4987  ;;  %v5000_v20 = vunpack.i.h.bf16 %v4998_v12  ;;  %v4999_v23 = vunpack.i.l.bf16 %v4998_v12 }
  0xb2   : > { %v4990_v14 = vunpack.i.h.bf16 %v4988_v13  ;;  %v4989_v15 = vunpack.i.l.bf16 %v4988_v13 }
  0xb3   : > { %v626_v32 = vsel %vm366_vm0, %v4999_v23, %v5000_v20  ;;  %v638_v36 = vpack.c.bf16 %v5000_v20, %v5677_v1 }
  0xb4   : > { %v5003_v16 = vpop.permute.xlu1 %5002  ;;  %v623_v17 = vsel %vm366_vm0, %v4989_v15, %v4990_v14  ;;  %v637_v37 = vpack.c.bf16 %v626_v32, %v5675_v0  ;;  %v385_v32 = vld [vmem:[%s8513_s3] sm:$0xff] }
  0xb5   : > { %v4993_v18 = vpop.permute.xlu0 %4992  ;;  %v634_v19 = vpack.c.bf16 %v623_v17, %v5679_v2  ;;  %v5005_v27 = vunpack.i.h.bf16 %v5003_v16  ;;  %v5004_v28 = vunpack.i.l.bf16 %v5003_v16 }
  0xb6   : > { %v4995_v21 = vunpack.i.h.bf16 %v4993_v18  ;;  %v4994_v22 = vunpack.i.l.bf16 %v4993_v18 }
  0xb7   : > { %655 = vrot.lane.b32.xlu1 %v634_v19, %s5516_s23  ;;  %v875_v38 = vsel %vm366_vm0, %v5004_v28, %v5005_v27 }
  0xb8   : > { %v5719_v24 = vpop.permute.xlu1 %5012  ;;  %v624_v25 = vsel %vm366_vm0, %v4990_v14, %v4994_v22  ;;  %v622_v26 = vsel %vm366_vm0, %v4995_v21, %v4989_v15  ;;  %v625_v40 = vsel %vm366_vm0, %v4994_v22, %v4999_v23  ;;  %v886_v42 = vpack.c.bf16 %v875_v38, %v5679_v2  ;;  %v384_v14 = vld [vmem:[%s8512_s2] sm:$0xf] }
  0xb9   : > { %v5008_v29 = vpop.permute.xlu0 %5007  ;;  %v635_v30 = vpack.c.bf16 %v624_v25, %v5683_v4  ;;  %v633_v31 = vpack.c.bf16 %v622_v26, %v5685_v5  ;;  %v5014_v44 = vunpack.i.l.bf16 %v5719_v24  ;;  %v636_v48 = vpack.c.bf16 %v625_v40, %v5687_v6 }
  0xba   : > { %v5010_v33 = vunpack.i.h.bf16 %v5008_v29  ;;  %v5009_v39 = vunpack.i.l.bf16 %v5008_v29  ;;  %v5015_v50 = vunpack.i.h.bf16 %v5719_v24 }
  0xbb   : > { %657 = vrot.lane.b32.xlu0 %v635_v30, %s5516_s23  ;;  %653 = vrot.lane.b32.xlu1 %v633_v31, %s5516_s23 }
  0xbc   : > { %v5728_v34 = vpop.permute.xlu1 %5022  ;;  %v877_v43 = vsel %vm366_vm0, %v5009_v39, %v5010_v33  ;;  %v876_v49 = vsel %vm366_vm0, %v5005_v27, %v5009_v39  ;;  %v878_v59 = vsel %vm366_vm0, %v5010_v33, %v5014_v44  ;;  %v874_v7 = vsel %vm366_vm0, %v5015_v50, %v5004_v28 }
  0xbd   : > { %v5730_v35 = vpop.permute.xlu0 %5017  ;;  %v888_v51 = vpack.c.bf16 %v877_v43, %v5687_v6  ;;  %v887_v58 = vpack.c.bf16 %v876_v49, %v5683_v4  ;;  %v5024_v3 = vunpack.i.l.bf16 %v5728_v34  ;;  %v889_v10 = vpack.c.bf16 %v878_v59, %v5675_v0  ;;  %v4872_v59 = vld [vmem:[%s8512_s2 + $0xc] sm:$0xf] }
  0xbe   : > { %v5020_v55 = vunpack.i.h.bf16 %v5730_v35  ;;  %v5019_v60 = vunpack.i.l.bf16 %v5730_v35  ;;  %v885_v18 = vpack.c.bf16 %v874_v7, %v5685_v5  ;;  %v5025_v20 = vunpack.i.h.bf16 %v5728_v34 }
  0xbf   : > { %663 = vrot.lane.b32.xlu0 %v638_v36, %s5516_s23  ;;  %661 = vrot.lane.b32.xlu1 %v637_v37, %s5516_s23 }
  0xc0   : > { %v5033_v41 = vpop.permute.xlu1 %5032  ;;  %v1127_v19 = vsel %vm366_vm0, %v5019_v60, %v5020_v55  ;;  %v1128_v22 = vsel %vm366_vm0, %v5020_v55, %v5024_v3  ;;  %v1126_v27 = vsel %vm366_vm0, %v5025_v20, %v5019_v60 }
  0xc1   : > { %v5741_v45 = vpop.permute.xlu0 %5027  ;;  %v5035_v46 = vunpack.i.h.bf16 %v5033_v41  ;;  %v5034_v47 = vunpack.i.l.bf16 %v5033_v41  ;;  %v1138_v23 = vpack.c.bf16 %v1127_v19, %v5679_v2  ;;  %v1139_v25 = vpack.c.bf16 %v1128_v22, %v5683_v4 }
  0xc2   : > { %v5029_v24 = vunpack.i.l.bf16 %v5741_v45  ;;  %v5030_v26 = vunpack.i.h.bf16 %v5741_v45 }
  0xc3   : > { %659 = vrot.lane.b32.xlu0 %v636_v48, %s5516_s23  ;;  %907 = vrot.lane.b32.xlu1 %v886_v42, %s5514_s15  ;;  %v368_v52 = vsel %vm366_vm0, %v5034_v47, %v5035_v46 }
  0xc4   : > { %v355_v53 = vpop.permute.xlu1 %354  ;;  %v379_v54 = vpack.c.bf16 %v368_v52, %v5679_v2  ;;  %v890_v2 = vpack.c.bf16 %v5014_v44, %v5677_v1  ;;  %v1129_v28 = vsel %vm366_vm0, %v5024_v3, %v5029_v24  ;;  %v1130_v29 = vsel %vm366_vm0, %v5029_v24, %v5030_v26 }
  0xc5   : > { %v5038_v56 = vpop.permute.xlu0 %5037  ;;  %v367_v57 = vsel %vm366_vm0, %v355_v53, %v5034_v47  ;;  %v1140_v30 = vpack.c.bf16 %v1129_v28, %v5687_v6  ;;  %v1141_v31 = vpack.c.bf16 %v1130_v29, %v5675_v0 }
  0xc6   : > { %v5040_v61 = vunpack.i.h.bf16 %v5038_v56  ;;  %v5039_v62 = vunpack.i.l.bf16 %v5038_v56  ;;  %395 = vmatprep.subr.bf16.mxu0 %v379_v54  ;;  %v378_v63 = vpack.c.bf16 %v367_v57, %v5685_v5 }
  0xc7   : > { %909 = vrot.lane.b32.xlu0 %v887_v58, %s5514_s15  ;;  %911 = vrot.lane.b32.xlu1 %v888_v51, %s5514_s15  ;;  %v4868_v51 = vld [vmem:[%s8512_s2 + $0x8] sm:$0xf] }
  0xc8   : > { %396 = vmatpush1.bf16.msra.mxu0 %v378_v63  ;;  %v370_v8 = vsel %vm366_vm0, %v5039_v62, %v5040_v61  ;;  %v369_v9 = vsel %vm366_vm0, %v5035_v46, %v5039_v62 }
  0xc9   : > { %v365_v12 = vpop.permute.xlu0 %364  ;;  %v381_v13 = vpack.c.bf16 %v370_v8, %v5687_v6  ;;  %v380_v15 = vpack.c.bf16 %v369_v9, %v5683_v4  ;;  %v1137_v4 = vpack.c.bf16 %v1126_v27, %v5685_v5  ;;  %v1142_v5 = vpack.c.bf16 %v5030_v26, %v5677_v1 }
  0xca   : > { %v371_v16 = vsel %vm366_vm0, %v5040_v61, %v365_v12  ;;  %v383_v17 = vpack.c.bf16 %v365_v12, %v5677_v1  ;;  %v4864_v1 = vld [vmem:[%s8512_s2 + $0x4] sm:$0xf]  ;;  %v525_v8 = vlaneseq }
  0xcb   : > { %913 = vrot.lane.b32.xlu0 %v889_v10, %s5514_s15  ;;  %v382_v21 = vpack.c.bf16 %v371_v16, %v5675_v0  ;;  %436 = vmatprep.subr.bf16.mxu1 %v381_v13  ;;  %v5518_v10 = vmov 0.0   ;;  %v323_v13 = vld [vmem:[%s8511_s1] sm:$0x3f] }
  0xcc   : > { %905 = vrot.lane.b32.xlu1 %v885_v18, %s5514_s15  ;;  %4861 = vmatmul.mubr.msk.bf16.vlgmr.msra.gmra.mrb[0].mxu0 %vm391_vm1, %v384_v14  ;;  %v526_v9 = vshrl.u32 %v525_v8, 7  ;;  %325 = vst.msk [vmem:[#allocation2] sm:$0xff] %vm324_vm4, %v5518_v10  ;;  %326 = vst.msk [vmem:[#allocation2 + $0x30] sm:$0xff] %vm324_vm4, %v5518_v10 }
  0xcd   : > { %437 = vmatpush1.bf16.msra.mxu1 %v380_v15  ;;  %477 = vmatprep.subr.bf16.mxu0 %v383_v17  ;;  %327 = vst.msk [vmem:[#allocation2 + $0x60] sm:$0xff] %vm324_vm4, %v5518_v10  ;;  %328 = vst.msk [vmem:[#allocation2 + $0x90] sm:$0xff] %vm324_vm4, %v5518_v10 }
  0xce   : > { %478 = vmatpush1.bf16.msra.mxu0 %v382_v21  ;;  %509 = vmatprep.mubr.bf16.mxu0 %v8524_v11  ;;  %334 = vst.msk [vmem:[#allocation3] sm:$0xff] %vm324_vm4, %v5518_v10  ;;  %335 = vst.msk [vmem:[#allocation3 + $0x30] sm:$0xff] %vm324_vm4, %v5518_v10  ;;  %v527_v12 = vsub.s32 0, %v526_v9  ;;  %v535_v20 = vsub.s32 2, %v526_v9  ;;  %v539_v24 = vsub.s32 3, %v526_v9 }
  0xcf   : > { %1159 = vrot.lane.b32.xlu0 %v1138_v23, %s5517_s10  ;;  %336 = vst.msk [vmem:[#allocation3 + $0x60] sm:$0xff] %vm324_vm4, %v5518_v10  ;;  %337 = vst.msk [vmem:[#allocation3 + $0x90] sm:$0xff] %vm324_vm4, %v5518_v10 }
  0xd0   : > { %4862 = vmatmul.mubr.msk.bf16.vlgmr.msra.gmra.mrb[0].mxu1 %vm391_vm1, %v384_v14  ;;  %1161 = vrot.lane.b32.xlu1 %v1139_v25, %s5517_s10  ;;  %v5859_v18 = vrot.slane %v323_v13, %v527_v12  ;;  %330 = vst.msk [vmem:[#allocation2 + $0x28] sm:$0xff] %vm329_vm5, %v5518_v10  ;;  %331 = vst.msk [vmem:[#allocation2 + $0x58] sm:$0xff] %vm329_vm5, %v5518_v10  ;;  %v5864_v29 = vrot.slane %v323_v13, %v535_v20 }
  0xd1   : > { %712 = vmatprep.mubr.bf16.mxu1 %v8524_v11  ;;  %332 = vst.msk [vmem:[#allocation2 + $0x88] sm:$0xff] %vm329_vm5, %v5518_v10  ;;  %333 = vst.msk [vmem:[#allocation2 + $0xb8] sm:$0xff] %vm329_vm5, %v5518_v10 }
  0xd2   : > { %8643 = vst [vmem:[#allocation11_spill] sm:$0xff] %v5859_v18  ;;  %338 = vst.msk [vmem:[#allocation3 + $0x28] sm:$0xff] %vm329_vm5, %v5518_v10 }
  0xd3   : > { %915 = vrot.lane.b32.xlu0 %v890_v2, %s5514_s15  ;;  %339 = vst.msk [vmem:[#allocation3 + $0x58] sm:$0xff] %vm329_vm5, %v5518_v10  ;;  %340 = vst.msk [vmem:[#allocation3 + $0x88] sm:$0xff] %vm329_vm5, %v5518_v10 }
  0xd4   : > { %1157 = vrot.lane.b32.xlu1 %v1137_v4, %s5517_s10  ;;  %4863 = vmatmul.mubr.msk.bf16.vlgmr.msra.gmra.mrb[4].mxu0 %vm391_vm1, %v384_v14  ;;  %v531_v14 = vsub.s32 1, %v526_v9  ;;  %341 = vst.msk [vmem:[#allocation3 + $0xb8] sm:$0xff] %vm329_vm5, %v5518_v10  ;;  %8645 = vst [vmem:[#allocation13_spill] sm:$0xff] %v5864_v29 }
  0xd5   : > { %753 = vmatprep.mubr.bf16.mxu0 %v8524_v11 }
  0xd6   : > { %v5861_v22 = vrot.slane %v323_v13, %v531_v14 }
  0xd7   : > { %1163 = vrot.lane.b32.xlu0 %v1140_v30, %s5517_s10 }
  0xd8   : > { %1165 = vrot.lane.b32.xlu1 %v1141_v31, %s5517_s10  ;;  %8644 = vst [vmem:[#allocation12_spill] sm:$0xff] %v5861_v22  ;;  %v543_v31 = vsub.s32 4, %v526_v9 }
  0xdb   : > { %1167 = vrot.lane.b32.xlu0 %v1142_v5, %s5517_s10 }
  0xdc   : > { %388 = vperm.xlu1 %5041, %v385_v32  }
  0xdf   : > { %896 = vperm.xlu0 %5042, %v385_v32  }
  0xe0   : > { %644 = vperm.xlu1 %5041, %v385_v32  }
  0xe4   : > { %1148 = vperm.xlu1 %5041, %v385_v32  }
 0x129   : > { %v656_v6 = vpop.permute.xlu1 %655 }
 0x12d   : > { %v658_v33 = vpop.permute.xlu0 %657  ;;  %v654_v0 = vpop.permute.xlu1 %653 }
 0x12e   : > { %v666_v34 = vsel %vm665_vm2, %v654_v0, %v656_v6  ;;  %v667_v35 = vsel %vm665_vm2, %v656_v6, %v658_v33  ;;  %v5867_v6 = vrot.slane %v323_v13, %v539_v24  ;;  %v547_v0 = vsub.s32 5, %v526_v9 }
 0x12f   : > { %680 = vmatprep.subr.bf16.mxu1 %v667_v35 }
 0x130   : > { %681 = vmatpush1.bf16.msra.mxu1 %v666_v34  ;;  %8646 = vst [vmem:[#allocation14_spill] sm:$0xff] %v5867_v6 }
 0x131   : > { %v664_v36 = vpop.permute.xlu0 %663  ;;  %v662_v37 = vpop.permute.xlu1 %661 }
 0x132   : > { %762 = vmatprep.subr.bf16.mxu1 %v664_v36  ;;  %v670_v38 = vsel %vm665_vm2, %v662_v37, %v664_v36 }
 0x133   : > { %4865 = vmatmul.mubr.msk.bf16.vlgmr.msra.gmra.mrb[4].mxu1 %vm391_vm1, %v4864_v1 }
 0x134   : > { %763 = vmatpush1.bf16.msra.mxu1 %v670_v38  ;;  %794 = vmatprep.mubr.bf16.mxu1 %v8524_v11 }
 0x135   : > { %v660_v39 = vpop.permute.xlu0 %659  ;;  %v908_v40 = vpop.permute.xlu1 %907 }
 0x136   : > { %v669_v41 = vsel %vm665_vm2, %v660_v39, %v662_v37  ;;  %v668_v42 = vsel %vm665_vm2, %v658_v33, %v660_v39  ;;  %v5872_v39 = vrot.slane %v323_v13, %v543_v31 }
 0x137   : > { %721 = vmatprep.subr.bf16.mxu0 %v669_v41 }
 0x138   : > { %722 = vmatpush1.bf16.msra.mxu0 %v668_v42  ;;  %8647 = vst [vmem:[#allocation15_spill] sm:$0xff] %v5872_v39 }
 0x139   : > { %v910_v43 = vpop.permute.xlu0 %909  ;;  %v912_v44 = vpop.permute.xlu1 %911 }
 0x13a   : > { %v919_v45 = vsel %vm366_vm0, %v908_v40, %v910_v43  ;;  %v920_v50 = vsel %vm366_vm0, %v910_v43, %v912_v44  ;;  %v5875_v43 = vrot.slane %v323_v13, %v547_v0 }
 0x13b   : > { %4866 = vmatmul.mubr.msk.bf16.vlgmr.msra.gmra.mrb[8].mxu0 %vm391_vm1, %v4864_v1  ;;  %4867 = vmatmul.mubr.msk.bf16.vlgmr.msra.gmra.mrb[8].mxu1 %vm391_vm1, %v4864_v1 }
 0x13c   : > { %932 = vmatprep.subr.bf16.mxu0 %v919_v45  ;;  %964 = vmatprep.mubr.bf16.mxu0 %v8524_v11  ;;  %8648 = vst [vmem:[#allocation16_spill] sm:$0xff] %v5875_v43 }
 0x13d   : > { %v914_v46 = vpop.permute.xlu0 %913  ;;  %1005 = vmatprep.mubr.bf16.mxu1 %v8524_v11 }
 0x13e   : > { %v906_v47 = vpop.permute.xlu1 %905  ;;  %v921_v48 = vsel %vm366_vm0, %v912_v44, %v914_v46 }
 0x13f   : > { %v918_v49 = vsel %vm366_vm0, %v906_v47, %v908_v40  ;;  %973 = vmatprep.subr.bf16.mxu1 %v921_v48 }
 0x140   : > { %933 = vmatpush1.bf16.msra.mxu0 %v918_v49  ;;  %974 = vmatpush1.bf16.msra.mxu1 %v920_v50 }
 0x141   : > { %v1160_v52 = vpop.permute.xlu0 %1159 }
 0x142   : > { %v1162_v53 = vpop.permute.xlu1 %1161 }
 0x143   : > { %4869 = vmatmul.mubr.msk.bf16.vlgmr.msra.gmra.mrb[12].mxu0 %vm391_vm1, %v4868_v51  ;;  %4870 = vmatmul.mubr.msk.bf16.vlgmr.msra.gmra.mrb[12].mxu1 %vm391_vm1, %v4868_v51  ;;  %v1171_v54 = vsel %vm1169_vm3, %v1160_v52, %v1162_v53 }
 0x144   : > { %1184 = vmatprep.subr.bf16.mxu1 %v1171_v54  ;;  %1046 = vmatprep.mubr.bf16.mxu0 %v8524_v11 }
 0x145   : > { %v916_v55 = vpop.permute.xlu0 %915  ;;  %1216 = vmatprep.mubr.bf16.mxu1 %v8524_v11 }
 0x146   : > { %v1158_v56 = vpop.permute.xlu1 %1157  ;;  %1014 = vmatprep.subr.bf16.mxu0 %v916_v55  ;;  %v922_v57 = vsel %vm366_vm0, %v914_v46, %v916_v55 }
 0x147   : > { %v1170_v58 = vsel %vm1169_vm3, %v1158_v56, %v1160_v52  ;;  %1015 = vmatpush1.bf16.msra.mxu0 %v922_v57 }
 0x148   : > { %1185 = vmatpush1.bf16.msra.mxu1 %v1170_v58 }
 0x149   : > { %v1164_v60 = vpop.permute.xlu0 %1163 }
 0x14a   : > { %v1166_v61 = vpop.permute.xlu1 %1165  ;;  %v1172_v62 = vsel %vm1169_vm3, %v1162_v53, %v1164_v60 }
 0x14b   : > { %4871 = vmatmul.mubr.msk.bf16.vlgmr.msra.gmra.mrb[16].mxu0 %vm391_vm1, %v4868_v51  ;;  %4873 = vmatmul.mubr.msk.bf16.vlgmr.msra.gmra.mrb[16].mxu1 %vm391_vm1, %v4872_v59  ;;  %v1173_v63 = vsel %vm1169_vm3, %v1164_v60, %v1166_v61 }
 0x14c   : > { %1225 = vmatprep.subr.bf16.mxu0 %v1173_v63  ;;  %1257 = vmatprep.mubr.bf16.mxu0 %v8524_v11 }
 0x14d   : > { %1226 = vmatpush1.bf16.msra.mxu0 %v1172_v62  ;;  %v1168_v3 = vpop.permute.xlu0 %1167  ;;  %1298 = vmatprep.mubr.bf16.mxu1 %v8524_v11 }
 0x14e   : > { %1266 = vmatprep.subr.bf16.mxu1 %v1168_v3  ;;  %v1174_v7 = vsel %vm1169_vm3, %v1166_v61, %v1168_v3 }
 0x14f   : > { %1267 = vmatpush1.bf16.msra.mxu1 %v1174_v7 }
 0x153   : > { %4874 = vmatmul.mubr.msk.bf16.vlgmr.msra.gmra.mrb[20].mxu0 %vm391_vm1, %v4872_v59  ;;  %4875 = vmatmul.mubr.msk.bf16.vlgmr.msra.gmra.mrb[20].mxu1 %vm391_vm1, %v4872_v59 }
 0x154   : > { %1850 = vmatprep.mubr.bf16.mxu0 %v8524_v11  ;;  %1891 = vmatprep.mubr.bf16.mxu1 %v8524_v11 }
 0x15b   : > { %v389_v15 = vpop.permute.xlu1 %388 }
 0x15f   : > { %v645_v50 = vpop.permute.xlu1 %644 }
 0x163   : > { %v5891_v20 = vpop.permute.xlu1 %1148 }
 0x19f   : > { %v429_v16 = vpop.f32.mrb[0].mxu0 }
 0x1a0   : > { %v430_v17 = vadd.f32 %v429_v16, %v389_v15  ;;  %v431_v19 = vpop.f32.mrb[1].mxu0  ;;  %v5887_v16 = vpop.permute.xlu0 %896 }
 0x1a1   : > { %v432_v21 = vadd.f32 %v431_v19, %v389_v15  ;;  %v433_v23 = vpop.f32.mrb[2].mxu0 }
 0x1a2   : > { %v518_v25 = vmax.f32 %v430_v17, 0.0  ;;  %v434_v26 = vpop.f32.mrb[3].mxu0 }
 0x1a3   : > { %v519_v27 = vmax.f32 %v432_v21, 0.0  ;;  %v470_v2 = vpop.f32.mrb[0].mxu1 }
 0x1a4   : > { %v555_v4 = vmul.f32 %v5859_v18, %v518_v25  ;;  %v471_v28 = vadd.f32 %v470_v2, %v389_v15  ;;  %v472_v30 = vpop.f32.mrb[1].mxu1 }
 0x1a5   : > { %v556_v5 = vmul.f32 %v5861_v22, %v519_v27  ;;  %v473_v32 = vadd.f32 %v472_v30, %v389_v15  ;;  %v474_v33 = vpop.f32.mrb[2].mxu1 }
 0x1a6   : > { %v520_v34 = vmax.f32 %v471_v28, 0.0  ;;  %v475_v35 = vpop.f32.mrb[3].mxu1  ;;  %567 = vrot.lane.b32.xlu0 %v555_v4, %s5519_s22 }
 0x1a7   : > { %v521_v1 = vmax.f32 %v473_v32, 0.0  ;;  %v511_v36 = vpop.f32.mrb[4].mxu0  ;;  %569 = vrot.lane.b32.xlu1 %v556_v5, %s5519_s22 }
 0x1a8   : > { %v557_v37 = vmul.f32 %v5864_v29, %v520_v34  ;;  %v512_v38 = vadd.f32 %v511_v36, %v389_v15  ;;  %v513_v40 = vpop.f32.mrb[5].mxu0 }
 0x1a9   : > { %v558_v41 = vmul.f32 %v5867_v6, %v521_v1  ;;  %v514_v42 = vadd.f32 %v513_v40, %v389_v15  ;;  %v515_v44 = vpop.f32.mrb[6].mxu0 }
 0x1aa   : > { %v522_v45 = vmax.f32 %v512_v38, 0.0  ;;  %571 = vrot.lane.b32.xlu0 %v557_v37, %s5519_s22  ;;  %v516_v46 = vpop.f32.mrb[7].mxu0 }
 0x1ab   : > { %v523_v47 = vmax.f32 %v514_v42, 0.0  ;;  %573 = vrot.lane.b32.xlu1 %v558_v41, %s5519_s22 }
 0x1ac   : > { %v559_v48 = vmul.f32 %v5872_v39, %v522_v45 }
 0x1ad   : > { %v560_v49 = vmul.f32 %v5875_v43, %v523_v47 }
 0x1ae   : > { %575 = vrot.lane.b32.xlu0 %v559_v48, %s5519_s22 }
 0x1af   : > { %577 = vrot.lane.b32.xlu1 %v560_v49, %s5519_s22 }
 0x206   : > { %v714_v51 = vpop.f32.mrb[4].mxu1 }
 0x207   : > { %v715_v52 = vadd.f32 %v714_v51, %v645_v50  ;;  %v716_v53 = vpop.f32.mrb[5].mxu1 }
 0x208   : > { %v717_v54 = vadd.f32 %v716_v53, %v645_v50  ;;  %v718_v55 = vpop.f32.mrb[6].mxu1 }
 0x209   : > { %v803_v56 = vmax.f32 %v715_v52, 0.0  ;;  %v719_v57 = vpop.f32.mrb[7].mxu1 }
 0x20a   : > { %v804_v58 = vmax.f32 %v717_v54, 0.0 }
 0x20b   : > { %v809_v59 = vmul.f32 %v803_v56, %v5859_v18 }
 0x20c   : > { %v810_v60 = vmul.f32 %v804_v58, %v5861_v22 }
 0x20d   : > { %821 = vrot.lane.b32.xlu0 %v809_v59, %s5519_s22 }
 0x20e   : > { %v755_v61 = vpop.f32.mrb[8].mxu0  ;;  %v796_v62 = vpop.f32.mrb[8].mxu1  ;;  %823 = vrot.lane.b32.xlu1 %v810_v60, %s5519_s22 }
 0x20f   : > { %v756_v63 = vadd.f32 %v755_v61, %v645_v50  ;;  %v757_v3 = vpop.f32.mrb[9].mxu0  ;;  %v798_v7 = vpop.f32.mrb[9].mxu1  ;;  %v797_v24 = vadd.f32 %v796_v62, %v645_v50 }
 0x210   : > { %v758_v8 = vadd.f32 %v757_v3, %v645_v50  ;;  %v759_v9 = vpop.f32.mrb[10].mxu0  ;;  %v800_v10 = vpop.f32.mrb[10].mxu1  ;;  %v799_v2 = vadd.f32 %v798_v7, %v645_v50 }
 0x211   : > { %v805_v12 = vmax.f32 %v756_v63, 0.0  ;;  %v760_v13 = vpop.f32.mrb[11].mxu0  ;;  %v801_v14 = vpop.f32.mrb[11].mxu1  ;;  %v807_v35 = vmax.f32 %v797_v24, 0.0 }
 0x212   : > { %v806_v15 = vmax.f32 %v758_v8, 0.0  ;;  %v808_v37 = vmax.f32 %v799_v2, 0.0 }
 0x213   : > { %v811_v17 = vmul.f32 %v805_v12, %v5864_v29  ;;  %v813_v47 = vmul.f32 %v807_v35, %v5872_v39 }
 0x214   : > { %v812_v19 = vmul.f32 %v806_v15, %v5867_v6  ;;  %v814_v51 = vmul.f32 %v808_v37, %v5875_v43 }
 0x215   : > { %825 = vrot.lane.b32.xlu0 %v811_v17, %s5519_s22 }
 0x216   : > { %v966_v21 = vpop.f32.mrb[12].mxu0  ;;  %v1007_v23 = vpop.f32.mrb[12].mxu1  ;;  %827 = vrot.lane.b32.xlu1 %v812_v19, %s5519_s22 }
 0x217   : > { %v967_v25 = vadd.f32 %v966_v21, %v5887_v16  ;;  %v968_v26 = vpop.f32.mrb[13].mxu0  ;;  %v1009_v27 = vpop.f32.mrb[13].mxu1  ;;  %v1008_v48 = vadd.f32 %v1007_v23, %v5887_v16 }
 0x218   : > { %v969_v4 = vadd.f32 %v968_v26, %v5887_v16  ;;  %v568_v28 = vpop.permute.xlu0 %567  ;;  %v970_v30 = vpop.f32.mrb[14].mxu0  ;;  %v1010_v14 = vadd.f32 %v1009_v27, %v5887_v16 }
 0x219   : > { %v1055_v31 = vmax.f32 %v967_v25, 0.0  ;;  %591 = vst.msk [vmem:[#allocation2] sm:$0xff] %vm590_vm6, %v568_v28  ;;  %v570_v5 = vpop.permute.xlu1 %569  ;;  %v971_v32 = vpop.f32.mrb[15].mxu0  ;;  %v1057_v61 = vmax.f32 %v1008_v48, 0.0 }
 0x21a   : > { %v1056_v33 = vmax.f32 %v969_v4, 0.0  ;;  %v579_v0 = vsel %vm324_vm4, %v568_v28, %v570_v5  ;;  %v1011_v34 = vpop.f32.mrb[14].mxu1  ;;  %v1058_v24 = vmax.f32 %v1010_v14, 0.0 }
 0x21b   : > { %v1061_v1 = vmul.f32 %v1055_v31, %v5859_v18  ;;  %592 = vst [vmem:[#allocation2 + $0x8] sm:$0xff] %v579_v0  ;;  %v1012_v36 = vpop.f32.mrb[15].mxu1  ;;  %v1063_v9 = vmul.f32 %v1057_v61, %v5864_v29 }
 0x21c   : > { %v1062_v38 = vmul.f32 %v1056_v33, %v5861_v22  ;;  %v572_v40 = vpop.permute.xlu0 %571  ;;  %v1064_v2 = vmul.f32 %v1058_v24, %v5867_v6 }
 0x21d   : > { %v580_v41 = vsel %vm324_vm4, %v570_v5, %v572_v40  ;;  %v574_v42 = vpop.permute.xlu1 %573  ;;  %1073 = vrot.lane.b32.xlu0 %v1061_v1, %s5519_s22 }
 0x21e   : > { %593 = vst [vmem:[#allocation2 + $0x10] sm:$0xff] %v580_v41  ;;  %v581_v44 = vsel %vm324_vm4, %v572_v40, %v574_v42  ;;  %v1048_v45 = vpop.f32.mrb[16].mxu0  ;;  %v1218_v46 = vpop.f32.mrb[16].mxu1  ;;  %1075 = vrot.lane.b32.xlu1 %v1062_v38, %s5519_s22  ;;  %v5043_v3 = vpack.i.bf16 %v580_v41, %v579_v0 }
 0x21f   : > { %594 = vst [vmem:[#allocation2 + $0x18] sm:$0xff] %v581_v44  ;;  %v1050_v49 = vpop.f32.mrb[17].mxu0  ;;  %v1220_v50 = vpop.f32.mrb[17].mxu1  ;;  %v1049_v62 = vadd.f32 %v1048_v45, %v5887_v16  ;;  %v1219_v26 = vadd.f32 %v1218_v46, %v5891_v20 }
 0x220   : > { %v576_v52 = vpop.permute.xlu0 %575  ;;  %v1052_v53 = vpop.f32.mrb[18].mxu0  ;;  %v1373_v54 = vld [vmem:[#allocation2] sm:$0xff]  ;;  %v1051_v25 = vadd.f32 %v1050_v49, %v5887_v16  ;;  %v1221_v1 = vadd.f32 %v1220_v50, %v5891_v20 }
 0x221   : > { %v582_v55 = vsel %vm324_vm4, %v574_v42, %v576_v52  ;;  %v578_v56 = vpop.permute.xlu1 %577  ;;  %829 = vrot.lane.b32.xlu0 %v813_v47, %s5519_s22  ;;  %v1222_v57 = vpop.f32.mrb[18].mxu1  ;;  %v5058_v63 = vpack.i.bf16 %v1373_v54, %v581_v44  ;;  %v1059_v10 = vmax.f32 %v1049_v62, 0.0  ;;  %v1307_v28 = vmax.f32 %v1219_v26, 0.0 }
 0x222   : > { %595 = vst [vmem:[#allocation2 + $0x20] sm:$0xff] %v582_v55  ;;  %v583_v58 = vsel %vm324_vm4, %v576_v52, %v578_v56  ;;  %831 = vrot.lane.b32.xlu1 %v814_v51, %s5519_s22  ;;  %v1053_v59 = vpop.f32.mrb[19].mxu0  ;;  %v1223_v60 = vpop.f32.mrb[19].mxu1  ;;  %v5063_v27 = vpack.i.bf16 %v582_v55, %v581_v44  ;;  %v1060_v4 = vmax.f32 %v1051_v25, 0.0  ;;  %v1308_v37 = vmax.f32 %v1221_v1, 0.0 }
 0x223   : > { %597 = vst.msk [vmem:[#allocation2 + $0x28] sm:$0xff] %vm596_vm7, %v583_v58  ;;  %v1065_v23 = vmul.f32 %v1059_v10, %v5872_v39  ;;  %v1313_v5 = vmul.f32 %v1307_v28, %v5859_v18 }
 0x224   : > { %v1066_v31 = vmul.f32 %v1060_v4, %v5875_v43  ;;  %v1314_v41 = vmul.f32 %v1308_v37, %v5861_v22 }
 0x225   : > { %5059 = vrot.lane.b32.xlu0 %v5058_v63, %s5516_s23 }
 0x226   : > { %v1259_v7 = vpop.f32.mrb[20].mxu0  ;;  %v1300_v8 = vpop.f32.mrb[20].mxu1  ;;  %5044 = vrot.lane.b32.xlu1 %v5043_v3, %s5514_s15 }
 0x227   : > { %v1261_v12 = vpop.f32.mrb[21].mxu0  ;;  %v1302_v13 = vpop.f32.mrb[21].mxu1  ;;  %v1260_v30 = vadd.f32 %v1259_v7, %v5891_v20  ;;  %v1301_v33 = vadd.f32 %v1300_v8, %v5891_v20 }
 0x228   : > { %v1263_v15 = vpop.f32.mrb[22].mxu0  ;;  %v1304_v17 = vpop.f32.mrb[22].mxu1  ;;  %v1262_v38 = vadd.f32 %v1261_v12, %v5891_v20  ;;  %v1303_v44 = vadd.f32 %v1302_v13, %v5891_v20 }
 0x229   : > { %1077 = vrot.lane.b32.xlu0 %v1063_v9, %s5519_s22  ;;  %v1264_v19 = vpop.f32.mrb[23].mxu0  ;;  %v1305_v21 = vpop.f32.mrb[23].mxu1  ;;  %v1309_v32 = vmax.f32 %v1260_v30, 0.0  ;;  %v1311_v35 = vmax.f32 %v1301_v33, 0.0 }
 0x22a   : > { %5049 = vrot.lane.b32.xlu1 %v5043_v3, %s5517_s10  ;;  %v1378_v16 = vld [vmem:[#allocation2 + $0x28] sm:$0xff]  ;;  %v1310_v42 = vmax.f32 %v1262_v38, 0.0  ;;  %v1312_v46 = vmax.f32 %v1303_v44, 0.0 }
 0x22b   : > { %v5073_v0 = vpack.i.bf16 %v1373_v54, %v1378_v16  ;;  %v1315_v34 = vmul.f32 %v1309_v32, %v5864_v29  ;;  %v1317_v36 = vmul.f32 %v1311_v35, %v5872_v39  ;;  %v5083_v40 = vpack.i.bf16 %v1378_v16, %v582_v55 }
 0x22c   : > { %v1316_v45 = vmul.f32 %v1310_v42, %v5867_v6  ;;  %v1318_v47 = vmul.f32 %v1312_v46, %v5875_v43 }
 0x22d   : > { %1081 = vrot.lane.b32.xlu0 %v1065_v23, %s5519_s22 }
 0x22e   : > { %5054 = vrot.lane.b32.xlu1 %v5043_v3, %s5516_s23 }
 0x231   : > { %5064 = vrot.lane.b32.xlu0 %v5063_v27, %s5514_s15 }
 0x232   : > { %1079 = vrot.lane.b32.xlu1 %v1064_v2, %s5519_s22 }
 0x235   : > { %5069 = vrot.lane.b32.xlu0 %v5063_v27, %s5517_s10 }
 0x236   : > { %1083 = vrot.lane.b32.xlu1 %v1066_v31, %s5519_s22 }
 0x239   : > { %1325 = vrot.lane.b32.xlu0 %v1313_v5, %s5519_s22 }
 0x23a   : > { %5074 = vrot.lane.b32.xlu1 %v5073_v0, %s5514_s15 }
 0x23d   : > { %1329 = vrot.lane.b32.xlu0 %v1315_v34, %s5519_s22 }
 0x23e   : > { %5079 = vrot.lane.b32.xlu1 %v5073_v0, %s5517_s10 }
 0x241   : > { %1333 = vrot.lane.b32.xlu0 %v1317_v36, %s5519_s22 }
 0x242   : > { %5084 = vrot.lane.b32.xlu1 %v5083_v40, %s5516_s23 }
 0x246   : > { %1327 = vrot.lane.b32.xlu1 %v1314_v41, %s5519_s22 }
 0x24a   : > { %1331 = vrot.lane.b32.xlu1 %v1316_v45, %s5519_s22 }
 0x24e   : > { %1335 = vrot.lane.b32.xlu1 %v1318_v47, %s5519_s22 }
 0x27f   : > { %v822_v48 = vpop.permute.xlu0 %821 }
 0x280   : > { %844 = vst.msk [vmem:[#allocation2 + $0x30] sm:$0xff] %vm590_vm6, %v822_v48  ;;  %v824_v49 = vpop.permute.xlu1 %823 }
 0x281   : > { %v5953_v50 = vsel %vm324_vm4, %v822_v48, %v824_v49 }
 0x282   : > { %8649 = vst [vmem:[#allocation17_spill] sm:$0xff] %v5953_v50  ;;  %845 = vst [vmem:[#allocation2 + $0x38] sm:$0xff] %v5953_v50 }
 0x287   : > { %v826_v20 = vpop.permute.xlu0 %825  ;;  %v6027_v0 = vld [vmem:[#allocation2 + $0x30] sm:$0xff] }
 0x288   : > { %v5957_v51 = vsel %vm324_vm4, %v824_v49, %v826_v20  ;;  %v828_v52 = vpop.permute.xlu1 %827  ;;  %8661 = vst [vmem:[#allocation29_spill] sm:$0xff] %v6027_v0 }
 0x289   : > { %8650 = vst [vmem:[#allocation18_spill] sm:$0xff] %v5957_v51  ;;  %846 = vst [vmem:[#allocation2 + $0x40] sm:$0xff] %v5957_v51  ;;  %v5961_v53 = vsel %vm324_vm4, %v826_v20, %v828_v52  ;;  %v5088_v54 = vpack.i.bf16 %v5957_v51, %v5953_v50 }
 0x28a   : > { %8651 = vst [vmem:[#allocation19_spill] sm:$0xff] %v5961_v53  ;;  %847 = vst [vmem:[#allocation2 + $0x48] sm:$0xff] %v5961_v53  ;;  %v5093_v55 = vpack.i.bf16 %v5961_v53, %v5957_v51 }
 0x28b   : > { %5089 = vrot.lane.b32.xlu0 %v5088_v54, %s5514_s15 }
 0x28c   : > { %5094 = vrot.lane.b32.xlu1 %v5093_v55, %s5516_s23 }
 0x28f   : > { %v1074_v56 = vpop.permute.xlu0 %1073 }
 0x290   : > { %1096 = vst.msk [vmem:[#allocation2 + $0x60] sm:$0xff] %vm590_vm6, %v1074_v56  ;;  %v1076_v57 = vpop.permute.xlu1 %1075  ;;  %5099 = vrot.lane.b32.xlu1 %v5088_v54, %s5517_s10 }
 0x291   : > { %v5973_v58 = vsel %vm324_vm4, %v1074_v56, %v1076_v57 }
 0x292   : > { %8652 = vst [vmem:[#allocation20_spill] sm:$0xff] %v5973_v58  ;;  %1097 = vst [vmem:[#allocation2 + $0x68] sm:$0xff] %v5973_v58 }
 0x293   : > { %v830_v59 = vpop.permute.xlu0 %829 }
 0x294   : > { %v5977_v60 = vsel %vm324_vm4, %v828_v52, %v830_v59  ;;  %v832_v61 = vpop.permute.xlu1 %831 }
 0x295   : > { %8653 = vst [vmem:[#allocation21_spill] sm:$0xff] %v5977_v60  ;;  %848 = vst [vmem:[#allocation2 + $0x50] sm:$0xff] %v5977_v60  ;;  %v837_v62 = vsel %vm324_vm4, %v830_v59, %v832_v61  ;;  %v5103_v33 = vpack.i.bf16 %v5977_v60, %v5961_v53 }
 0x296   : > { %849 = vst.msk [vmem:[#allocation2 + $0x58] sm:$0xff] %vm596_vm7, %v837_v62 }
 0x297   : > { %v5060_v63 = vpop.permute.xlu0 %5059  ;;  %v6015_v31 = vld [vmem:[#allocation2 + $0x60] sm:$0xff] }
 0x298   : > { %v5982_v3 = vpop.permute.xlu1 %5044  ;;  %v5062_v13 = vunpack.i.h.bf16 %v5060_v63  ;;  %v5061_v14 = vunpack.i.l.bf16 %v5060_v63  ;;  %8660 = vst [vmem:[#allocation28_spill] sm:$0xff] %v6015_v31  ;;  %v5118_v46 = vpack.i.bf16 %v5973_v58, %v6015_v31 }
 0x299   : > { %v8526_v16 = vunpack.i.l.bf16 %v5982_v3 }
 0x29b   : > { %v1078_v7 = vpop.permute.xlu0 %1077 }
 0x29c   : > { %v5984_v8 = vpop.permute.xlu1 %5049  ;;  %v5987_v9 = vsel %vm324_vm4, %v1076_v57, %v1078_v7 }
 0x29d   : > { %8654 = vst [vmem:[#allocation22_spill] sm:$0xff] %v5987_v9  ;;  %1098 = vst [vmem:[#allocation2 + $0x70] sm:$0xff] %v5987_v9  ;;  %v6032_v1 = vld [vmem:[#allocation2 + $0x58] sm:$0xff] }
 0x29e   : > { %8662 = vst [vmem:[#allocation30_spill] sm:$0xff] %v6032_v1  ;;  %v5123_v38 = vpack.i.bf16 %v6032_v1, %v5977_v60  ;;  %v5113_v41 = vpack.i.bf16 %v6027_v0, %v6032_v1 }
 0x29f   : > { %v1082_v10 = vpop.permute.xlu0 %1081 }
 0x2a0   : > { %v5055_v12 = vpop.permute.xlu1 %5054 }
 0x2a1   : > { %v5057_v15 = vunpack.i.h.bf16 %v5055_v12  ;;  %v5056_v17 = vunpack.i.l.bf16 %v5055_v12 }
 0x2a3   : > { %v5990_v19 = vpop.permute.xlu0 %5064  ;;  %v5993_v21 = vsel %vm665_vm2, %v5056_v17, %v5057_v15  ;;  %v5996_v23 = vsel %vm665_vm2, %v5057_v15, %v5061_v14  ;;  %v5999_v24 = vsel %vm665_vm2, %v5062_v13, %v5056_v17 }
 0x2a4   : > { %8655 = vst [vmem:[#allocation23_spill] sm:$0xff] %v5993_v21  ;;  %8656 = vst [vmem:[#allocation24_spill] sm:$0xff] %v5996_v23  ;;  %v1080_v25 = vpop.permute.xlu1 %1079  ;;  %v1742_v26 = vpack.c.bf16 %v5993_v21, %v5953_v50  ;;  %v1743_v28 = vpack.c.bf16 %v5996_v23, %v5957_v51  ;;  %v1741_v35 = vpack.c.bf16 %v5999_v24, %v6027_v0  ;;  %v8527_v30 = vunpack.i.h.bf16 %v5990_v19 }
 0x2a5   : > { %8657 = vst [vmem:[#allocation25_spill] sm:$0xff] %v5999_v24  ;;  %v6006_v2 = vsel %vm324_vm4, %v1078_v7, %v1080_v25  ;;  %v6009_v4 = vsel %vm324_vm4, %v1080_v25, %v1082_v10 }
 0x2a6   : > { %8658 = vst [vmem:[#allocation26_spill] sm:$0xff] %v6006_v2  ;;  %8659 = vst [vmem:[#allocation27_spill] sm:$0xff] %v6009_v4  ;;  %2353 = vrot.lane.b32.xlu1 %v1742_v26, %s5514_s15  ;;  %2355 = vrot.lane.b32.xlu0 %v1743_v28, %s5514_s15  ;;  %v5133_v17 = vpack.i.bf16 %v6009_v4, %v6006_v2  ;;  %v5143_v28 = vpack.i.bf16 %v6006_v2, %v5987_v9 }
 0x2a7   : > { %1099 = vst [vmem:[#allocation2 + $0x78] sm:$0xff] %v6006_v2  ;;  %1100 = vst [vmem:[#allocation2 + $0x80] sm:$0xff] %v6009_v4  ;;  %v6023_v5 = vpop.permute.xlu0 %5069 }
 0x2a8   : > { %v1084_v32 = vpop.permute.xlu1 %1083 }
 0x2a9   : > { %v1089_v34 = vsel %vm324_vm4, %v1082_v10, %v1084_v32 }
 0x2aa   : > { %1101 = vst.msk [vmem:[#allocation2 + $0x88] sm:$0xff] %vm596_vm7, %v1089_v34  ;;  %5104 = vrot.lane.b32.xlu1 %v5103_v33, %s5514_s15  ;;  %2351 = vrot.lane.b32.xlu0 %v1741_v35, %s5514_s15 }
 0x2ab   : > { %v1326_v36 = vpop.permute.xlu0 %1325 }
 0x2ac   : > { %v6037_v37 = vpop.permute.xlu1 %5074  ;;  %1348 = vst.msk [vmem:[#allocation2 + $0x90] sm:$0xff] %vm590_vm6, %v1326_v36 }
 0x2ad   : > { %v6224_v59 = vunpack.i.l.bf16 %v6037_v37 }
 0x2ae   : > { %5124 = vrot.lane.b32.xlu1 %v5123_v38, %s5516_s23  ;;  %5109 = vrot.lane.b32.xlu0 %v5103_v33, %s5517_s10 }
 0x2af   : > { %v1330_v47 = vpop.permute.xlu0 %1329  ;;  %8672 = vst [vmem:[#allocation40_spill] sm:$0xff] %v6224_v59 }
 0x2b0   : > { %v6044_v40 = vpop.permute.xlu1 %5079 }
 0x2b1   : > { %v6053_v48 = vld [vmem:[#allocation2 + $0x88] sm:$0xff] }
 0x2b2   : > { %5114 = vrot.lane.b32.xlu0 %v5113_v41, %s5514_s15  ;;  %8664 = vst [vmem:[#allocation32_spill] sm:$0xff] %v6053_v48  ;;  %v5138_v26 = vpack.i.bf16 %v6015_v31, %v6053_v48  ;;  %v5148_v32 = vpack.i.bf16 %v6053_v48, %v6009_v4 }
 0x2b3   : > { %v1334_v63 = vpop.permute.xlu0 %1333  ;;  %v6111_v33 = vld [vmem:[#allocation2 + $0x90] sm:$0xff] }
 0x2b4   : > { %v5085_v42 = vpop.permute.xlu1 %5084  ;;  %v5163_v34 = vpack.i.bf16 %v6015_v31, %v6111_v33  ;;  %v5168_v35 = vpack.i.bf16 %v5953_v50, %v6111_v33  ;;  %v5173_v38 = vpack.i.bf16 %v6111_v33, %v6027_v0 }
 0x2b5   : > { %v6049_v44 = vunpack.i.h.bf16 %v5085_v42  ;;  %v5086_v45 = vunpack.i.l.bf16 %v5085_v42 }
 0x2b6   : > { %5119 = vrot.lane.b32.xlu0 %v5118_v46, %s5517_s10 }
 0x2b7   : > { %8663 = vst [vmem:[#allocation31_spill] sm:$0xff] %v6049_v44  ;;  %v6057_v49 = vsel %vm665_vm2, %v5061_v14, %v5086_v45  ;;  %v6061_v20 = vsel %vm665_vm2, %v5086_v45, %v6049_v44  ;;  %v1746_v10 = vpack.c.bf16 %v6049_v44, %v6032_v1  ;;  %v5128_v14 = vpack.i.bf16 %v5987_v9, %v5973_v58 }
 0x2b8   : > { %8665 = vst [vmem:[#allocation33_spill] sm:$0xff] %v6057_v49  ;;  %8666 = vst [vmem:[#allocation34_spill] sm:$0xff] %v6061_v20  ;;  %v1328_v54 = vpop.permute.xlu1 %1327  ;;  %v1744_v55 = vpack.c.bf16 %v6057_v49, %v5961_v53  ;;  %v1745_v57 = vpack.c.bf16 %v6061_v20, %v5977_v60 }
 0x2b9   : > { %v6074_v61 = vsel %vm324_vm4, %v1326_v36, %v1328_v54  ;;  %v6077_v62 = vsel %vm324_vm4, %v1328_v54, %v1330_v47 }
 0x2ba   : > { %1349 = vst [vmem:[#allocation2 + $0x98] sm:$0xff] %v6074_v61  ;;  %1350 = vst [vmem:[#allocation2 + $0xa0] sm:$0xff] %v6077_v62  ;;  %2357 = vrot.lane.b32.xlu1 %v1744_v55, %s5514_s15  ;;  %2359 = vrot.lane.b32.xlu0 %v1745_v57, %s5514_s15  ;;  %v5183_v36 = vpack.i.bf16 %v6077_v62, %v6074_v61  ;;  %v1667_v41 = vpack.c.bf16 %v6077_v62, %v5987_v9 }
 0x2bb   : > { %v1665_v55 = vpack.c.bf16 %v6111_v33, %v6015_v31 }
 0x2bc   : > { %v1332_v7 = vpop.permute.xlu1 %1331 }
 0x2bd   : > { %v6086_v12 = vsel %vm324_vm4, %v1330_v47, %v1332_v7  ;;  %v6089_v13 = vsel %vm324_vm4, %v1332_v7, %v1334_v63 }
 0x2be   : > { %1351 = vst [vmem:[#allocation2 + $0xa8] sm:$0xff] %v6086_v12  ;;  %1352 = vst [vmem:[#allocation2 + $0xb0] sm:$0xff] %v6089_v13  ;;  %2361 = vrot.lane.b32.xlu1 %v1746_v10, %s5514_s15  ;;  %5129 = vrot.lane.b32.xlu0 %v5128_v14, %s5516_s23  ;;  %v5188_v42 = vpack.i.bf16 %v6086_v12, %v6027_v0  ;;  %v5203_v45 = vpack.i.bf16 %v6089_v13, %v6086_v12 }
 0x2bf   : > { %v5198_v46 = vpack.i.bf16 %v6086_v12, %v6032_v1  ;;  %v1669_v57 = vpack.c.bf16 %v6089_v13, %v6009_v4  ;;  %v1668_v10 = vpack.c.bf16 %v6086_v12, %v6006_v2 }
 0x2c0   : > { %v1336_v15 = vpop.permute.xlu1 %1335 }
 0x2c1   : > { %v1341_v25 = vsel %vm324_vm4, %v1334_v63, %v1336_v15  ;;  %v1666_v63 = vpack.c.bf16 %v6074_v61, %v5973_v58  ;;  %v5052_v15 = vunpack.i.h.bf16 %v5984_v8 }
 0x2c2   : > { %1353 = vst.msk [vmem:[#allocation2 + $0xb8] sm:$0xff] %vm596_vm7, %v1341_v25  ;;  %5134 = vrot.lane.b32.xlu1 %v5133_v17, %s5516_s23  ;;  %5139 = vrot.lane.b32.xlu0 %v5138_v26, %s5516_s23  ;;  %v5051_v17 = vunpack.i.l.bf16 %v5984_v8 }
 0x2c6   : > { %5144 = vrot.lane.b32.xlu1 %v5143_v28, %s5514_s15  ;;  %5149 = vrot.lane.b32.xlu0 %v5148_v32, %s5514_s15 }
 0x2c9   : > { %v6139_v47 = vld [vmem:[#allocation2 + $0xb8] sm:$0xff] }
 0x2ca   : > { %5154 = vrot.lane.b32.xlu1 %v5143_v28, %s5517_s10  ;;  %5159 = vrot.lane.b32.xlu0 %v5148_v32, %s5517_s10  ;;  %v5218_v54 = vpack.i.bf16 %v6139_v47, %v6089_v13  ;;  %v1670_v7 = vpack.c.bf16 %v6139_v47, %v6053_v48  ;;  %v5208_v14 = vpack.i.bf16 %v5973_v58, %v6139_v47 }
 0x2cb   : > { %v6168_v32 = vsel %vm1169_vm3, %v5051_v17, %v5052_v15 }
 0x2cc   : > { %8667 = vst [vmem:[#allocation35_spill] sm:$0xff] %v6168_v32 }
 0x2ce   : > { %5164 = vrot.lane.b32.xlu1 %v5163_v34, %s5514_s15  ;;  %5169 = vrot.lane.b32.xlu0 %v5168_v35, %s5516_s23 }
 0x2d2   : > { %5184 = vrot.lane.b32.xlu1 %v5183_v36, %s5516_s23  ;;  %5174 = vrot.lane.b32.xlu0 %v5173_v38, %s5517_s10 }
 0x2d6   : > { %5194 = vrot.lane.b32.xlu1 %v5183_v36, %s5517_s10  ;;  %5179 = vrot.lane.b32.xlu0 %v5183_v36, %s5514_s15 }
 0x2da   : > { %2028 = vrot.lane.b32.xlu1 %v1667_v41, %s5516_s23  ;;  %5189 = vrot.lane.b32.xlu0 %v5188_v42, %s5516_s23  ;;  %v8520_v42 = vunpack.i.l.bf16 %v5990_v19 }
 0x2de   : > { %5204 = vrot.lane.b32.xlu1 %v5203_v45, %s5514_s15  ;;  %5199 = vrot.lane.b32.xlu0 %v5198_v46, %s5517_s10  ;;  %v8521_v45 = vunpack.i.l.bf16 %v6023_v5 }
 0x2e2   : > { %5219 = vrot.lane.b32.xlu1 %v5218_v54, %s5517_s10  ;;  %2024 = vrot.lane.b32.xlu0 %v1665_v55, %s5516_s23 }
 0x2e6   : > { %2032 = vrot.lane.b32.xlu1 %v1669_v57, %s5516_s23  ;;  %2026 = vrot.lane.b32.xlu0 %v1666_v63, %s5516_s23 }
 0x2ea   : > { %2034 = vrot.lane.b32.xlu1 %v1670_v7, %s5516_s23  ;;  %2030 = vrot.lane.b32.xlu0 %v1668_v10, %s5516_s23  ;;  %v6205_v7 = vsel %vm1169_vm3, %v5052_v15, %v8521_v45  ;;  %v5077_v15 = vunpack.i.h.bf16 %v6037_v37 }
 0x2ec   : > { %v6237_v37 = vsel %vm366_vm0, %v5077_v15, %v8526_v16 }
 0x2ed   : > { %8674 = vst [vmem:[#allocation42_spill] sm:$0xff] %v6237_v37 }
 0x2ee   : > { %5209 = vrot.lane.b32.xlu0 %v5208_v14, %s5514_s15 }
 0x2f2   : > { %5214 = vrot.lane.b32.xlu0 %v5218_v54, %s5516_s23  ;;  %v8522_v54 = vunpack.i.h.bf16 %v5982_v3 }
 0x2f4   : > { %v6200_v63 = vsel %vm366_vm0, %v8522_v54, %v8520_v42 }
 0x2fd   : > { %v5090_v25 = vpop.permute.xlu0 %5089 }
 0x2fe   : > { %v5092_v26 = vunpack.i.h.bf16 %v5090_v25  ;;  %v5091_v28 = vunpack.i.l.bf16 %v5090_v25  ;;  %v6179_v36 = vpop.permute.xlu1 %5094 }
 0x2ff   : > { %v5096_v25 = vunpack.i.l.bf16 %v6179_v36 }
 0x300   : > { %v6171_v34 = vsel %vm366_vm0, %v5091_v28, %v5092_v26 }
 0x301   : > { %8668 = vst [vmem:[#allocation36_spill] sm:$0xff] %v6171_v34  ;;  %v6175_v35 = vpack.c.bf16 %v6168_v32, %v6171_v34 }
 0x302   : > { %v6181_v38 = vpop.permute.xlu1 %5099 }
 0x303   : > { %2050 = vrot.lane.b32.xlu0 %v6175_v35, %s5516_s23  ;;  %v5101_v1 = vunpack.i.l.bf16 %v6181_v38 }
 0x318   : > { %v6183_v8 = vpop.permute.xlu1 %2353  ;;  %v6185_v41 = vpop.permute.xlu0 %2355 }
 0x319   : > { %8669 = vst [vmem:[#allocation37_spill] sm:$0xff] %v6183_v8  ;;  %8670 = vst [vmem:[#allocation38_spill] sm:$0xff] %v6185_v41 }
 0x31c   : > { %v6189_v46 = vpop.permute.xlu1 %5104  ;;  %v6193_v57 = vpop.permute.xlu0 %2351 }
 0x31d   : > { %v8523_v55 = vunpack.i.l.bf16 %v6189_v46  ;;  %8671 = vst [vmem:[#allocation39_spill] sm:$0xff] %v6193_v57 }
 0x31f   : > { %v6210_v10 = vsel %vm366_vm0, %v5092_v26, %v8523_v55  ;;  %v5082_v26 = vunpack.i.h.bf16 %v6044_v40  ;;  %v6243_v55 = vsel %vm366_vm0, %v8527_v30, %v6224_v59 }
 0x320   : > { %v6214_v14 = vpack.c.bf16 %v6205_v7, %v6210_v10  ;;  %v6218_v52 = vpop.permute.xlu0 %5109  ;;  %v6248_v56 = vpop.permute.xlu1 %5124 }
 0x321   : > { %v6246_v11 = vsel %vm1169_vm3, %v5082_v26, %v5051_v17 }
 0x322   : > { %2052 = vrot.lane.b32.xlu1 %v6214_v14, %s5516_s23  ;;  %8675 = vst [vmem:[#allocation43_spill] sm:$0xff] %v6246_v11 }
 0x324   : > { %v5115_v27 = vpop.permute.xlu0 %5114 }
 0x325   : > { %v5117_v45 = vunpack.i.h.bf16 %v5115_v27  ;;  %v6232_v54 = vunpack.i.l.bf16 %v5115_v27  ;;  %v8677_v27 = vunpack.i.h.bf16 %v6189_v46 }
 0x327   : > { %8673 = vst [vmem:[#allocation41_spill] sm:$0xff] %v6232_v54  ;;  %v6251_v42 = vsel %vm366_vm0, %v5117_v45, %v5091_v28  ;;  %v6257_v15 = vsel %vm366_vm0, %v8677_v27, %v6232_v54  ;;  %v8679_v28 = vunpack.i.h.bf16 %v6179_v36 }
 0x328   : > { %8676 = vst [vmem:[#allocation44_spill] sm:$0xff] %v6251_v42  ;;  %8678 = vst [vmem:[#allocation45_spill] sm:$0xff] %v6257_v15  ;;  %v6259_v16 = vpop.permute.xlu0 %5119  ;;  %v6263_v30 = vpack.c.bf16 %v6246_v11, %v6251_v42 }
 0x329   : > { %v1732_v45 = vsel %vm665_vm2, %v5096_v25, %v8679_v28 }
 0x32a   : > { %2048 = vrot.lane.b32.xlu0 %v6263_v30, %s5516_s23  ;;  %v1749_v43 = vpack.c.bf16 %v6077_v62, %v1732_v45 }
 0x32c   : > { %v6274_v27 = vpop.permute.xlu1 %2357  ;;  %v6276_v39 = vpop.permute.xlu0 %2359 }
 0x32d   : > { %8680 = vst [vmem:[#allocation46_spill] sm:$0xff] %v6274_v27  ;;  %8681 = vst [vmem:[#allocation47_spill] sm:$0xff] %v6276_v39 }
 0x32e   : > { %2367 = vrot.lane.b32.xlu0 %v1749_v43, %s5514_s15 }
 0x330   : > { %v6280_v29 = vpop.permute.xlu1 %2361  ;;  %v5130_v17 = vpop.permute.xlu0 %5129 }
 0x331   : > { %8682 = vst [vmem:[#allocation48_spill] sm:$0xff] %v6280_v29  ;;  %v5132_v6 = vunpack.i.h.bf16 %v5130_v17  ;;  %v5131_v26 = vunpack.i.l.bf16 %v5130_v17 }
 0x333   : > { %v6285_v28 = vsel %vm665_vm2, %v5131_v26, %v5132_v6 }
 0x334   : > { %v6282_v18 = vpop.permute.xlu1 %5134  ;;  %v6289_v57 = vpop.permute.xlu0 %5139  ;;  %v6293_v45 = vpack.c.bf16 %v6285_v28, %v6074_v61 }
 0x335   : > { %v8547_v22 = vunpack.i.h.bf16 %v6282_v18  ;;  %v5136_v27 = vunpack.i.l.bf16 %v6282_v18  ;;  %v5142_v43 = vunpack.i.h.bf16 %v6289_v57 }
 0x336   : > { %8683 = vst [vmem:[#allocation49_spill] sm:$0xff] %v6293_v45  ;;  %1818 = vmatprep.subr.bf16.mxu0 %v6293_v45 }
 0x337   : > { %v6297_v29 = vsel %vm665_vm2, %v5132_v6, %v5136_v27  ;;  %v6303_v17 = vsel %vm665_vm2, %v5136_v27, %v8547_v22  ;;  %v6306_v39 = vsel %vm665_vm2, %v5142_v43, %v5131_v26  ;;  %v8561_v22 = vunpack.i.h.bf16 %v6181_v38 }
 0x338   : > { %v6308_v8 = vpop.permute.xlu1 %5144  ;;  %v6312_v41 = vpack.c.bf16 %v6303_v17, %v6086_v12  ;;  %v6316_v6 = vpack.c.bf16 %v6297_v29, %v6077_v62  ;;  %v6318_v44 = vpop.permute.xlu0 %5149  ;;  %v6322_v48 = vpack.c.bf16 %v6306_v39, %v6111_v33 }
 0x339   : > { %v1510_v9 = vsel %vm1169_vm3, %v5101_v1, %v8561_v22 }
 0x33a   : > { %8684 = vst [vmem:[#allocation50_spill] sm:$0xff] %v6312_v41  ;;  %8685 = vst [vmem:[#allocation51_spill] sm:$0xff] %v6316_v6  ;;  %1859 = vmatprep.subr.bf16.mxu1 %v6312_v41  ;;  %1819 = vmatpush1.bf16.msra.mxu0 %v6322_v48 }
 0x33b   : > { %8686 = vst [vmem:[#allocation52_spill] sm:$0xff] %v6322_v48  ;;  %1860 = vmatpush1.bf16.msra.mxu1 %v6316_v6 }
 0x33c   : > { %v6327_v26 = vpop.permute.xlu1 %5154  ;;  %v6329_v27 = vpop.permute.xlu0 %5159 }
 0x33d   : > { %v5157_v51 = vunpack.i.h.bf16 %v6327_v26 }
 0x340   : > { %v6331_v43 = vpop.permute.xlu1 %5164  ;;  %v5170_v62 = vpop.permute.xlu0 %5169 }
 0x341   : > { %v5172_v45 = vunpack.i.h.bf16 %v5170_v62  ;;  %v5171_v41 = vunpack.i.l.bf16 %v5170_v62 }
 0x343   : > { %v1731_v20 = vsel %vm665_vm2, %v5172_v45, %v5096_v25 }
 0x344   : > { %v6336_v4 = vpop.permute.xlu1 %5184  ;;  %v5175_v24 = vpop.permute.xlu0 %5174  ;;  %v1748_v31 = vpack.c.bf16 %v6074_v61, %v1731_v20 }
 0x345   : > { %v8562_v48 = vunpack.i.h.bf16 %v6336_v4  ;;  %v5186_v6 = vunpack.i.l.bf16 %v6336_v4  ;;  %v5176_v23 = vunpack.i.l.bf16 %v5175_v24 }
 0x346   : > { %2365 = vrot.lane.b32.xlu1 %v1748_v31, %s5514_s15 }
 0x347   : > { %v6345_v49 = vsel %vm665_vm2, %v5171_v41, %v5186_v6  ;;  %v6351_v25 = vsel %vm665_vm2, %v5186_v6, %v8562_v48  ;;  %v1602_v41 = vpack.c.bf16 %v1510_v9, %v6168_v32  ;;  %v6364_v31 = vsel %vm1169_vm3, %v5176_v23, %v5101_v1 }
 0x348   : > { %v1596_v62 = vpack.c.bf16 %v6171_v34, %v6351_v25  ;;  %v1595_v20 = vpack.c.bf16 %v6251_v42, %v6345_v49  ;;  %v6358_v2 = vpop.permute.xlu1 %5194  ;;  %v6360_v22 = vpop.permute.xlu0 %5179  ;;  %v5122_v42 = vunpack.i.h.bf16 %v6259_v16  ;;  %v1760_v23 = vpack.c.bf16 %v1510_v9, %v1510_v9 }
 0x349   : > { %v8567_v6 = vunpack.i.h.bf16 %v6360_v22  ;;  %v5181_v48 = vunpack.i.l.bf16 %v6360_v22  ;;  %v5196_v32 = vunpack.i.l.bf16 %v6358_v2  ;;  %v5166_v34 = vunpack.i.l.bf16 %v6331_v43 }
 0x34a   : > { %1820 = vmatprep.subr.bf16.mxu0 %v1596_v62  ;;  %2389 = vrot.lane.b32.xlu1 %v6175_v35, %s5514_s15  ;;  %v5121_v62 = vunpack.i.l.bf16 %v6259_v16  ;;  %v1601_v35 = vpack.c.bf16 %v6364_v31, %v6246_v11  ;;  %v5177_v9 = vunpack.i.h.bf16 %v5175_v24  ;;  %v6395_v16 = vunpack.i.l.bf16 %v6044_v40 }
 0x34b   : > { %1821 = vmatpush1.bf16.msra.mxu0 %v1595_v20  ;;  %v6378_v1 = vsel %vm366_vm0, %v5181_v48, %v8567_v6  ;;  %v8687_v20 = vunpack.i.l.bf16 %v6327_v26  ;;  %v6398_v58 = vsel %vm366_vm0, %v5166_v34, %v5181_v48 }
 0x34c   : > { %1822 = vmatprep.subr.bf16.mxu0 %v1602_v41  ;;  %v6382_v21 = vpop.permute.xlu0 %5189  ;;  %v1578_v0 = vsel %vm1169_vm3, %v5177_v9, %v5196_v32  ;;  %v6407_v53 = vsel %vm1169_vm3, %v5121_v62, %v5122_v42  ;;  %v6414_v34 = vpack.c.bf16 %v6395_v16, %v6232_v54  ;;  %v5126_v62 = vunpack.i.l.bf16 %v6248_v56 }
 0x34d   : > { %v6389_v61 = vsel %vm1169_vm3, %v5122_v42, %v8687_v20  ;;  %v5191_v41 = vunpack.i.l.bf16 %v6382_v21  ;;  %v8688_v20 = vunpack.i.h.bf16 %v6358_v2  ;;  %v1613_v42 = vpack.c.bf16 %v1578_v0, %v1578_v0 }
 0x34e   : > { %v1608_v6 = vpack.c.bf16 %v6389_v61, %v6378_v1  ;;  %2401 = vrot.lane.b32.xlu1 %v1760_v23, %s5514_s15  ;;  %8689 = vst [vmem:[#allocation53_spill] sm:$0xff] %v6414_v34  ;;  %v5072_v23 = vunpack.i.h.bf16 %v6023_v5 }
 0x34f   : > { %1823 = vmatpush1.bf16.msra.mxu0 %v1601_v35  ;;  %v1730_v11 = vsel %vm665_vm2, %v5191_v41, %v5172_v45  ;;  %v1579_v24 = vsel %vm1169_vm3, %v5196_v32, %v8688_v20  ;;  %v1607_v45 = vpack.c.bf16 %v6407_v53, %v6398_v58  ;;  %v1801_v0 = vsel %vm1799_vm8, %v1613_v42, 0  ;;  %v6473_v42 = vpop.permute.xlu1 %2028 }
 0x350   : > { %1824 = vmatprep.subr.bf16.mxu0 %v1608_v6  ;;  %v6409_v40 = vpop.permute.xlu0 %5199  ;;  %v1747_v48 = vpack.c.bf16 %v6111_v33, %v1730_v11  ;;  %v6419_v6 = vunpack.i.l.bf16 %v6289_v57  ;;  %v1614_v32 = vpack.c.bf16 %v1579_v24, %v1579_v24  ;;  %v1671_v33 = vpack.c.bf16 %v6237_v37, %v6306_v39 }
 0x351   : > { %v8572_v57 = vunpack.i.h.bf16 %v6248_v56  ;;  %v6442_v9 = vsel %vm1169_vm3, %v5072_v23, %v6395_v16  ;;  %v8691_v41 = vunpack.i.h.bf16 %v6282_v18 }
 0x352   : > { %2363 = vrot.lane.b32.xlu0 %v1747_v48, %s5514_s15  ;;  %2058 = vrot.lane.b32.xlu1 %v6414_v34, %s5516_s23  ;;  %v6438_v35 = vpack.c.bf16 %v6419_v6, %v6139_v47  ;;  %v1681_v24 = vpack.c.bf16 %v6442_v9, %v6257_v15  ;;  %v6458_v48 = vld [vmem:[%s8514_s4] sm:$0xf]  ;;  %v5162_v34 = vunpack.i.h.bf16 %v6329_v27 }
 0x353   : > { %1825 = vmatpush1.bf16.msra.mxu0 %v1607_v45  ;;  %v6448_v20 = vsel %vm665_vm2, %v8691_v41, %v6419_v6  ;;  %v1734_v18 = vsel %vm665_vm2, %v5126_v62, %v8572_v57  ;;  %v5111_v45 = vunpack.i.l.bf16 %v6218_v52  ;;  %v8693_v41 = vmov 0   ;;  %v5205_v60 = vpop.permute.xlu1 %5204 }
 0x354   : > { %v6424_v11 = vpop.permute.xlu0 %2024  ;;  %4876 = vmatprep.subr.msk.bf16.mxu0 %vm1799_vm8, %v1614_v32  ;;  %8690 = vst [vmem:[#allocation54_spill] sm:$0xff] %v6438_v35  ;;  %v6469_v32 = vpack.c.bf16 %v6448_v20, %v6089_v13  ;;  %v8694_v57 = vunpack.i.h.bf16 %v6181_v38  ;;  %v5112_v38 = vunpack.i.h.bf16 %v6218_v52 }
 0x356   : > { %2391 = vrot.lane.b32.xlu0 %v6214_v14, %s5514_s15  ;;  %2036 = vrot.lane.b32.xlu1 %v1671_v33, %s5516_s23  ;;  %8692 = vst [vmem:[#allocation55_spill] sm:$0xff] %v6469_v32 }
 0x357   : > { %1827 = vmatpush1.bf16.msra.mxu0 %v1801_v0  ;;  %v1759_v0 = vpack.c.bf16 %v6364_v31, %v6364_v31  ;;  %v8695_v31 = vunpack.i.h.bf16 %v6189_v46 }
 0x358   : > { %v6450_v14 = vpop.permute.xlu0 %2026  ;;  %1900 = vmatprep.subr.bf16.mxu0 %v6438_v35  ;;  %v6485_v35 = vsel %vm1169_vm3, %v8694_v57, %v5111_v45  ;;  %v5192_v57 = vunpack.i.h.bf16 %v6382_v21 }
 0x35a   : > { %2387 = vrot.lane.b32.xlu0 %v6263_v30, %s5514_s15  ;;  %2056 = vrot.lane.b32.xlu1 %v1681_v24, %s5516_s23  ;;  %v1751_v30 = vpack.c.bf16 %v6089_v13, %v1734_v18  ;;  %v8696_v13 = vunpack.i.l.bf16 %v6189_v46  ;;  %v8700_v46 = vunpack.i.l.bf16 %v6023_v5  ;;  %v8702_v5 = vunpack.i.h.bf16 %v6336_v4 }
 0x35b   : > { %4877 = vmatmul.mubr.msk.bf16.vlgmr.msra.gmra.mrb[24].mxu0 %vm1795_vm9, %v6458_v48 }
 0x35c   : > { %1901 = vmatpush1.bf16.msra.mxu0 %v6469_v32  ;;  %v6476_v33 = vpop.permute.xlu0 %2030  ;;  %1932 = vmatprep.mubr.bf16.mxu0 %v8693_v41  ;;  %v1761_v32 = vpack.c.bf16 %v6485_v35, %v6485_v35  ;;  %v6498_v18 = vsel %vm366_vm0, %v8696_v13, %v8695_v31  ;;  %v6514_v31 = vsel %vm1169_vm3, %v8700_v46, %v5072_v23 }
 0x35d   : > { %v6530_v23 = vsel %vm665_vm2, %v8702_v5, %v5192_v57  ;;  %v1690_v46 = vpack.c.bf16 %v6389_v61, %v6389_v61  ;;  %v5206_v61 = vunpack.i.l.bf16 %v5205_v60  ;;  %v5220_v5 = vpop.permute.xlu1 %5219 }
 0x35e   : > { %2399 = vrot.lane.b32.xlu0 %v1759_v0, %s5514_s15  ;;  %2371 = vrot.lane.b32.xlu1 %v1751_v30, %s5514_s15  ;;  %v8697_v0 = vunpack.i.h.bf16 %v5982_v3  ;;  %v8698_v30 = vunpack.i.l.bf16 %v5982_v3 }
 0x360   : > { %v6489_v37 = vpop.permute.xlu0 %5209  ;;  %v6509_v50 = vsel %vm366_vm0, %v8698_v30, %v8697_v0  ;;  %v6533_v30 = vunpack.i.l.bf16 %v6409_v40 }
 0x361   : > { %8699 = vst [vmem:[#allocation56_spill] sm:$0xff] %v6509_v50  ;;  %v1672_v21 = vpack.c.bf16 %v6509_v50, %v6285_v28  ;;  %v1597_v50 = vpack.c.bf16 %v6210_v10, %v6530_v23 }
 0x362   : > { %2395 = vrot.lane.b32.xlu1 %v1681_v24, %s5514_s15  ;;  %2403 = vrot.lane.b32.xlu0 %v1761_v32, %s5514_s15  ;;  %v6520_v24 = vpack.c.bf16 %v6514_v31, %v6498_v18  ;;  %v8701_v32 = vunpack.i.h.bf16 %v6179_v36  ;;  %v6541_v36 = vsel %vm1169_vm3, %v5111_v45, %v5112_v38 }
 0x364   : > { %v5215_v52 = vpop.permute.xlu0 %5214  ;;  %v1733_v3 = vsel %vm665_vm2, %v8701_v32, %v5126_v62  ;;  %v5207_v62 = vunpack.i.h.bf16 %v5205_v60  ;;  %v6564_v60 = vsel %vm1169_vm3, %v5112_v38, %v6533_v30  ;;  %v5202_v38 = vunpack.i.h.bf16 %v6409_v40 }
 0x365   : > { %v6525_v13 = vunpack.i.h.bf16 %v5215_v52  ;;  %v5216_v0 = vunpack.i.l.bf16 %v5215_v52  ;;  %v8704_v40 = vunpack.i.h.bf16 %v6360_v22  ;;  %v8706_v22 = vunpack.i.l.bf16 %v6327_v26 }
 0x366   : > { %2038 = vrot.lane.b32.xlu1 %v1672_v21, %s5516_s23  ;;  %2054 = vrot.lane.b32.xlu0 %v6520_v24, %s5516_s23 }
 0x367   : > { %v6545_v4 = vsel %vm665_vm2, %v5216_v0, %v6525_v13  ;;  %v1600_v52 = vpack.c.bf16 %v6232_v54, %v6525_v13  ;;  %v6550_v32 = vsel %vm665_vm2, %v5192_v57, %v5216_v0  ;;  %v5161_v54 = vunpack.i.l.bf16 %v6329_v27 }
 0x368   : > { %v1598_v21 = vpack.c.bf16 %v6498_v18, %v6550_v32  ;;  %v1599_v45 = vpack.c.bf16 %v6257_v15, %v6545_v4  ;;  %v1750_v57 = vpack.c.bf16 %v6086_v12, %v1733_v3  ;;  %v6567_v0 = vunpack.i.l.bf16 %v6489_v37 }
 0x369   : > { %1902 = vmatprep.subr.bf16.mxu0 %v1600_v52  ;;  %v1606_v15 = vpack.c.bf16 %v6533_v30, %v6395_v16  ;;  %v5222_v27 = vunpack.i.h.bf16 %v5220_v5  ;;  %v5221_v52 = vunpack.i.l.bf16 %v5220_v5  ;;  %v1604_v12 = vpack.c.bf16 %v6541_v36, %v6514_v31 }
 0x36a   : > { %1861 = vmatprep.subr.bf16.mxu1 %v1598_v21  ;;  %2074 = vrot.lane.b32.xlu1 %v1690_v46, %s5516_s23  ;;  %v1676_v3 = vpack.c.bf16 %v6224_v59, %v6419_v6  ;;  %v6581_v46 = vsel %vm366_vm0, %v5206_v61, %v5207_v62  ;;  %v8703_v21 = vunpack.i.h.bf16 %v6248_v56  ;;  %v1612_v56 = vpack.c.bf16 %v5162_v34, %v6567_v0 }
 0x36b   : > { %1903 = vmatpush1.bf16.msra.mxu0 %v1599_v45  ;;  %2369 = vrot.lane.b32.xlu0 %v1750_v57, %s5514_s15  ;;  %v1605_v45 = vpack.c.bf16 %v6564_v60, %v6442_v9  ;;  %v1603_v57 = vpack.c.bf16 %v6485_v35, %v6205_v7  ;;  %v8705_v59 = vunpack.i.h.bf16 %v6358_v2  ;;  %v8708_v2 = vunpack.i.l.bf16 %v5990_v19 }
 0x36c   : > { %1862 = vmatpush1.bf16.msra.mxu1 %v1597_v50  ;;  %1904 = vmatprep.subr.bf16.mxu0 %v1606_v15  ;;  %v1752_v5 = vpack.c.bf16 %v6139_v47, %v8703_v21  ;;  %v6591_v50 = vsel %vm1169_vm3, %v5161_v54, %v5162_v34  ;;  %v6595_v15 = vsel %vm366_vm0, %v5207_v62, %v6567_v0 }
 0x36d   : > { %1863 = vmatprep.subr.bf16.mxu1 %v1604_v12  ;;  %v1558_v47 = vsel %vm1169_vm3, %v5157_v51, %v5161_v54  ;;  %v6603_v12 = vsel %vm366_vm0, %v8704_v40, %v5206_v61  ;;  %v1582_v21 = vsel %vm1169_vm3, %v5221_v52, %v5222_v27  ;;  %v1694_v62 = vpack.c.bf16 %v5162_v34, %v5162_v34 }
 0x36e   : > { %2046 = vrot.lane.b32.xlu1 %v1676_v3, %s5516_s23  ;;  %v1610_v35 = vpack.c.bf16 %v1558_v47, %v6581_v46  ;;  %v1581_v3 = vsel %vm1169_vm3, %v5202_v38, %v5221_v52  ;;  %v1580_v54 = vsel %vm1169_vm3, %v8705_v59, %v5202_v38  ;;  %v1557_v61 = vsel %vm1169_vm3, %v8706_v22, %v5157_v51 }
 0x36f   : > { %1905 = vmatpush1.bf16.msra.mxu0 %v1605_v45  ;;  %2373 = vrot.lane.b32.xlu0 %v1752_v5, %s5514_s15  ;;  %v1611_v5 = vpack.c.bf16 %v6591_v50, %v6595_v15  ;;  %v1618_v45 = vpack.c.bf16 %v5222_v27, %v5222_v27  ;;  %v1617_v34 = vpack.c.bf16 %v1582_v21, %v1582_v21  ;;  %v8707_v52 = vunpack.i.h.bf16 %v5990_v19 }
 0x370   : > { %1864 = vmatpush1.bf16.msra.mxu1 %v1603_v57  ;;  %1906 = vmatprep.subr.bf16.mxu0 %v1612_v56  ;;  %v1609_v57 = vpack.c.bf16 %v1557_v61, %v6603_v12  ;;  %v1616_v51 = vpack.c.bf16 %v1581_v3, %v1581_v3  ;;  %v1615_v26 = vpack.c.bf16 %v1580_v54, %v1580_v54  ;;  %v5212_v38 = vunpack.i.h.bf16 %v6489_v37  ;;  %v6635_v56 = vpop.permute.xlu1 %2032 }
 0x371   : > { %1865 = vmatprep.subr.bf16.mxu1 %v1610_v35  ;;  %v6624_v59 = vsel %vm366_vm0, %v8708_v2, %v8707_v52  ;;  %v1689_v19 = vpack.c.bf16 %v6407_v53, %v6407_v53  ;;  %v5146_v40 = vunpack.i.l.bf16 %v6308_v8  ;;  %v2087_v37 = vsel %vm665_vm2, %v6476_v33, %v6635_v56  ;;  %v5405_v2 = vld [vmem:[#allocation2 + $0x20] sm:$0xff] }
 0x372   : > { %2082 = vrot.lane.b32.xlu1 %v1694_v62, %s5516_s23  ;;  %v1674_v27 = vpack.c.bf16 %v6624_v59, %v6303_v17  ;;  %v1807_v35 = vsel %vm1799_vm8, %v1615_v26, 0  ;;  %v1692_v21 = vpack.c.bf16 %v1558_v47, %v1558_v47  ;;  %v2085_v53 = vsel %vm665_vm2, %v6450_v14, %v6473_v42  ;;  %v5406_v26 = vld [vmem:[#allocation2 + $0x18] sm:$0xff] }
 0x373   : > { %1907 = vmatpush1.bf16.msra.mxu0 %v1611_v5  ;;  %2393 = vrot.lane.b32.xlu0 %v6520_v24, %s5514_s15  ;;  %v1813_v24 = vsel %vm1799_vm8, %v1617_v34, 0  ;;  %v1655_v62 = vsel %vm366_vm0, %v5212_v38, %v5146_v40  ;;  %v1673_v3 = vpack.c.bf16 %v6200_v63, %v6297_v29  ;;  %v2086_v47 = vsel %vm665_vm2, %v6473_v42, %v6476_v33 }
 0x374   : > { %1866 = vmatpush1.bf16.msra.mxu1 %v1609_v57  ;;  %4880 = vmatprep.subr.msk.bf16.mxu0 %vm1799_vm8, %v1618_v45  ;;  %v5167_v54 = vunpack.i.h.bf16 %v6331_v43  ;;  %v2084_v22 = vsel %vm665_vm2, %v6424_v11, %v6450_v14  ;;  %v1684_v5 = vpack.c.bf16 %v6378_v1, %v1655_v62  ;;  %v1675_v43 = vpack.c.bf16 %v6243_v55, %v6448_v20 }
 0x375   : > { %4878 = vmatprep.subr.msk.bf16.mxu1 %vm1799_vm8, %v1616_v51  ;;  %v1691_v33 = vpack.c.bf16 %v1557_v61, %v1557_v61  ;;  %v5147_v1 = vunpack.i.h.bf16 %v6308_v8  ;;  %v5151_v11 = vunpack.i.l.bf16 %v6318_v44  ;;  %v1754_v14 = vpack.c.bf16 %v6351_v25, %v6285_v28  ;;  %v8713_v51 = vld [vmem:[#allocation21_spill] sm:$0xff] }
 0x376   : > { %2042 = vrot.lane.b32.xlu1 %v1674_v27, %s5516_s23  ;;  %v1654_v45 = vsel %vm366_vm0, %v5167_v54, %v5212_v38  ;;  %v1693_v57 = vpack.c.bf16 %v6591_v50, %v6591_v50  ;;  %v5152_v52 = vunpack.i.h.bf16 %v6318_v44  ;;  %v1755_v25 = vpack.c.bf16 %v6530_v23, %v6297_v29  ;;  %v8710_v23 = vld [vmem:[#allocation53_spill] sm:$0xff]  ;;  %v8714_v27 = vld [vmem:[#allocation19_spill] sm:$0xff] }
 0x377   : > { %1909 = vmatpush1.bf16.msra.mxu0 %v1813_v24  ;;  %2072 = vrot.lane.b32.xlu0 %v1689_v19, %s5516_s23  ;;  %v1683_v42 = vpack.c.bf16 %v6398_v58, %v1654_v45  ;;  %v1657_v34 = vsel %vm366_vm0, %v5147_v1, %v5151_v11  ;;  %v1656_v58 = vsel %vm366_vm0, %v5146_v40, %v5147_v1  ;;  %v5407_v38 = vld [vmem:[#allocation2] sm:$0xff]  ;;  %v8715_v19 = vld [vmem:[#allocation29_spill] sm:$0xff]  ;;  %v8716_v40 = vld [vmem:[#allocation20_spill] sm:$0xff] }
 0x378   : > { %1868 = vmatpush1.bf16.msra.mxu1 %v1807_v35  ;;  %2192 = vmatprep.subr.bf16.mxu0 %v2087_v37  ;;  %v1686_v8 = vpack.c.bf16 %v6581_v46, %v1657_v34  ;;  %v1685_v61 = vpack.c.bf16 %v6603_v12, %v1656_v58  ;;  %v1688_v28 = vpack.c.bf16 %v6567_v0, %v5152_v52  ;;  %v8717_v35 = vld [vmem:[#allocation23_spill] sm:$0xff]  ;;  %v8726_v45 = vld [vmem:[#allocation25_spill] sm:$0xff] }
 0x379   : > { %2151 = vmatprep.subr.bf16.mxu1 %v2085_v53  ;;  %v1756_v46 = vpack.c.bf16 %v6550_v32, %v6303_v17  ;;  %v8709_v44 = vpack.c.bf16 %v6345_v49, %v6306_v39  ;;  %v1658_v50 = vsel %vm366_vm0, %v5151_v11, %v5152_v52  ;;  %v1758_v0 = vpack.c.bf16 %v6525_v13, %v6419_v6  ;;  %v5403_v6 = vld [vmem:[#allocation2 + $0x10] sm:$0xff]  ;;  %v8711_v13 = vld [vmem:[#allocation18_spill] sm:$0xff] }
 0x37a   : > { %2078 = vrot.lane.b32.xlu1 %v1692_v21, %s5516_s23  ;;  %4881 = vmatmul.mubr.msk.bf16.vlgmr.msra.gmra.mrb[28].mxu0 %vm1795_vm9, %v6458_v48  ;;  %v1687_v29 = vpack.c.bf16 %v6595_v15, %v1658_v50  ;;  %v1762_v17 = vpack.c.bf16 %v6541_v36, %v6541_v36  ;;  %v1764_v39 = vpack.c.bf16 %v6533_v30, %v6533_v30  ;;  %v5404_v15 = vld [vmem:[#allocation2 + $0x8] sm:$0xff]  ;;  %v8712_v36 = vld [vmem:[#allocation17_spill] sm:$0xff]  ;;  %v8719_v21 = vld [vmem:[#allocation26_spill] sm:$0xff] }
 0x37b   : > { %2193 = vmatpush1.bf16.msra.mxu0 %v2086_v47  ;;  %2040 = vrot.lane.b32.xlu0 %v1673_v3, %s5516_s23  ;;  %v1763_v49 = vpack.c.bf16 %v6564_v60, %v6564_v60  ;;  %v1767_v32 = vpack.c.bf16 %v8711_v13, %v5403_v6  ;;  %v1766_v12 = vpack.c.bf16 %v8712_v36, %v5404_v15  ;;  %v8720_v53 = vld [vmem:[#allocation33_spill] sm:$0xff]  ;;  %v8722_v3 = vld [vmem:[#allocation22_spill] sm:$0xff]  ;;  %v8723_v47 = vld [vmem:[#allocation24_spill] sm:$0xff] }
 0x37c   : > { %4879 = vmatmul.mubr.msk.bf16.vlgmr.msra.gmra.mrb[24].mxu1 %vm1795_vm9, %v6458_v48  ;;  %2224 = vmatprep.mubr.bf16.mxu0 %v8693_v41  ;;  %v1769_v30 = vpack.c.bf16 %v8713_v51, %v5405_v2  ;;  %v1768_v60 = vpack.c.bf16 %v8714_v27, %v5406_v26  ;;  %v1765_v24 = vpack.c.bf16 %v8715_v19, %v5407_v38  ;;  %v8732_v34 = vld [vmem:[#allocation49_spill] sm:$0xff]  ;;  %v8737_v50 = vld [vmem:[#allocation50_spill] sm:$0xff] }
 0x37d   : > { %2152 = vmatpush1.bf16.msra.mxu1 %v2084_v22  ;;  %2183 = vmatprep.mubr.bf16.mxu1 %v8693_v41  ;;  %v8718_v37 = vpack.c.bf16 %v8716_v40, %v8717_v35  ;;  %v8721_v62 = vpack.c.bf16 %v8719_v21, %v8720_v53  ;;  %v8724_v54 = vpack.c.bf16 %v8722_v3, %v8723_v47  ;;  %v6741_v22 = vpop.permute.xlu1 %2034  ;;  %v8744_v36 = vld [vmem:[#allocation45_spill] sm:$0xff]  ;;  %v8748_v35 = vld [vmem:[#allocation54_spill] sm:$0xff]  ;;  %v8749_v53 = vld [vmem:[#allocation32_spill] sm:$0xff] }
 0x37e   : > { %2062 = vrot.lane.b32.xlu1 %v1684_v5, %s5516_s23  ;;  %v8725_v5 = vld [vmem:[#allocation28_spill] sm:$0xff]  ;;  %v8734_v52 = vpack.c.bf16 %v6545_v4, %v6448_v20  ;;  %v8742_v13 = vpack.c.bf16 %v6210_v10, %v6200_v63  ;;  %v1786_v63 = vpack.c.bf16 %v6514_v31, %v6514_v31  ;;  %v8746_v10 = vld [vmem:[#allocation43_spill] sm:$0xff]  ;;  %v1785_v19 = vpack.c.bf16 %v6205_v7, %v6205_v7 }
 0x37f   : > { %2044 = vrot.lane.b32.xlu0 %v1675_v43, %s5516_s23  ;;  %v8727_v43 = vpack.c.bf16 %v8725_v5, %v8726_v45  ;;  %v8738_v20 = vld [vmem:[#allocation52_spill] sm:$0xff]  ;;  %v1787_v40 = vpack.c.bf16 %v6442_v9, %v6442_v9  ;;  %v1788_v7 = vpack.c.bf16 %v6395_v16, %v6395_v16  ;;  %v2321_v9 = vld [vmem:[%s8515_s5] sm:$0xff]  ;;  %v8753_v45 = vld [vmem:[#allocation41_spill] sm:$0xff] }
 0x380   : > { %v8752_v5 = vld [vmem:[#allocation40_spill] sm:$0xff] }
 0x382   : > { %2060 = vrot.lane.b32.xlu1 %v1683_v42, %s5516_s23  ;;  %v8728_v42 = vld [vmem:[#allocation27_spill] sm:$0xff] }
 0x383   : > { %2076 = vrot.lane.b32.xlu0 %v1691_v33, %s5516_s23  ;;  %v8729_v33 = vld [vmem:[#allocation34_spill] sm:$0xff] }
 0x384   : > { %v8730_v1 = vpack.c.bf16 %v8728_v42, %v8729_v33 }
 0x386   : > { %2377 = vrot.lane.b32.xlu1 %v1754_v14, %s5514_s15  ;;  %v6753_v14 = vpop.permute.xlu0 %2050 }
 0x387   : > { %2080 = vrot.lane.b32.xlu0 %v1693_v57, %s5516_s23  ;;  %v8731_v57 = vld [vmem:[#allocation51_spill] sm:$0xff] }
 0x38a   : > { %2066 = vrot.lane.b32.xlu1 %v1686_v8, %s5516_s23 }
 0x38b   : > { %2064 = vrot.lane.b32.xlu0 %v1685_v61, %s5516_s23  ;;  %v8733_v61 = vld [vmem:[#allocation55_spill] sm:$0xff] }
 0x38e   : > { %2070 = vrot.lane.b32.xlu1 %v1688_v28, %s5516_s23 }
 0x38f   : > { %2379 = vrot.lane.b32.xlu0 %v1755_v25, %s5514_s15  ;;  %v8735_v25 = vld [vmem:[#allocation56_spill] sm:$0xff] }
 0x392   : > { %2381 = vrot.lane.b32.xlu1 %v1756_v46, %s5514_s15  ;;  %v8736_v46 = vld [vmem:[#allocation36_spill] sm:$0xff] }
 0x393   : > { %2375 = vrot.lane.b32.xlu0 %v8709_v44, %s5514_s15  ;;  %v1778_v44 = vpack.c.bf16 %v8736_v46, %v8735_v25 }
 0x394   : > { %v6751_v11 = vpop.permute.xlu1 %2052 }
 0x396   : > { %2385 = vrot.lane.b32.xlu1 %v1758_v0, %s5514_s15 }
 0x397   : > { %2068 = vrot.lane.b32.xlu0 %v1687_v29, %s5516_s23 }
 0x39a   : > { %2405 = vrot.lane.b32.xlu1 %v1762_v17, %s5514_s15  ;;  %v1780_v17 = vpack.c.bf16 %v6498_v18, %v6624_v59 }
 0x39b   : > { %2397 = vrot.lane.b32.xlu0 %v8710_v23, %s5514_s15 }
 0x39c   : > { %v6761_v8 = vpop.permute.xlu0 %2048 }
 0x39e   : > { %2409 = vrot.lane.b32.xlu1 %v1764_v39, %s5514_s15  ;;  %v8739_v39 = vld [vmem:[#allocation44_spill] sm:$0xff] }
 0x39f   : > { %2407 = vrot.lane.b32.xlu0 %v1763_v49, %s5514_s15  ;;  %v8740_v49 = vld [vmem:[#allocation42_spill] sm:$0xff] }
 0x3a0   : > { %v6776_v0 = vpop.permute.xlu0 %2367  ;;  %v8741_v6 = vpack.c.bf16 %v8739_v39, %v8740_v49  ;;  %v2094_v39 = vsel %vm665_vm2, %v6761_v8, %v6753_v14 }
 0x3a2   : > { %2688 = vrot.lane.b32.xlu1 %v1767_v32, %s5517_s10  ;;  %v8743_v32 = vld [vmem:[#allocation35_spill] sm:$0xff] }
 0x3a3   : > { %2686 = vrot.lane.b32.xlu0 %v1766_v12, %s5517_s10  ;;  %v1784_v15 = vpack.c.bf16 %v8743_v32, %v8743_v32  ;;  %v8745_v12 = vpack.c.bf16 %v8744_v36, %v6243_v55  ;;  %v5408_v55 = vld [vmem:[#allocation2 + $0x28] sm:$0xff] }
 0x3a6   : > { %2692 = vrot.lane.b32.xlu1 %v1769_v30, %s5517_s10  ;;  %v1783_v30 = vpack.c.bf16 %v8746_v10, %v8746_v10 }
 0x3a7   : > { %2690 = vrot.lane.b32.xlu0 %v1768_v60, %s5517_s10  ;;  %v8747_v60 = vld [vmem:[#allocation30_spill] sm:$0xff] }
 0x3a8   : > { %v1770_v38 = vpack.c.bf16 %v8747_v60, %v5408_v55 }
 0x3aa   : > { %2698 = vrot.lane.b32.xlu1 %v8718_v37, %s5517_s10 }
 0x3ab   : > { %2684 = vrot.lane.b32.xlu0 %v1765_v24, %s5517_s10 }
 0x3ae   : > { %2702 = vrot.lane.b32.xlu1 %v8721_v62, %s5517_s10  ;;  %v8750_v62 = vld [vmem:[#allocation31_spill] sm:$0xff] }
 0x3af   : > { %2700 = vrot.lane.b32.xlu0 %v8724_v54, %s5517_s10  ;;  %v8751_v3 = vpack.c.bf16 %v8749_v53, %v8750_v62 }
 0x3b2   : > { %2696 = vrot.lane.b32.xlu1 %v8727_v43, %s5517_s10  ;;  %v1782_v43 = vpack.c.bf16 %v8753_v45, %v8752_v5  ;;  %v8754_v45 = vld [vmem:[#allocation38_spill] sm:$0xff] }
 0x3b3   : > { %2704 = vrot.lane.b32.xlu0 %v8730_v1, %s5517_s10 }
 0x3b6   : > { %2712 = vrot.lane.b32.xlu1 %v8731_v57, %s5517_s10 }
 0x3b7   : > { %2710 = vrot.lane.b32.xlu0 %v8732_v34, %s5517_s10 }
 0x3b8   : > { %v6759_v58 = vpop.permute.xlu1 %2365 }
 0x3ba   : > { %2716 = vrot.lane.b32.xlu1 %v8733_v61, %s5517_s10 }
 0x3bb   : > { %2383 = vrot.lane.b32.xlu0 %v8734_v52, %s5514_s15 }
 0x3bc   : > { %v6769_v28 = vpop.permute.xlu1 %2389 }
 0x3be   : > { %2722 = vrot.lane.b32.xlu1 %v1778_v44, %s5517_s10 }
 0x3bf   : > { %2714 = vrot.lane.b32.xlu0 %v8737_v50, %s5517_s10  ;;  %v2095_v50 = vsel %vm665_vm2, %v6753_v14, %v6751_v11 }
 0x3c0   : > { %v6778_v29 = vpop.permute.xlu1 %2401 }
 0x3c2   : > { %2726 = vrot.lane.b32.xlu1 %v1780_v17, %s5517_s10 }
 0x3c3   : > { %2708 = vrot.lane.b32.xlu0 %v8738_v20, %s5517_s10 }
 0x3c4   : > { %v6785_v4 = vpop.permute.xlu0 %2363  ;;  %v6787_v23 = vpop.permute.xlu1 %2058 }
 0x3c6   : > { %2720 = vrot.lane.b32.xlu1 %v8741_v6, %s5517_s10 }
 0x3c7   : > { %2724 = vrot.lane.b32.xlu0 %v8742_v13, %s5517_s10 }
 0x3c8   : > { %v6797_v18 = vpop.permute.xlu0 %2391  ;;  %v2037_v59 = vpop.permute.xlu1 %2036 }
 0x3ca   : > { %2734 = vrot.lane.b32.xlu1 %v1784_v15, %s5517_s10 }
 0x3cb   : > { %2728 = vrot.lane.b32.xlu0 %v8745_v12, %s5517_s10 }
 0x3cc   : > { %v6806_v2 = vpop.permute.xlu0 %2387  ;;  %v6808_v51 = vpop.permute.xlu1 %2056 }
 0x3ce   : > { %2738 = vrot.lane.b32.xlu1 %v1786_v63, %s5517_s10 }
 0x3cf   : > { %2732 = vrot.lane.b32.xlu0 %v1783_v30, %s5517_s10 }
 0x3d0   : > { %v6816_v26 = vpop.permute.xlu0 %2399  ;;  %v6818_v27 = vpop.permute.xlu1 %2371 }
 0x3d2   : > { %2694 = vrot.lane.b32.xlu1 %v1770_v38, %s5517_s10 }
 0x3d3   : > { %2736 = vrot.lane.b32.xlu0 %v1785_v19, %s5517_s10 }
 0x3d4   : > { %v6825_v31 = vpop.permute.xlu1 %2395  ;;  %v6827_v24 = vpop.permute.xlu0 %2403 }
 0x3d6   : > { %2718 = vrot.lane.b32.xlu1 %v8748_v35, %s5517_s10 }
 0x3d7   : > { %2740 = vrot.lane.b32.xlu0 %v1787_v40, %s5517_s10  ;;  %v2088_v40 = vsel %vm665_vm2, %v6635_v56, %v6741_v22 }
 0x3d8   : > { %v2039_v37 = vpop.permute.xlu1 %2038  ;;  %v2055_v21 = vpop.permute.xlu0 %2054 }
 0x3d9   : > { %v2089_v46 = vsel %vm665_vm2, %v2037_v59, %v2039_v37  ;;  %v2097_v13 = vsel %vm665_vm2, %v2055_v21, %v6808_v51  ;;  %v2096_v32 = vsel %vm665_vm2, %v6751_v11, %v2055_v21 }
 0x3da   : > { %2742 = vrot.lane.b32.xlu1 %v1788_v7, %s5517_s10 }
 0x3db   : > { %2706 = vrot.lane.b32.xlu0 %v8751_v3, %s5517_s10 }
 0x3dc   : > { %v2075_v47 = vpop.permute.xlu1 %2074 }
 0x3dd   : > { %v6844_v54 = vpop.permute.xlu0 %2369 }
 0x3de   : > { %2324 = vperm.xlu1 %5041, %v2321_v9  }
 0x3df   : > { %2730 = vrot.lane.b32.xlu0 %v1782_v43, %s5517_s10  ;;  %v8755_v43 = vld [vmem:[#allocation37_spill] sm:$0xff] }
 0x3e0   : > { %v2047_v16 = vpop.permute.xlu1 %2046 }
 0x3e1   : > { %v6849_v42 = vpop.permute.xlu0 %2373 }
 0x3e2   : > { %2651 = vperm.xlu1 %5041, %v2321_v9  }
 0x3e3   : > { %1792 = vperm.xlu0 %5042, %v2321_v9  }
 0x3e4   : > { %v6851_v33 = vpop.permute.xlu1 %2082 }
 0x3e5   : > { %v6853_v1 = vpop.permute.xlu0 %2393 }
 0x3e7   : > { %1991 = vperm.xlu0 %5042, %v2321_v9  }
 0x3e8   : > { %v2043_v57 = vpop.permute.xlu1 %2042 }
 0x3e9   : > { %v2073_v34 = vpop.permute.xlu0 %2072 }
 0x3ea   : > { %v2104_v10 = vsel %vm665_vm2, %v2073_v34, %v2075_v47  ;;  %v8756_v34 = vld [vmem:[#allocation39_spill] sm:$0xff] }
 0x3eb   : > { %v2134_v11 = vsel %vm1799_vm8, %v2104_v10, 0 }
 0x3ec   : > { %v2079_v61 = vpop.permute.xlu1 %2078 }
 0x3ed   : > { %v2041_v52 = vpop.permute.xlu0 %2040 }
 0x3ee   : > { %v2090_v25 = vsel %vm665_vm2, %v2039_v37, %v2041_v52  ;;  %v2091_v49 = vsel %vm665_vm2, %v2041_v52, %v2043_v57 }
 0x3ef   : > { %2153 = vmatprep.subr.bf16.mxu1 %v2090_v25  ;;  %v2417_v25 = vsel %vm366_vm0, %v6759_v58, %v6776_v0 }
 0x3f0   : > { %2154 = vmatpush1.bf16.msra.mxu1 %v2089_v46  ;;  %v2063_v44 = vpop.permute.xlu1 %2062 }
 0x3f1   : > { %v2045_v17 = vpop.permute.xlu0 %2044  ;;  %2155 = vmatprep.subr.bf16.mxu1 %v2095_v50 }
 0x3f2   : > { %v2092_v20 = vsel %vm665_vm2, %v2043_v57, %v2045_v17  ;;  %v2093_v53 = vsel %vm665_vm2, %v2045_v17, %v2047_v16 }
 0x3f3   : > { %2194 = vmatprep.subr.bf16.mxu0 %v2092_v20 }
 0x3f4   : > { %2156 = vmatpush1.bf16.msra.mxu1 %v2094_v39  ;;  %2195 = vmatpush1.bf16.msra.mxu0 %v2091_v49  ;;  %v2061_v6 = vpop.permute.xlu1 %2060  ;;  %v8757_v39 = vld [vmem:[#allocation47_spill] sm:$0xff]  ;;  %v8758_v49 = vld [vmem:[#allocation46_spill] sm:$0xff] }
 0x3f5   : > { %2196 = vmatprep.subr.bf16.mxu0 %v2097_v13  ;;  %v2077_v59 = vpop.permute.xlu0 %2076  ;;  %v2099_v63 = vsel %vm665_vm2, %v2061_v6, %v2063_v44 }
 0x3f6   : > { %v2105_v55 = vsel %vm665_vm2, %v2075_v47, %v2077_v59  ;;  %v2106_v62 = vsel %vm665_vm2, %v2077_v59, %v2079_v61  ;;  %v2098_v47 = vsel %vm665_vm2, %v6808_v51, %v6787_v23  ;;  %v2427_v59 = vsel %vm366_vm0, %v6769_v28, %v6797_v18 }
 0x3f7   : > { %v2140_v9 = vsel %vm1799_vm8, %v2106_v62, 0 }
 0x3f8   : > { %2197 = vmatpush1.bf16.msra.mxu0 %v2096_v32  ;;  %v6869_v15 = vpop.permute.xlu1 %2377  ;;  %v2419_v32 = vsel %vm366_vm0, %v6844_v54, %v6818_v27 }
 0x3f9   : > { %v2081_v36 = vpop.permute.xlu0 %2080 }
 0x3fa   : > { %v2107_v56 = vsel %vm665_vm2, %v2079_v61, %v2081_v36  ;;  %v2411_v61 = vsel %vm366_vm0, %v8756_v34, %v8755_v43  ;;  %v2108_v51 = vsel %vm665_vm2, %v2081_v36, %v6851_v33  ;;  %v2426_v36 = vsel %vm366_vm0, %v6806_v2, %v6769_v28  ;;  %v8759_v2 = vld [vmem:[#allocation48_spill] sm:$0xff] }
 0x3fb   : > { %v2146_v50 = vsel %vm1799_vm8, %v2108_v51, 0 }
 0x3fc   : > { %v2067_v12 = vpop.permute.xlu1 %2066 }
 0x3fd   : > { %v2065_v14 = vpop.permute.xlu0 %2064 }
 0x3fe   : > { %v2100_v8 = vsel %vm665_vm2, %v2063_v44, %v2065_v14  ;;  %v2101_v7 = vsel %vm665_vm2, %v2065_v14, %v2067_v12  ;;  %v2416_v44 = vsel %vm366_vm0, %v6785_v4, %v6759_v58  ;;  %v2413_v4 = vsel %vm366_vm0, %v8754_v45, %v8758_v49 }
 0x3ff   : > { %2157 = vmatprep.subr.bf16.mxu1 %v2100_v8  ;;  %v2431_v14 = vsel %vm366_vm0, %v6816_v26, %v6778_v29 }
 0x400   : > { %2158 = vmatpush1.bf16.msra.mxu1 %v2099_v63  ;;  %v2071_v30 = vpop.permute.xlu1 %2070  ;;  %v2432_v63 = vsel %vm366_vm0, %v6778_v29, %v6827_v24  ;;  %v2461_v28 = vsel %vm1799_vm8, %v2431_v14, 0  ;;  %v2415_v29 = vsel %vm366_vm0, %v8757_v39, %v8759_v2 }
 0x401   : > { %v6875_v60 = vpop.permute.xlu0 %2379  ;;  %4882 = vmatprep.subr.msk.bf16.mxu1 %vm1799_vm8, %v2105_v55  ;;  %v2420_v55 = vsel %vm366_vm0, %v6818_v27, %v6849_v42 }
 0x402   : > { %v2422_v20 = vsel %vm366_vm0, %v6869_v15, %v6875_v60 }
 0x404   : > { %2160 = vmatpush1.bf16.msra.mxu1 %v2134_v11  ;;  %v6879_v38 = vpop.permute.xlu1 %2381 }
 0x405   : > { %v2376_v19 = vpop.permute.xlu0 %2375  ;;  %2233 = vmatprep.subr.bf16.mxu1 %v6741_v22 }
 0x406   : > { %v2421_v58 = vsel %vm366_vm0, %v2376_v19, %v6869_v15 }
 0x407   : > { %4883 = vmatmul.mubr.msk.bf16.vlgmr.msra.gmra.mrb[28].mxu1 %vm1795_vm9, %v6458_v48 }
 0x408   : > { %2234 = vmatpush1.bf16.msra.mxu1 %v2088_v40  ;;  %v6887_v35 = vpop.permute.xlu1 %2385  ;;  %2265 = vmatprep.mubr.bf16.mxu1 %v8693_v41 }
 0x409   : > { %v2069_v37 = vpop.permute.xlu0 %2068  ;;  %2235 = vmatprep.subr.bf16.mxu1 %v2047_v16  ;;  %v2412_v16 = vsel %vm366_vm0, %v8755_v43, %v8754_v45 }
 0x40a   : > { %v2102_v21 = vsel %vm665_vm2, %v2067_v12, %v2069_v37  ;;  %v2418_v12 = vsel %vm366_vm0, %v6776_v0, %v6844_v54 }
 0x40b   : > { %2198 = vmatprep.subr.bf16.mxu0 %v2102_v21 }
 0x40c   : > { %2199 = vmatpush1.bf16.msra.mxu0 %v2101_v7  ;;  %2236 = vmatpush1.bf16.msra.mxu1 %v2093_v53  ;;  %v6894_v3 = vpop.permute.xlu1 %2405  ;;  %v2423_v7 = vsel %vm366_vm0, %v6875_v60, %v6879_v38  ;;  %v2429_v53 = vsel %vm366_vm0, %v6853_v1, %v6825_v31 }
 0x40d   : > { %4884 = vmatprep.subr.msk.bf16.mxu0 %vm1799_vm8, %v2107_v56  ;;  %v6898_v22 = vpop.permute.xlu0 %2397  ;;  %2237 = vmatprep.subr.bf16.mxu1 %v6787_v23  ;;  %v2103_v23 = vsel %vm665_vm2, %v2069_v37, %v2071_v30 }
 0x40e   : > { %v2430_v60 = vsel %vm366_vm0, %v6825_v31, %v6898_v22 }
 0x410   : > { %2201 = vmatpush1.bf16.msra.mxu0 %v2140_v9  ;;  %2238 = vmatpush1.bf16.msra.mxu1 %v2098_v47  ;;  %v6905_v5 = vpop.permute.xlu1 %2409  ;;  %v2428_v9 = vsel %vm366_vm0, %v6797_v18, %v6853_v1 }
 0x411   : > { %2478 = vmatprep.subr.bf16.mxu0 %v2412_v16  ;;  %v6910_v57 = vpop.permute.xlu0 %2407  ;;  %2239 = vmatprep.subr.bf16.mxu1 %v2071_v30 }
 0x412   : > { %v2435_v47 = vsel %vm366_vm0, %v6910_v57, %v6905_v5  ;;  %v2434_v43 = vsel %vm366_vm0, %v6894_v3, %v6910_v57 }
 0x413   : > { %4885 = vmatmul.mubr.msk.bf16.vlgmr.msra.gmra.mrb[32].mxu0 %vm1795_vm9, %v6458_v48 }
 0x414   : > { %2240 = vmatpush1.bf16.msra.mxu1 %v2103_v23  ;;  %2479 = vmatpush1.bf16.msra.mxu0 %v2411_v61  ;;  %v6920_v52 = vpop.permute.xlu1 %2688 }
 0x415   : > { %2480 = vmatprep.subr.bf16.mxu0 %v2417_v25  ;;  %v6925_v46 = vpop.permute.xlu0 %2686  ;;  %4886 = vmatprep.subr.msk.bf16.mxu1 %vm1799_vm8, %v6851_v33  ;;  %v2414_v33 = vsel %vm366_vm0, %v8758_v49, %v8757_v39 }
 0x416   : > { %2510 = vmatprep.mubr.bf16.mxu0 %v8693_v41 }
 0x418   : > { %2242 = vmatpush1.bf16.msra.mxu1 %v2146_v50  ;;  %2481 = vmatpush1.bf16.msra.mxu0 %v2416_v44  ;;  %v6934_v17 = vpop.permute.xlu1 %2692 }
 0x419   : > { %2482 = vmatprep.subr.bf16.mxu0 %v2422_v20  ;;  %v6942_v6 = vpop.permute.xlu0 %2690  ;;  %2519 = vmatprep.subr.bf16.mxu1 %v2414_v33 }
 0x41a   : > { %v2747_v1 = vsel %vm1169_vm3, %v6942_v6, %v6934_v17  ;;  %v2746_v57 = vsel %vm1169_vm3, %v6920_v52, %v6942_v6 }
 0x41b   : > { %4887 = vmatmul.mubr.msk.bf16.vlgmr.msra.gmra.mrb[32].mxu1 %vm1795_vm9, %v6458_v48 }
 0x41c   : > { %2483 = vmatpush1.bf16.msra.mxu0 %v2421_v58  ;;  %2520 = vmatpush1.bf16.msra.mxu1 %v2413_v4  ;;  %v6951_v13 = vpop.permute.xlu1 %2698 }
 0x41d   : > { %2484 = vmatprep.subr.bf16.mxu0 %v2427_v59  ;;  %v6959_v15 = vpop.permute.xlu0 %2684  ;;  %2521 = vmatprep.subr.bf16.mxu1 %v2419_v32 }
 0x41e   : > { %2551 = vmatprep.mubr.bf16.mxu1 %v8693_v41  ;;  %v2744_v16 = vsel %vm1169_vm3, %v6959_v15, %v6925_v46 }
 0x420   : > { %2485 = vmatpush1.bf16.msra.mxu0 %v2426_v36  ;;  %2522 = vmatpush1.bf16.msra.mxu1 %v2418_v12  ;;  %v6971_v8 = vpop.permute.xlu1 %2702 }
 0x421   : > { %4888 = vmatprep.subr.msk.bf16.mxu0 %vm1799_vm8, %v2432_v63  ;;  %v6977_v10 = vpop.permute.xlu0 %2700 }
 0x422   : > { %v2750_v61 = vsel %vm1169_vm3, %v6951_v13, %v6977_v10 }
 0x424   : > { %2487 = vmatpush1.bf16.msra.mxu0 %v2461_v28  ;;  %v6980_v0 = vpop.permute.xlu1 %2696 }
 0x425   : > { %2560 = vmatprep.subr.bf16.mxu0 %v8759_v2  ;;  %v6983_v26 = vpop.permute.xlu0 %2704  ;;  %v2749_v51 = vsel %vm1169_vm3, %v6980_v0, %v6951_v13 }
 0x426   : > { %v2752_v34 = vsel %vm1169_vm3, %v6971_v8, %v6983_v26 }
 0x427   : > { %4889 = vmatmul.mubr.msk.bf16.vlgmr.msra.gmra.mrb[36].mxu0 %vm1795_vm9, %v6458_v48 }
 0x428   : > { %2561 = vmatpush1.bf16.msra.mxu0 %v2415_v29  ;;  %v6990_v54 = vpop.permute.xlu1 %2712  ;;  %2592 = vmatprep.mubr.bf16.mxu0 %v8693_v41 }
 0x429   : > { %2562 = vmatprep.subr.bf16.mxu0 %v6849_v42  ;;  %v6994_v30 = vpop.permute.xlu0 %2710 }
 0x42a   : > { %v2755_v44 = vsel %vm1169_vm3, %v6994_v30, %v6990_v54 }
 0x42c   : > { %2563 = vmatpush1.bf16.msra.mxu0 %v2420_v55  ;;  %v6999_v11 = vpop.permute.xlu1 %2716 }
 0x42d   : > { %2564 = vmatprep.subr.bf16.mxu0 %v6887_v35  ;;  %v2384_v19 = vpop.permute.xlu0 %2383 }
 0x42e   : > { %v2424_v40 = vsel %vm366_vm0, %v6879_v38, %v2384_v19  ;;  %v2425_v37 = vsel %vm366_vm0, %v2384_v19, %v6887_v35  ;;  %v7006_v21 = vpop.f32.mrb[24].mxu0  ;;  %v2433_v38 = vsel %vm366_vm0, %v6827_v24, %v6894_v3  ;;  %v2473_v24 = vsel %vm1799_vm8, %v2435_v47, 0 }
 0x42f   : > { %2523 = vmatprep.subr.bf16.mxu1 %v2424_v40  ;;  %v7011_v27 = vpop.f32.mrb[25].mxu0  ;;  %v2467_v31 = vsel %vm1799_vm8, %v2433_v38, 0  ;;  %v2745_v3 = vsel %vm1169_vm3, %v6925_v46, %v6920_v52  ;;  %v2751_v52 = vsel %vm1169_vm3, %v6977_v10, %v6971_v8 }
 0x430   : > { %2524 = vmatpush1.bf16.msra.mxu1 %v2423_v7  ;;  %2565 = vmatpush1.bf16.msra.mxu0 %v2425_v37  ;;  %v2723_v42 = vpop.permute.xlu1 %2722  ;;  %v1856_v62 = vpop.f32.mrb[26].mxu0 }
 0x431   : > { %2566 = vmatprep.subr.bf16.mxu0 %v6898_v22  ;;  %v2715_v35 = vpop.permute.xlu0 %2714  ;;  %2525 = vmatprep.subr.bf16.mxu1 %v2429_v53  ;;  %v1857_v56 = vpop.f32.mrb[27].mxu0 }
 0x432   : > { %v2757_v46 = vsel %vm1169_vm3, %v2715_v35, %v6999_v11  ;;  %v2756_v39 = vsel %vm1169_vm3, %v6990_v54, %v2715_v35 }
 0x434   : > { %2526 = vmatpush1.bf16.msra.mxu1 %v2428_v9  ;;  %2567 = vmatpush1.bf16.msra.mxu0 %v2430_v60  ;;  %v2727_v45 = vpop.permute.xlu1 %2726 }
 0x435   : > { %4892 = vmatprep.subr.msk.bf16.mxu0 %vm1799_vm8, %v6905_v5  ;;  %v2709_v18 = vpop.permute.xlu0 %2708  ;;  %4890 = vmatprep.subr.msk.bf16.mxu1 %vm1799_vm8, %v2434_v43 }
 0x436   : > { %v2754_v20 = vsel %vm1169_vm3, %v2709_v18, %v6994_v30 }
 0x438   : > { %2528 = vmatpush1.bf16.msra.mxu1 %v2467_v31  ;;  %2569 = vmatpush1.bf16.msra.mxu0 %v2473_v24  ;;  %v2721_v5 = vpop.permute.xlu1 %2720  ;;  %v8760_v24 = vld [vmem:[#allocation12_spill] sm:$0xff] }
 0x439   : > { %2852 = vmatprep.subr.bf16.mxu0 %v2747_v1  ;;  %v2725_v22 = vpop.permute.xlu0 %2724  ;;  %2811 = vmatprep.subr.bf16.mxu1 %v2745_v3  ;;  %v2759_v4 = vsel %vm1169_vm3, %v2721_v5, %v2723_v42  ;;  %v8761_v3 = vld [vmem:[#allocation11_spill] sm:$0xff] }
 0x43a   : > { %v2760_v33 = vsel %vm1169_vm3, %v2723_v42, %v2725_v22  ;;  %v2761_v13 = vsel %vm1169_vm3, %v2725_v22, %v2727_v45 }
 0x43b   : > { %4891 = vmatmul.mubr.msk.bf16.vlgmr.msra.gmra.mrb[36].mxu1 %vm1795_vm9, %v6458_v48  ;;  %4893 = vmatmul.mubr.msk.bf16.vlgmr.msra.gmra.mrb[40].mxu0 %vm1795_vm9, %v6458_v48 }
 0x43c   : > { %2812 = vmatpush1.bf16.msra.mxu1 %v2744_v16  ;;  %2853 = vmatpush1.bf16.msra.mxu0 %v2746_v57  ;;  %v2735_v25 = vpop.permute.xlu1 %2734 }
 0x43d   : > { %2854 = vmatprep.subr.bf16.mxu0 %v2752_v34  ;;  %v7059_v23 = vpop.permute.xlu0 %2728  ;;  %2813 = vmatprep.subr.bf16.mxu1 %v2750_v61  ;;  %v8764_v61 = vld [vmem:[#allocation16_spill] sm:$0xff] }
 0x43e   : > { %2843 = vmatprep.mubr.bf16.mxu1 %v8693_v41  ;;  %2884 = vmatprep.mubr.bf16.mxu0 %v8693_v41  ;;  %v2762_v49 = vsel %vm1169_vm3, %v2727_v45, %v7059_v23 }
 0x440   : > { %2814 = vmatpush1.bf16.msra.mxu1 %v2749_v51  ;;  %2855 = vmatpush1.bf16.msra.mxu0 %v2751_v52  ;;  %v2739_v58 = vpop.permute.xlu1 %2738  ;;  %v8765_v51 = vld [vmem:[#allocation15_spill] sm:$0xff] }
 0x441   : > { %2856 = vmatprep.subr.bf16.mxu0 %v2757_v46  ;;  %v2733_v50 = vpop.permute.xlu0 %2732  ;;  %2815 = vmatprep.subr.bf16.mxu1 %v2755_v44 }
 0x442   : > { %v2764_v59 = vsel %vm1169_vm3, %v2733_v50, %v2735_v25 }
 0x443   : > { %v2794_v14 = vsel %vm1799_vm8, %v2764_v59, 0 }
 0x444   : > { %2816 = vmatpush1.bf16.msra.mxu1 %v2754_v20  ;;  %2857 = vmatpush1.bf16.msra.mxu0 %v2756_v39  ;;  %v2695_v63 = vpop.permute.xlu1 %2694 }
 0x445   : > { %2858 = vmatprep.subr.bf16.mxu0 %v2762_v49  ;;  %v2737_v6 = vpop.permute.xlu0 %2736  ;;  %2817 = vmatprep.subr.bf16.mxu1 %v2760_v33  ;;  %v2748_v2 = vsel %vm1169_vm3, %v6934_v17, %v2695_v63 }
 0x446   : > { %v2766_v32 = vsel %vm1169_vm3, %v2737_v6, %v2739_v58  ;;  %v2765_v15 = vsel %vm1169_vm3, %v2735_v25, %v2737_v6 }
 0x447   : > { %v2800_v8 = vsel %vm1799_vm8, %v2766_v32, 0 }
 0x448   : > { %2818 = vmatpush1.bf16.msra.mxu1 %v2759_v4  ;;  %2859 = vmatpush1.bf16.msra.mxu0 %v2761_v13  ;;  %v2719_v37 = vpop.permute.xlu1 %2718 }
 0x449   : > { %v2741_v36 = vpop.permute.xlu0 %2740  ;;  %4894 = vmatprep.subr.msk.bf16.mxu1 %vm1799_vm8, %v2765_v15  ;;  %v2758_v17 = vsel %vm1169_vm3, %v6999_v11, %v2719_v37 }
 0x44a   : > { %v2767_v12 = vsel %vm1169_vm3, %v2739_v58, %v2741_v36 }
 0x44b   : > { %4896 = vmatprep.subr.msk.bf16.mxu0 %vm1799_vm8, %v2767_v12 }
 0x44c   : > { %2820 = vmatpush1.bf16.msra.mxu1 %v2794_v14  ;;  %2861 = vmatpush1.bf16.msra.mxu0 %v2800_v8  ;;  %v2743_v53 = vpop.permute.xlu1 %2742 }
 0x44d   : > { %2893 = vmatprep.subr.bf16.mxu1 %v2695_v63  ;;  %v1934_v10 = vpop.f32.mrb[28].mxu0  ;;  %v2707_v28 = vpop.permute.xlu0 %2706  ;;  %v2768_v35 = vsel %vm1169_vm3, %v2741_v36, %v2743_v53 }
 0x44e   : > { %v1936_v0 = vpop.f32.mrb[29].mxu0  ;;  %v2753_v7 = vsel %vm1169_vm3, %v6983_v26, %v2707_v28  ;;  %v2806_v56 = vsel %vm1799_vm8, %v2768_v35, 0 }
 0x44f   : > { %4895 = vmatmul.mubr.msk.bf16.vlgmr.msra.gmra.mrb[40].mxu1 %vm1795_vm9, %v6458_v48  ;;  %4897 = vmatmul.mubr.msk.bf16.vlgmr.msra.gmra.mrb[44].mxu0 %vm1795_vm9, %v6458_v48  ;;  %v1893_v29 = vpop.f32.mrb[24].mxu1  ;;  %v1938_v54 = vpop.f32.mrb[30].mxu0 }
 0x450   : > { %2894 = vmatpush1.bf16.msra.mxu1 %v2748_v2  ;;  %v1895_v30 = vpop.f32.mrb[25].mxu1  ;;  %2925 = vmatprep.mubr.bf16.mxu1 %v8693_v41  ;;  %v1939_v55 = vpop.f32.mrb[31].mxu0 }
 0x451   : > { %2895 = vmatprep.subr.bf16.mxu1 %v2707_v28  ;;  %v1897_v19 = vpop.f32.mrb[26].mxu1  ;;  %3297 = vmatprep.mubr.bf16.mxu0 %v8693_v41  ;;  %v2731_v42 = vpop.permute.xlu0 %2730 }
 0x452   : > { %v1898_v40 = vpop.f32.mrb[27].mxu1  ;;  %v2763_v62 = vsel %vm1169_vm3, %v7059_v23, %v2731_v42 }
 0x454   : > { %2896 = vmatpush1.bf16.msra.mxu1 %v2753_v7 }
 0x455   : > { %2897 = vmatprep.subr.bf16.mxu1 %v2719_v37 }
 0x458   : > { %2898 = vmatpush1.bf16.msra.mxu1 %v2758_v17 }
 0x459   : > { %2899 = vmatprep.subr.bf16.mxu1 %v2731_v42 }
 0x45c   : > { %2900 = vmatpush1.bf16.msra.mxu1 %v2763_v62 }
 0x45d   : > { %4898 = vmatprep.subr.msk.bf16.mxu1 %vm1799_vm8, %v2743_v53  ;;  %v7125_v25 = vpop.permute.xlu1 %2324 }
 0x460   : > { %2902 = vmatpush1.bf16.msra.mxu1 %v2806_v56 }
 0x461   : > { %v7127_v46 = vpop.permute.xlu1 %2651 }
 0x462   : > { %v1793_v26 = vpop.permute.xlu0 %1792 }
 0x463   : > { %v1896_v9 = vadd.f32 %v1895_v30, %v1793_v26  ;;  %4899 = vmatmul.mubr.msk.bf16.vlgmr.msra.gmra.mrb[44].mxu1 %vm1795_vm9, %v6458_v48  ;;  %v1855_v11 = vadd.f32 %v7011_v27, %v1793_v26  ;;  %v1853_v60 = vadd.f32 %v7006_v21, %v1793_v26  ;;  %v1894_v38 = vadd.f32 %v1893_v29, %v1793_v26  ;;  %v8762_v48 = vld [vmem:[#allocation14_spill] sm:$0xff]  ;;  %v8763_v21 = vld [vmem:[#allocation13_spill] sm:$0xff] }
 0x464   : > { %3338 = vmatprep.mubr.bf16.mxu1 %v8693_v41  ;;  %v1937_v43 = vadd.f32 %v1936_v0, %v1793_v26  ;;  %v1935_v18 = vadd.f32 %v1934_v10, %v1793_v26 }
 0x465   : > { %v1942_v47 = vmax.f32 %v1855_v11, 0.0  ;;  %v1941_v45 = vmax.f32 %v1853_v60, 0.0  ;;  %v1944_v31 = vmax.f32 %v1896_v9, 0.0  ;;  %v1943_v5 = vmax.f32 %v1894_v38, 0.0 }
 0x466   : > { %v1946_v57 = vmax.f32 %v1937_v43, 0.0  ;;  %v1945_v34 = vmax.f32 %v1935_v18, 0.0  ;;  %v1992_v44 = vpop.permute.xlu0 %1991 }
 0x467   : > { %v1948_v1 = vmul.f32 %v1942_v47, %v8760_v24  ;;  %v1947_v22 = vmul.f32 %v1941_v45, %v8761_v3  ;;  %v1950_v27 = vmul.f32 %v1944_v31, %v8762_v48  ;;  %v1949_v16 = vmul.f32 %v1943_v5, %v8763_v21 }
 0x468   : > { %v1952_v23 = vmul.f32 %v1946_v57, %v8764_v61  ;;  %v1951_v52 = vmul.f32 %v1945_v34, %v8765_v51 }
 0x469   : > { %1961 = vrot.lane.b32.xlu1 %v1948_v1, %s5519_s22  ;;  %1959 = vrot.lane.b32.xlu0 %v1947_v22, %s5519_s22 }
 0x46d   : > { %1965 = vrot.lane.b32.xlu1 %v1950_v27, %s5519_s22  ;;  %1963 = vrot.lane.b32.xlu0 %v1949_v16, %s5519_s22 }
 0x471   : > { %1969 = vrot.lane.b32.xlu1 %v1952_v23, %s5519_s22  ;;  %1967 = vrot.lane.b32.xlu0 %v1951_v52, %s5519_s22 }
 0x4da   : > { %v2185_v50 = vpop.f32.mrb[28].mxu1 }
 0x4db   : > { %v2186_v20 = vadd.f32 %v2185_v50, %v1992_v44  ;;  %v1962_v39 = vpop.permute.xlu1 %1961  ;;  %v1960_v49 = vpop.permute.xlu0 %1959 }
 0x4dc   : > { %v1971_v33 = vsel %vm324_vm4, %v1960_v49, %v1962_v39  ;;  %1982 = vst.msk [vmem:[#allocation3] sm:$0xff] %vm590_vm6, %v1960_v49  ;;  %v2187_v6 = vpop.f32.mrb[29].mxu1 }
 0x4dd   : > { %v2274_v58 = vmax.f32 %v2186_v20, 0.0  ;;  %1983 = vst [vmem:[#allocation3 + $0x8] sm:$0xff] %v1971_v33  ;;  %v2188_v4 = vadd.f32 %v2187_v6, %v1992_v44  ;;  %v2189_v13 = vpop.f32.mrb[30].mxu1 }
 0x4de   : > { %v2190_v59 = vpop.f32.mrb[31].mxu1 }
 0x4df   : > { %v2280_v32 = vmul.f32 %v2274_v58, %v8761_v3  ;;  %v2275_v15 = vmax.f32 %v2188_v4, 0.0  ;;  %v1966_v36 = vpop.permute.xlu1 %1965  ;;  %v1964_v12 = vpop.permute.xlu0 %1963 }
 0x4e0   : > { %v1972_v14 = vsel %vm324_vm4, %v1962_v39, %v1964_v12  ;;  %v1973_v8 = vsel %vm324_vm4, %v1964_v12, %v1966_v36 }
 0x4e1   : > { %v2281_v63 = vmul.f32 %v2275_v15, %v8760_v24  ;;  %1984 = vst [vmem:[#allocation3 + $0x10] sm:$0xff] %v1972_v14  ;;  %1985 = vst [vmem:[#allocation3 + $0x18] sm:$0xff] %v1973_v8  ;;  %2292 = vrot.lane.b32.xlu0 %v2280_v32, %s5519_s22  ;;  %v5223_v45 = vpack.i.bf16 %v1972_v14, %v1971_v33 }
 0x4e3   : > { %2294 = vrot.lane.b32.xlu1 %v2281_v63, %s5519_s22  ;;  %v1970_v10 = vpop.permute.xlu1 %1969  ;;  %v1968_v28 = vpop.permute.xlu0 %1967  ;;  %v3000_v43 = vld [vmem:[#allocation3] sm:$0xff] }
 0x4e4   : > { %v1974_v0 = vsel %vm324_vm4, %v1966_v36, %v1968_v28  ;;  %v1975_v2 = vsel %vm324_vm4, %v1968_v28, %v1970_v10  ;;  %v5238_v5 = vpack.i.bf16 %v3000_v43, %v1973_v8 }
 0x4e5   : > { %1986 = vst [vmem:[#allocation3 + $0x20] sm:$0xff] %v1974_v0  ;;  %1987 = vst.msk [vmem:[#allocation3 + $0x28] sm:$0xff] %vm596_vm7, %v1975_v2  ;;  %v5248_v52 = vpack.i.bf16 %v1974_v0, %v1973_v8 }
 0x4e6   : > { %v2226_v29 = vpop.f32.mrb[32].mxu0 }
 0x4e7   : > { %v2227_v54 = vadd.f32 %v2226_v29, %v1992_v44  ;;  %v2228_v30 = vpop.f32.mrb[33].mxu0 }
 0x4e8   : > { %v2229_v55 = vadd.f32 %v2228_v30, %v1992_v44  ;;  %v2230_v19 = vpop.f32.mrb[34].mxu0 }
 0x4e9   : > { %v2276_v40 = vmax.f32 %v2227_v54, 0.0  ;;  %v2231_v37 = vpop.f32.mrb[35].mxu0 }
 0x4ea   : > { %v2277_v7 = vmax.f32 %v2229_v55, 0.0 }
 0x4eb   : > { %v2282_v17 = vmul.f32 %v2276_v40, %v8763_v21 }
 0x4ec   : > { %v2283_v42 = vmul.f32 %v2277_v7, %v8762_v48  ;;  %v3005_v50 = vld [vmem:[#allocation3 + $0x28] sm:$0xff] }
 0x4ed   : > { %2296 = vrot.lane.b32.xlu0 %v2282_v17, %s5519_s22  ;;  %v5253_v20 = vpack.i.bf16 %v3005_v50, %v1974_v0  ;;  %v5263_v15 = vpack.i.bf16 %v3000_v43, %v3005_v50 }
 0x4ee   : > { %v2267_v53 = vpop.f32.mrb[32].mxu1  ;;  %2298 = vrot.lane.b32.xlu1 %v2283_v42, %s5519_s22 }
 0x4ef   : > { %v2268_v62 = vadd.f32 %v2267_v53, %v1992_v44  ;;  %v2269_v35 = vpop.f32.mrb[33].mxu1 }
 0x4f0   : > { %v2270_v56 = vadd.f32 %v2269_v35, %v1992_v44  ;;  %v2271_v26 = vpop.f32.mrb[34].mxu1 }
 0x4f1   : > { %v2278_v9 = vmax.f32 %v2268_v62, 0.0  ;;  %v2272_v11 = vpop.f32.mrb[35].mxu1 }
 0x4f2   : > { %v2279_v60 = vmax.f32 %v2270_v56, 0.0 }
 0x4f3   : > { %v2284_v38 = vmul.f32 %v2278_v9, %v8765_v51 }
 0x4f4   : > { %v2285_v47 = vmul.f32 %v2279_v60, %v8764_v61 }
 0x4f5   : > { %2300 = vrot.lane.b32.xlu0 %v2284_v38, %s5519_s22 }
 0x4f6   : > { %2302 = vrot.lane.b32.xlu1 %v2285_v47, %s5519_s22 }
 0x4f9   : > { %5224 = vrot.lane.b32.xlu0 %v5223_v45, %s5514_s15 }
 0x4fa   : > { %v2512_v18 = vpop.f32.mrb[36].mxu0  ;;  %5234 = vrot.lane.b32.xlu1 %v5223_v45, %s5516_s23 }
 0x4fb   : > { %v2513_v31 = vadd.f32 %v2512_v18, %v7125_v25  ;;  %v2514_v1 = vpop.f32.mrb[37].mxu0 }
 0x4fc   : > { %v2515_v22 = vadd.f32 %v2514_v1, %v7125_v25  ;;  %v2516_v27 = vpop.f32.mrb[38].mxu0 }
 0x4fd   : > { %v2601_v16 = vmax.f32 %v2513_v31, 0.0  ;;  %5229 = vrot.lane.b32.xlu0 %v5223_v45, %s5517_s10  ;;  %v2517_v57 = vpop.f32.mrb[39].mxu0 }
 0x4fe   : > { %5239 = vrot.lane.b32.xlu1 %v5238_v5, %s5514_s15  ;;  %v2602_v23 = vmax.f32 %v2515_v22, 0.0 }
 0x4ff   : > { %v2607_v34 = vmul.f32 %v2601_v16, %v8761_v3 }
 0x500   : > { %v2608_v44 = vmul.f32 %v2602_v23, %v8760_v24 }
 0x501   : > { %2619 = vrot.lane.b32.xlu0 %v2607_v34, %s5519_s22 }
 0x502   : > { %5244 = vrot.lane.b32.xlu1 %v5238_v5, %s5517_s10 }
 0x505   : > { %5249 = vrot.lane.b32.xlu0 %v5248_v52, %s5516_s23 }
 0x506   : > { %2621 = vrot.lane.b32.xlu1 %v2608_v44, %s5519_s22 }
 0x50a   : > { %5254 = vrot.lane.b32.xlu1 %v5253_v20, %s5514_s15 }
 0x50e   : > { %v2553_v39 = vpop.f32.mrb[36].mxu1  ;;  %v2594_v49 = vpop.f32.mrb[40].mxu0  ;;  %5259 = vrot.lane.b32.xlu1 %v5253_v20, %s5517_s10 }
 0x50f   : > { %v2554_v33 = vadd.f32 %v2553_v39, %v7125_v25  ;;  %v2595_v6 = vadd.f32 %v2594_v49, %v7125_v25  ;;  %v2555_v58 = vpop.f32.mrb[37].mxu1  ;;  %v2596_v4 = vpop.f32.mrb[41].mxu0 }
 0x510   : > { %v2556_v13 = vadd.f32 %v2555_v58, %v7125_v25  ;;  %v2597_v59 = vadd.f32 %v2596_v4, %v7125_v25  ;;  %v2557_v32 = vpop.f32.mrb[38].mxu1  ;;  %v2598_v36 = vpop.f32.mrb[42].mxu0 }
 0x511   : > { %v2603_v12 = vmax.f32 %v2554_v33, 0.0  ;;  %v2558_v14 = vpop.f32.mrb[39].mxu1  ;;  %v2599_v8 = vpop.f32.mrb[43].mxu0  ;;  %v2605_v28 = vmax.f32 %v2595_v6, 0.0 }
 0x512   : > { %v2604_v63 = vmax.f32 %v2556_v13, 0.0  ;;  %5264 = vrot.lane.b32.xlu1 %v5263_v15, %s5516_s23  ;;  %v2606_v2 = vmax.f32 %v2597_v59, 0.0 }
 0x513   : > { %v2609_v10 = vmul.f32 %v2603_v12, %v8763_v21  ;;  %v2611_v25 = vmul.f32 %v2605_v28, %v8765_v51 }
 0x514   : > { %v2610_v0 = vmul.f32 %v2604_v63, %v8762_v48  ;;  %v2612_v29 = vmul.f32 %v2606_v2, %v8764_v61 }
 0x515   : > { %2623 = vrot.lane.b32.xlu0 %v2609_v10, %s5519_s22 }
 0x516   : > { %2625 = vrot.lane.b32.xlu1 %v2610_v0, %s5519_s22 }
 0x519   : > { %2627 = vrot.lane.b32.xlu0 %v2611_v25, %s5519_s22 }
 0x51a   : > { %2629 = vrot.lane.b32.xlu1 %v2612_v29, %s5519_s22 }
 0x522   : > { %v2845_v54 = vpop.f32.mrb[40].mxu1  ;;  %v2886_v30 = vpop.f32.mrb[44].mxu0 }
 0x523   : > { %v2846_v55 = vadd.f32 %v2845_v54, %v7127_v46  ;;  %v2887_v19 = vadd.f32 %v2886_v30, %v7127_v46  ;;  %v2847_v40 = vpop.f32.mrb[41].mxu1  ;;  %v2888_v37 = vpop.f32.mrb[45].mxu0 }
 0x524   : > { %v2848_v7 = vadd.f32 %v2847_v40, %v7127_v46  ;;  %v2889_v17 = vadd.f32 %v2888_v37, %v7127_v46  ;;  %v2849_v42 = vpop.f32.mrb[42].mxu1  ;;  %v2890_v53 = vpop.f32.mrb[46].mxu0 }
 0x525   : > { %v2934_v62 = vmax.f32 %v2846_v55, 0.0  ;;  %v2850_v35 = vpop.f32.mrb[43].mxu1  ;;  %v2891_v56 = vpop.f32.mrb[47].mxu0  ;;  %v2936_v11 = vmax.f32 %v2887_v19, 0.0 }
 0x526   : > { %v2935_v26 = vmax.f32 %v2848_v7, 0.0  ;;  %v2937_v38 = vmax.f32 %v2889_v17, 0.0 }
 0x527   : > { %v2940_v9 = vmul.f32 %v2934_v62, %v8761_v3  ;;  %v2942_v47 = vmul.f32 %v2936_v11, %v8763_v21 }
 0x528   : > { %v2941_v60 = vmul.f32 %v2935_v26, %v8760_v24  ;;  %v2943_v45 = vmul.f32 %v2937_v38, %v8762_v48 }
 0x529   : > { %2952 = vrot.lane.b32.xlu0 %v2940_v9, %s5519_s22 }
 0x52a   : > { %2954 = vrot.lane.b32.xlu1 %v2941_v60, %s5519_s22 }
 0x52d   : > { %2956 = vrot.lane.b32.xlu0 %v2942_v47, %s5519_s22 }
 0x52e   : > { %2958 = vrot.lane.b32.xlu1 %v2943_v45, %s5519_s22 }
 0x536   : > { %v2927_v43 = vpop.f32.mrb[44].mxu1 }
 0x537   : > { %v2928_v18 = vadd.f32 %v2927_v43, %v7127_v46  ;;  %v2929_v3 = vpop.f32.mrb[45].mxu1 }
 0x538   : > { %v2930_v31 = vadd.f32 %v2929_v3, %v7127_v46  ;;  %v2931_v24 = vpop.f32.mrb[46].mxu1 }
 0x539   : > { %v2938_v1 = vmax.f32 %v2928_v18, 0.0  ;;  %v2932_v22 = vpop.f32.mrb[47].mxu1 }
 0x53a   : > { %v2939_v5 = vmax.f32 %v2930_v31, 0.0 }
 0x53b   : > { %v2944_v27 = vmul.f32 %v2938_v1, %v8765_v51 }
 0x53c   : > { %v2945_v21 = vmul.f32 %v2939_v5, %v8764_v61 }
 0x53d   : > { %2960 = vrot.lane.b32.xlu0 %v2944_v27, %s5519_s22 }
 0x53e   : > { %2962 = vrot.lane.b32.xlu1 %v2945_v21, %s5519_s22 }
 0x553   : > { %v2293_v48 = vpop.permute.xlu0 %2292 }
 0x554   : > { %2315 = vst.msk [vmem:[#allocation3 + $0x30] sm:$0xff] %vm590_vm6, %v2293_v48 }
 0x555   : > { %v2295_v16 = vpop.permute.xlu1 %2294 }
 0x556   : > { %v7195_v57 = vsel %vm324_vm4, %v2293_v48, %v2295_v16 }
 0x557   : > { %8766 = vst [vmem:[#allocation53_spill] sm:$0xff] %v7195_v57 }
 0x55b   : > { %v7205_v52 = vld [vmem:[#allocation3 + $0x30] sm:$0xff] }
 0x55c   : > { %8769 = vst [vmem:[#allocation21_spill] sm:$0xff] %v7205_v52 }
 0x55f   : > { %v2297_v46 = vpop.permute.xlu0 %2296 }
 0x560   : > { %v7198_v34 = vsel %vm324_vm4, %v2295_v16, %v2297_v46  ;;  %v2299_v23 = vpop.permute.xlu1 %2298 }
 0x561   : > { %8767 = vst [vmem:[#allocation18_spill] sm:$0xff] %v7198_v34  ;;  %v7201_v51 = vsel %vm324_vm4, %v2297_v46, %v2299_v23  ;;  %v5268_v61 = vpack.i.bf16 %v7198_v34, %v7195_v57 }
 0x562   : > { %8768 = vst [vmem:[#allocation17_spill] sm:$0xff] %v7201_v51  ;;  %v5278_v44 = vpack.i.bf16 %v7205_v52, %v7201_v51  ;;  %v5283_v50 = vpack.i.bf16 %v7201_v51, %v7198_v34 }
 0x563   : > { %5269 = vrot.lane.b32.xlu0 %v5268_v61, %s5514_s15 }
 0x564   : > { %5279 = vrot.lane.b32.xlu1 %v5278_v44, %s5514_s15 }
 0x567   : > { %v2301_v20 = vpop.permute.xlu0 %2300  ;;  %5274 = vrot.lane.b32.xlu0 %v5268_v61, %s5517_s10 }
 0x568   : > { %v7215_v39 = vsel %vm324_vm4, %v2299_v23, %v2301_v20  ;;  %v2303_v49 = vpop.permute.xlu1 %2302  ;;  %5284 = vrot.lane.b32.xlu1 %v5283_v50, %s5516_s23 }
 0x569   : > { %8770 = vst [vmem:[#allocation19_spill] sm:$0xff] %v7215_v39  ;;  %v2308_v33 = vsel %vm324_vm4, %v2301_v20, %v2303_v49  ;;  %v5288_v29 = vpack.i.bf16 %v7215_v39, %v7201_v51 }
 0x56a   : > { %2320 = vst.msk [vmem:[#allocation3 + $0x58] sm:$0xff] %vm596_vm7, %v2308_v33 }
 0x56b   : > { %v7220_v6 = vpop.permute.xlu0 %5224 }
 0x56c   : > { %v5235_v58 = vpop.permute.xlu1 %5234 }
 0x56d   : > { %v5237_v15 = vunpack.i.h.bf16 %v5235_v58  ;;  %v5236_v36 = vunpack.i.l.bf16 %v5235_v58 }
 0x56f   : > { %v7222_v4 = vpop.permute.xlu0 %5229  ;;  %v7230_v63 = vsel %vm665_vm2, %v5236_v36, %v5237_v15 }
 0x570   : > { %v7224_v13 = vpop.permute.xlu1 %5239  ;;  %8771 = vst [vmem:[#allocation29_spill] sm:$0xff] %v7230_v63  ;;  %v3791_v18 = vpack.c.bf16 %v7230_v63, %v7195_v57 }
 0x571   : > { %v7290_v24 = vld [vmem:[#allocation3 + $0x58] sm:$0xff] }
 0x572   : > { %8782 = vst [vmem:[#allocation51_spill] sm:$0xff] %v7290_v24  ;;  %v5293_v22 = vpack.i.bf16 %v7290_v24, %v7215_v39 }
 0x573   : > { %v2620_v59 = vpop.permute.xlu0 %2619 }
 0x574   : > { %2642 = vst.msk [vmem:[#allocation3 + $0x60] sm:$0xff] %vm590_vm6, %v2620_v59  ;;  %v7227_v32 = vpop.permute.xlu1 %5244 }
 0x577   : > { %v5250_v12 = vpop.permute.xlu0 %5249 }
 0x578   : > { %v5251_v14 = vunpack.i.l.bf16 %v5250_v12  ;;  %v2622_v8 = vpop.permute.xlu1 %2621  ;;  %v5252_v55 = vunpack.i.h.bf16 %v5250_v12 }
 0x579   : > { %v7233_v10 = vsel %vm324_vm4, %v2620_v59, %v2622_v8 }
 0x57a   : > { %8772 = vst [vmem:[#allocation20_spill] sm:$0xff] %v7233_v10  ;;  %v7236_v28 = vsel %vm665_vm2, %v5237_v15, %v5251_v14  ;;  %v7271_v9 = vsel %vm665_vm2, %v5251_v14, %v5252_v55 }
 0x57b   : > { %8773 = vst [vmem:[#allocation23_spill] sm:$0xff] %v7236_v28  ;;  %v3792_v2 = vpack.c.bf16 %v7236_v28, %v7198_v34  ;;  %v7259_v42 = vld [vmem:[#allocation3 + $0x60] sm:$0xff]  ;;  %8779 = vst [vmem:[#allocation25_spill] sm:$0xff] %v7271_v9  ;;  %v3793_v61 = vpack.c.bf16 %v7271_v9, %v7201_v51  ;;  %v5246_v34 = vunpack.i.l.bf16 %v7227_v32 }
 0x57c   : > { %v7242_v25 = vpop.permute.xlu1 %5254  ;;  %8777 = vst [vmem:[#allocation24_spill] sm:$0xff] %v7259_v42  ;;  %v5303_v16 = vpack.i.bf16 %v7233_v10, %v7259_v42 }
 0x57d   : > { %3842 = vrot.lane.b32.xlu1 %v3792_v2, %s5514_s15 }
 0x580   : > { %v7247_v54 = vpop.permute.xlu1 %5259 }
 0x581   : > { %5289 = vrot.lane.b32.xlu1 %v5288_v29, %s5517_s10 }
 0x584   : > { %v5265_v30 = vpop.permute.xlu1 %5264 }
 0x585   : > { %v5267_v19 = vunpack.i.h.bf16 %v5265_v30  ;;  %v7250_v40 = vunpack.i.l.bf16 %v5265_v30 }
 0x587   : > { %8774 = vst [vmem:[#allocation26_spill] sm:$0xff] %v7250_v40  ;;  %v7253_v37 = vsel %vm665_vm2, %v5267_v19, %v5236_v36  ;;  %v7257_v7 = vsel %vm665_vm2, %v5252_v55, %v7250_v40  ;;  %v2624_v17 = vpop.permute.xlu0 %2623 }
 0x588   : > { %8775 = vst [vmem:[#allocation33_spill] sm:$0xff] %v7253_v37  ;;  %8776 = vst [vmem:[#allocation22_spill] sm:$0xff] %v7257_v7  ;;  %v7262_v53 = vsel %vm324_vm4, %v2622_v8, %v2624_v17  ;;  %v2626_v62 = vpop.permute.xlu1 %2625  ;;  %v3790_v35 = vpack.c.bf16 %v7253_v37, %v7205_v52  ;;  %v3794_v56 = vpack.c.bf16 %v7257_v7, %v7215_v39  ;;  %v5232_v39 = vunpack.i.h.bf16 %v7222_v4 }
 0x589   : > { %8778 = vst [vmem:[#allocation28_spill] sm:$0xff] %v7262_v53  ;;  %v7274_v11 = vsel %vm324_vm4, %v2624_v17, %v2626_v62  ;;  %v5308_v33 = vpack.i.bf16 %v7262_v53, %v7233_v10 }
 0x58a   : > { %8780 = vst [vmem:[#allocation27_spill] sm:$0xff] %v7274_v11  ;;  %3838 = vrot.lane.b32.xlu0 %v3790_v35, %s5514_s15  ;;  %3846 = vrot.lane.b32.xlu1 %v3794_v56, %s5514_s15  ;;  %v5313_v3 = vpack.i.bf16 %v7259_v42, %v7274_v11  ;;  %v5323_v5 = vpack.i.bf16 %v7274_v11, %v7262_v53 }
 0x58b   : > { %v2628_v47 = vpop.permute.xlu0 %2627 }
 0x58c   : > { %v7283_v45 = vsel %vm324_vm4, %v2626_v62, %v2628_v47  ;;  %v2630_v43 = vpop.permute.xlu1 %2629 }
 0x58d   : > { %8781 = vst [vmem:[#allocation34_spill] sm:$0xff] %v7283_v45  ;;  %v2635_v31 = vsel %vm324_vm4, %v2628_v47, %v2630_v43 }
 0x58e   : > { %2647 = vst.msk [vmem:[#allocation3 + $0x88] sm:$0xff] %vm596_vm7, %v2635_v31  ;;  %3840 = vrot.lane.b32.xlu0 %v3791_v18, %s5514_s15  ;;  %5314 = vrot.lane.b32.xlu1 %v5313_v3, %s5516_s23 }
 0x592   : > { %5294 = vrot.lane.b32.xlu0 %v5293_v22, %s5514_s15  ;;  %5324 = vrot.lane.b32.xlu1 %v5323_v5, %s5517_s10 }
 0x595   : > { %v7303_v27 = vld [vmem:[#allocation3 + $0x88] sm:$0xff] }
 0x596   : > { %8783 = vst [vmem:[#allocation49_spill] sm:$0xff] %v7303_v27  ;;  %5299 = vrot.lane.b32.xlu0 %v5293_v22, %s5516_s23  ;;  %v5333_v21 = vpack.i.bf16 %v7303_v27, %v7283_v45 }
 0x598   : > { %5334 = vrot.lane.b32.xlu1 %v5333_v21, %s5514_s15 }
 0x59a   : > { %5304 = vrot.lane.b32.xlu0 %v5303_v16, %s5517_s10 }
 0x59b   : > { %v2953_v46 = vpop.permute.xlu0 %2952 }
 0x59c   : > { %2975 = vst.msk [vmem:[#allocation3 + $0x90] sm:$0xff] %vm590_vm6, %v2953_v46  ;;  %v2955_v23 = vpop.permute.xlu1 %2954 }
 0x59d   : > { %v7318_v44 = vsel %vm324_vm4, %v2953_v46, %v2955_v23 }
 0x59e   : > { %3844 = vrot.lane.b32.xlu0 %v3793_v61, %s5514_s15  ;;  %v3435_v47 = vpack.c.bf16 %v7318_v44, %v7233_v10 }
 0x59f   : > { %v2957_v50 = vpop.permute.xlu0 %2956 }
 0x5a0   : > { %v7322_v20 = vsel %vm324_vm4, %v2955_v23, %v2957_v50  ;;  %v2959_v49 = vpop.permute.xlu1 %2958  ;;  %v8586_v23 = vunpack.i.l.bf16 %v7222_v4 }
 0x5a1   : > { %v7327_v58 = vsel %vm324_vm4, %v2957_v50, %v2959_v49  ;;  %v5368_v36 = vpack.i.bf16 %v7322_v20, %v7318_v44  ;;  %v3436_v30 = vpack.c.bf16 %v7322_v20, %v7262_v53 }
 0x5a2   : > { %5309 = vrot.lane.b32.xlu0 %v5308_v33, %s5516_s23  ;;  %v5373_v12 = vpack.i.bf16 %v7233_v10, %v7327_v58  ;;  %v3437_v17 = vpack.c.bf16 %v7327_v58, %v7274_v11 }
 0x5a3   : > { %v7330_v59 = vld [vmem:[#allocation3 + $0x90] sm:$0xff] }
 0x5a4   : > { %v5343_v15 = vpack.i.bf16 %v7259_v42, %v7330_v59  ;;  %v5348_v29 = vpack.i.bf16 %v7195_v57, %v7330_v59  ;;  %v5353_v19 = vpack.i.bf16 %v7330_v59, %v7205_v52  ;;  %v3434_v62 = vpack.c.bf16 %v7330_v59, %v7259_v42 }
 0x5a6   : > { %5319 = vrot.lane.b32.xlu0 %v5323_v5, %s5514_s15  ;;  %5344 = vrot.lane.b32.xlu1 %v5343_v15, %s5514_s15  ;;  %v5247_v5 = vunpack.i.h.bf16 %v7227_v32 }
 0x5a8   : > { %v7401_v50 = vsel %vm1169_vm3, %v5247_v5, %v8586_v23 }
 0x5aa   : > { %5329 = vrot.lane.b32.xlu0 %v5333_v21, %s5516_s23  ;;  %5369 = vrot.lane.b32.xlu1 %v5368_v36, %s5517_s10 }
 0x5ae   : > { %5339 = vrot.lane.b32.xlu0 %v5333_v21, %s5517_s10  ;;  %5374 = vrot.lane.b32.xlu1 %v5373_v12, %s5514_s15 }
 0x5af   : > { %v2961_v14 = vpop.permute.xlu0 %2960 }
 0x5b0   : > { %v7345_v8 = vsel %vm324_vm4, %v2959_v49, %v2961_v14  ;;  %v2963_v2 = vpop.permute.xlu1 %2962 }
 0x5b1   : > { %v2968_v55 = vsel %vm324_vm4, %v2961_v14, %v2963_v2  ;;  %v5378_v35 = vpack.i.bf16 %v7345_v8, %v7327_v58  ;;  %v3438_v22 = vpack.c.bf16 %v7345_v8, %v7283_v45 }
 0x5b2   : > { %2980 = vst.msk [vmem:[#allocation3 + $0xb8] sm:$0xff] %vm596_vm7, %v2968_v55  ;;  %5349 = vrot.lane.b32.xlu0 %v5348_v29, %s5516_s23  ;;  %3498 = vrot.lane.b32.xlu1 %v3436_v30, %s5516_s23  ;;  %v5256_v30 = vunpack.i.l.bf16 %v7242_v25  ;;  %v7428_v55 = vunpack.i.h.bf16 %v7242_v25 }
 0x5b4   : > { %8788 = vst [vmem:[#allocation52_spill] sm:$0xff] %v7428_v55 }
 0x5b6   : > { %5354 = vrot.lane.b32.xlu0 %v5353_v19, %s5517_s10  ;;  %3500 = vrot.lane.b32.xlu1 %v3437_v17, %s5516_s23 }
 0x5b9   : > { %v7365_v56 = vld [vmem:[#allocation3 + $0xb8] sm:$0xff] }
 0x5ba   : > { %3494 = vrot.lane.b32.xlu0 %v3434_v62, %s5516_s23  ;;  %5379 = vrot.lane.b32.xlu1 %v5378_v35, %s5516_s23  ;;  %v5393_v43 = vpack.i.bf16 %v7365_v56, %v7205_v52  ;;  %v5398_v18 = vpack.i.bf16 %v7365_v56, %v7290_v24  ;;  %v3439_v3 = vpack.c.bf16 %v7365_v56, %v7303_v27  ;;  %v8584_v62 = vunpack.i.l.bf16 %v7224_v13 }
 0x5bb   : > { %v5388_v31 = vpack.i.bf16 %v7365_v56, %v7345_v8 }
 0x5be   : > { %3496 = vrot.lane.b32.xlu0 %v3435_v47, %s5516_s23  ;;  %5394 = vrot.lane.b32.xlu1 %v5393_v43, %s5516_s23 }
 0x5c2   : > { %5359 = vrot.lane.b32.xlu0 %v5368_v36, %s5514_s15  ;;  %5399 = vrot.lane.b32.xlu1 %v5398_v18, %s5517_s10  ;;  %v7439_v18 = vsel %vm366_vm0, %v8584_v62, %v5256_v30 }
 0x5c3   : > { %8790 = vst [vmem:[#allocation42_spill] sm:$0xff] %v7439_v18 }
 0x5c6   : > { %5364 = vrot.lane.b32.xlu0 %v5368_v36, %s5516_s23  ;;  %3504 = vrot.lane.b32.xlu1 %v3439_v3, %s5516_s23 }
 0x5ca   : > { %5384 = vrot.lane.b32.xlu0 %v5378_v35, %s5517_s10 }
 0x5ce   : > { %5389 = vrot.lane.b32.xlu0 %v5388_v31, %s5514_s15  ;;  %v7452_v31 = vsel %vm366_vm0, %v5256_v30, %v7428_v55 }
 0x5cf   : > { %8791 = vst [vmem:[#allocation35_spill] sm:$0xff] %v7452_v31 }
 0x5d2   : > { %3502 = vrot.lane.b32.xlu0 %v3438_v22, %s5516_s23 }
 0x5d5   : > { %v7391_v21 = vpop.permute.xlu0 %5269 }
 0x5d6   : > { %v8587_v16 = vunpack.i.l.bf16 %v7391_v21  ;;  %v7394_v46 = vpop.permute.xlu1 %5279  ;;  %v5272_v45 = vunpack.i.h.bf16 %v7391_v21 }
 0x5d7   : > { %v5282_v61 = vunpack.i.h.bf16 %v7394_v46  ;;  %v8585_v35 = vunpack.i.l.bf16 %v7394_v46 }
 0x5d9   : > { %v7406_v49 = vsel %vm366_vm0, %v5282_v61, %v8587_v16  ;;  %v7416_v36 = vpop.permute.xlu0 %5274 }
 0x5da   : > { %8784 = vst [vmem:[#allocation55_spill] sm:$0xff] %v7406_v49  ;;  %v7410_v33 = vpack.c.bf16 %v7401_v50, %v7406_v49  ;;  %v7414_v15 = vpop.permute.xlu1 %5284  ;;  %v5276_v9 = vunpack.i.l.bf16 %v7416_v36  ;;  %v5277_v24 = vunpack.i.h.bf16 %v7416_v36 }
 0x5db   : > { %v5286_v37 = vunpack.i.l.bf16 %v7414_v15 }
 0x5dc   : > { %3518 = vrot.lane.b32.xlu0 %v7410_v33, %s5516_s23 }
 0x5ef   : > { %v7418_v12 = vpop.permute.xlu1 %3842 }
 0x5f0   : > { %8785 = vst [vmem:[#allocation56_spill] sm:$0xff] %v7418_v12 }
 0x5f3   : > { %v7422_v2 = vpop.permute.xlu1 %5289 }
 0x5fc   : > { %v7420_v14 = vpop.permute.xlu0 %3838  ;;  %v7430_v19 = vpop.permute.xlu1 %3846 }
 0x5fd   : > { %8786 = vst [vmem:[#allocation36_spill] sm:$0xff] %v7420_v14  ;;  %8789 = vst [vmem:[#allocation44_spill] sm:$0xff] %v7430_v19 }
 0x600   : > { %v7424_v29 = vpop.permute.xlu0 %3840 }
 0x601   : > { %8787 = vst [vmem:[#allocation50_spill] sm:$0xff] %v7424_v29 }
 0x604   : > { %v5295_v17 = vpop.permute.xlu0 %5294 }
 0x605   : > { %v7434_v47 = vunpack.i.h.bf16 %v5295_v17  ;;  %v5296_v43 = vunpack.i.l.bf16 %v5295_v17  ;;  %v5315_v17 = vpop.permute.xlu1 %5314 }
 0x606   : > { %v5317_v30 = vunpack.i.h.bf16 %v5315_v17 }
 0x607   : > { %v7443_v3 = vsel %vm366_vm0, %v5296_v43, %v7434_v47  ;;  %v7448_v25 = vsel %vm366_vm0, %v8585_v35, %v5296_v43 }
 0x608   : > { %v7454_v22 = vpop.permute.xlu0 %5299 }
 0x609   : > { %v7462_v48 = vpop.permute.xlu1 %5324 }
 0x60c   : > { %v7460_v1 = vpop.permute.xlu0 %5304 }
 0x60d   : > { %v7466_v43 = vpop.permute.xlu1 %5334 }
 0x60e   : > { %8793 = vst [vmem:[#allocation43_spill] sm:$0xff] %v7466_v43  ;;  %v5291_v43 = vunpack.i.l.bf16 %v7422_v2 }
 0x610   : > { %v7464_v38 = vpop.permute.xlu0 %3844 }
 0x611   : > { %8792 = vst [vmem:[#allocation45_spill] sm:$0xff] %v7464_v38 }
 0x614   : > { %v5310_v26 = vpop.permute.xlu0 %5309 }
 0x615   : > { %v5312_v0 = vunpack.i.h.bf16 %v5310_v26  ;;  %v5311_v60 = vunpack.i.l.bf16 %v5310_v26  ;;  %v5316_v26 = vunpack.i.l.bf16 %v5315_v17 }
 0x617   : > { %v7469_v62 = vsel %vm665_vm2, %v5317_v30, %v5311_v60  ;;  %v7472_v5 = vsel %vm665_vm2, %v5311_v60, %v5312_v0  ;;  %v7491_v38 = vsel %vm665_vm2, %v5312_v0, %v5316_v26 }
 0x618   : > { %8794 = vst [vmem:[#allocation30_spill] sm:$0xff] %v7469_v62  ;;  %8795 = vst [vmem:[#allocation54_spill] sm:$0xff] %v7472_v5  ;;  %v7474_v61 = vpop.permute.xlu0 %5319  ;;  %v7476_v35 = vpop.permute.xlu1 %5344  ;;  %v7480_v23 = vpack.c.bf16 %v7472_v5, %v7318_v44  ;;  %v7484_v16 = vpack.c.bf16 %v7469_v62, %v7330_v59  ;;  %v7506_v17 = vpack.c.bf16 %v7491_v38, %v7322_v20  ;;  %v8808_v5 = vunpack.i.l.bf16 %v7394_v46 }
 0x619   : > { %8796 = vst [vmem:[#allocation32_spill] sm:$0xff] %v7474_v61  ;;  %v5261_v61 = vunpack.i.l.bf16 %v7247_v54 }
 0x61a   : > { %8797 = vst [vmem:[#allocation31_spill] sm:$0xff] %v7480_v23  ;;  %8798 = vst [vmem:[#allocation40_spill] sm:$0xff] %v7484_v16  ;;  %3265 = vmatprep.subr.bf16.mxu0 %v7480_v23  ;;  %v8802_v23 = vunpack.i.l.bf16 %v7391_v21  ;;  %v7573_v62 = vsel %vm366_vm0, %v5272_v45, %v8808_v5 }
 0x61b   : > { %3266 = vmatpush1.bf16.msra.mxu0 %v7484_v16  ;;  %8800 = vst [vmem:[#allocation38_spill] sm:$0xff] %v7506_v17  ;;  %8809 = vst [vmem:[#allocation48_spill] sm:$0xff] %v7573_v62 }
 0x61c   : > { %v5330_v30 = vpop.permute.xlu0 %5329  ;;  %v7488_v60 = vpop.permute.xlu1 %5369  ;;  %v7528_v16 = vsel %vm366_vm0, %v8802_v23, %v5272_v45  ;;  %v8630_v45 = vunpack.i.h.bf16 %v7422_v2 }
 0x61d   : > { %v5331_v14 = vunpack.i.l.bf16 %v5330_v30  ;;  %8803 = vst [vmem:[#allocation39_spill] sm:$0xff] %v7528_v16  ;;  %v7542_v21 = vunpack.i.h.bf16 %v5330_v30 }
 0x61f   : > { %v7494_v19 = vsel %vm665_vm2, %v5316_v26, %v5331_v14  ;;  %v7579_v30 = vsel %vm665_vm2, %v5331_v14, %v7542_v21 }
 0x620   : > { %v7496_v29 = vpop.permute.xlu0 %5339  ;;  %v7498_v12 = vpop.permute.xlu1 %5374  ;;  %v7502_v7 = vpack.c.bf16 %v7494_v19, %v7327_v58 }
 0x622   : > { %8799 = vst [vmem:[#allocation41_spill] sm:$0xff] %v7502_v7  ;;  %3306 = vmatprep.subr.bf16.mxu1 %v7502_v7 }
 0x623   : > { %3307 = vmatpush1.bf16.msra.mxu1 %v7506_v17 }
 0x624   : > { %v7510_v0 = vpop.permute.xlu0 %5349  ;;  %v7512_v26 = vpop.permute.xlu1 %3498 }
 0x625   : > { %v5352_v52 = vunpack.i.h.bf16 %v7510_v0  ;;  %v5351_v14 = vunpack.i.l.bf16 %v7510_v0 }
 0x627   : > { %v3780_v55 = vsel %vm665_vm2, %v5352_v52, %v5286_v37 }
 0x628   : > { %v7515_v51 = vpop.permute.xlu0 %5354  ;;  %v7517_v27 = vpop.permute.xlu1 %3500 }
 0x629   : > { %8801 = vst [vmem:[#allocation37_spill] sm:$0xff] %v7517_v27  ;;  %v5356_v11 = vunpack.i.l.bf16 %v7515_v51 }
 0x62b   : > { %v7523_v7 = vsel %vm1169_vm3, %v5356_v11, %v5276_v9  ;;  %v8804_v11 = vunpack.i.l.bf16 %v7222_v4 }
 0x62c   : > { %v7532_v42 = vpop.permute.xlu0 %3494  ;;  %v5380_v63 = vpop.permute.xlu1 %5379  ;;  %v3808_v10 = vpack.c.bf16 %v7523_v7, %v7523_v7 }
 0x62d   : > { %v5382_v28 = vunpack.i.h.bf16 %v5380_v63  ;;  %v5381_v53 = vunpack.i.l.bf16 %v5380_v63  ;;  %v7539_v40 = vsel %vm1169_vm3, %v8804_v11, %v5232_v39  ;;  %v8807_v63 = vunpack.i.h.bf16 %v7414_v15 }
 0x62e   : > { %8805 = vst [vmem:[#allocation47_spill] sm:$0xff] %v7539_v40  ;;  %3886 = vrot.lane.b32.xlu0 %v3808_v10, %s5514_s15  ;;  %v7546_v23 = vpack.c.bf16 %v7539_v40, %v7528_v16 }
 0x62f   : > { %v7549_v17 = vsel %vm665_vm2, %v5381_v53, %v5382_v28  ;;  %v3781_v4 = vsel %vm665_vm2, %v5286_v37, %v8807_v63  ;;  %v7567_v63 = vunpack.i.h.bf16 %v7247_v54 }
 0x630   : > { %8806 = vst [vmem:[#allocation46_spill] sm:$0xff] %v7549_v17  ;;  %v7555_v57 = vpop.permute.xlu0 %3496  ;;  %v5395_v11 = vpop.permute.xlu1 %5394  ;;  %v3223_v10 = vpack.c.bf16 %v7448_v25, %v7549_v17  ;;  %v3798_v5 = vpack.c.bf16 %v7322_v20, %v3781_v4  ;;  %v3136_v17 = vsel %vm1169_vm3, %v5277_v24, %v5291_v43  ;;  %v7613_v4 = vsel %vm1169_vm3, %v5246_v34, %v5261_v61 }
 0x631   : > { %v7563_v31 = vunpack.i.h.bf16 %v5395_v11  ;;  %v5396_v36 = vunpack.i.l.bf16 %v5395_v11  ;;  %v7606_v20 = vsel %vm1169_vm3, %v5261_v61, %v7567_v63  ;;  %v5372_v61 = vunpack.i.h.bf16 %v7488_v60 }
 0x632   : > { %3520 = vrot.lane.b32.xlu0 %v7546_v23, %s5516_s23  ;;  %3308 = vmatprep.subr.bf16.mxu1 %v3223_v10 }
 0x633   : > { %v7583_v32 = vsel %vm665_vm2, %v5382_v28, %v7563_v31  ;;  %v3779_v11 = vsel %vm665_vm2, %v5396_v36, %v5352_v52  ;;  %v7597_v28 = vsel %vm1169_vm3, %v5276_v9, %v5277_v24  ;;  %v7600_v36 = vsel %vm1169_vm3, %v5232_v39, %v5246_v34 }
 0x634   : > { %v7589_v46 = vpop.permute.xlu0 %5359  ;;  %v3796_v10 = vpack.c.bf16 %v7330_v59, %v3779_v11  ;;  %v7610_v59 = vpack.c.bf16 %v7600_v36, %v7573_v62  ;;  %v5327_v9 = vunpack.i.h.bf16 %v7462_v48  ;;  %v3810_v39 = vpack.c.bf16 %v3136_v17, %v3136_v17 }
 0x635   : > { %v7619_v11 = vsel %vm1169_vm3, %v5291_v43, %v8630_v45  ;;  %v5362_v18 = vunpack.i.h.bf16 %v7589_v46  ;;  %v5371_v34 = vunpack.i.l.bf16 %v7488_v60  ;;  %v3450_v60 = vpack.c.bf16 %v7606_v20, %v7443_v3 }
 0x636   : > { %3854 = vrot.lane.b32.xlu0 %v3798_v5, %s5514_s15  ;;  %3850 = vrot.lane.b32.xlu1 %v3796_v10, %s5514_s15  ;;  %v3227_v5 = vpack.c.bf16 %v7597_v28, %v7539_v40  ;;  %v5326_v10 = vunpack.i.l.bf16 %v7462_v48  ;;  %v5361_v48 = vunpack.i.l.bf16 %v7589_v46  ;;  %v3229_v46 = vpack.c.bf16 %v7619_v11, %v7613_v4 }
 0x637   : > { %v5341_v40 = vunpack.i.l.bf16 %v7496_v29 }
 0x638   : > { %v5365_v24 = vpop.permute.xlu0 %5364 }
 0x639   : > { %v5367_v54 = vunpack.i.h.bf16 %v5365_v24  ;;  %v5366_v27 = vunpack.i.l.bf16 %v5365_v24 }
 0x63a   : > { %3878 = vrot.lane.b32.xlu0 %v7610_v59, %s5514_s15  ;;  %3874 = vrot.lane.b32.xlu1 %v7410_v33, %s5514_s15 }
 0x63b   : > { %v7635_v43 = vsel %vm665_vm2, %v5351_v14, %v5366_v27  ;;  %v7638_v0 = vsel %vm665_vm2, %v5367_v54, %v5381_v53  ;;  %v7641_v24 = vsel %vm665_vm2, %v5366_v27, %v5367_v54  ;;  %v7654_v53 = vsel %vm1169_vm3, %v5326_v10, %v5327_v9 }
 0x63c   : > { %8810 = vst [vmem:[#allocation12_spill] sm:$0xff] %v7641_v24  ;;  %v7643_v52 = vpop.permute.xlu0 %5384  ;;  %v3221_v37 = vpack.c.bf16 %v7528_v16, %v7641_v24  ;;  %v3222_v45 = vpack.c.bf16 %v7573_v62, %v7638_v0  ;;  %v3220_v33 = vpack.c.bf16 %v7406_v49, %v7635_v43  ;;  %v5307_v27 = vunpack.i.h.bf16 %v7460_v1 }
 0x63d   : > { %v3228_v54 = vpack.c.bf16 %v3136_v17, %v7600_v36  ;;  %v3797_v16 = vpack.c.bf16 %v7318_v44, %v3780_v55  ;;  %v8811_v49 = vunpack.i.h.bf16 %v7454_v22  ;;  %v8812_v62 = vunpack.i.l.bf16 %v7454_v22 }
 0x63e   : > { %3267 = vmatprep.subr.bf16.mxu0 %v3221_v37  ;;  %3309 = vmatpush1.bf16.msra.mxu1 %v3222_v45  ;;  %v5386_v17 = vunpack.i.l.bf16 %v7643_v52  ;;  %v7674_v14 = vsel %vm366_vm0, %v5361_v48, %v5362_v18  ;;  %v5306_v45 = vunpack.i.l.bf16 %v7460_v1  ;;  %v5376_v44 = vunpack.i.l.bf16 %v7498_v12 }
 0x63f   : > { %v3783_v24 = vsel %vm665_vm2, %v8812_v62, %v8811_v49  ;;  %3890 = vrot.lane.b32.xlu0 %v3810_v39, %s5514_s15  ;;  %3268 = vmatpush1.bf16.msra.mxu0 %v3220_v33  ;;  %v5357_v55 = vunpack.i.h.bf16 %v7515_v51  ;;  %v5346_v62 = vunpack.i.l.bf16 %v7476_v35  ;;  %v3226_v33 = vpack.c.bf16 %v7523_v7, %v7401_v50 }
 0x640   : > { %3310 = vmatprep.subr.bf16.mxu1 %v3229_v46  ;;  %3852 = vrot.lane.b32.xlu1 %v3797_v16, %s5514_s15  ;;  %v7681_v49 = vpop.permute.xlu0 %5389  ;;  %v7688_v1 = vsel %vm1169_vm3, %v5307_v27, %v5326_v10  ;;  %v7691_v51 = vsel %vm366_vm0, %v5362_v18, %v5376_v44  ;;  %v7698_v46 = vsel %vm1169_vm3, %v5327_v9, %v5341_v40  ;;  %v8813_v10 = vunpack.i.h.bf16 %v7643_v52 }
 0x641   : > { %v5391_v39 = vunpack.i.l.bf16 %v7681_v49  ;;  %3269 = vmatprep.subr.bf16.mxu0 %v3227_v5  ;;  %v3233_v16 = vpack.c.bf16 %v7688_v1, %v7674_v14  ;;  %v3204_v5 = vsel %vm1169_vm3, %v5371_v34, %v5372_v61  ;;  %v7702_v37 = vsel %vm366_vm0, %v5346_v62, %v5361_v48 }
 0x642   : > { %3311 = vmatpush1.bf16.msra.mxu1 %v3228_v54  ;;  %v3205_v18 = vsel %vm1169_vm3, %v5372_v61, %v5386_v17  ;;  %v3206_v48 = vsel %vm1169_vm3, %v5386_v17, %v8813_v10  ;;  %v3203_v54 = vsel %vm1169_vm3, %v5357_v55, %v5371_v34  ;;  %v3180_v62 = vsel %vm1169_vm3, %v5306_v45, %v5307_v27  ;;  %v7740_v45 = vld [vmem:[%s8516_s6] sm:$0xf]  ;;  %v5400_v55 = vpop.permute.xlu1 %5399 }
 0x643   : > { %3526 = vrot.lane.b32.xlu0 %v3450_v60, %s5516_s23  ;;  %3270 = vmatpush1.bf16.msra.mxu0 %v3226_v33  ;;  %v7708_v7 = vsel %vm366_vm0, %v5376_v44, %v5391_v39  ;;  %v3800_v44 = vpack.c.bf16 %v7345_v8, %v3783_v24  ;;  %v3234_v61 = vpack.c.bf16 %v7654_v53, %v7691_v51 }
 0x644   : > { %3876 = vrot.lane.b32.xlu1 %v7546_v23, %s5514_s15  ;;  %3271 = vmatprep.subr.bf16.mxu0 %v3233_v16  ;;  %v3235_v9 = vpack.c.bf16 %v7698_v46, %v7708_v7  ;;  %v3809_v23 = vpack.c.bf16 %v7597_v28, %v7597_v28  ;;  %v3232_v33 = vpack.c.bf16 %v3180_v62, %v7702_v37 }
 0x645   : > { %v3240_v16 = vpack.c.bf16 %v3205_v18, %v3205_v18  ;;  %v3239_v17 = vpack.c.bf16 %v3204_v5, %v3204_v5  ;;  %v3241_v10 = vpack.c.bf16 %v3206_v48, %v3206_v48  ;;  %v3238_v34 = vpack.c.bf16 %v3203_v54, %v3203_v54 }
 0x646   : > { %3312 = vmatprep.subr.bf16.mxu1 %v3235_v9  ;;  %v7735_v27 = vpack.c.bf16 %v7542_v21, %v7365_v56  ;;  %v3458_v5 = vpack.c.bf16 %v3180_v62, %v3180_v62  ;;  %v5227_v18 = vunpack.i.h.bf16 %v7220_v6  ;;  %v3449_v9 = vpack.c.bf16 %v7613_v4, %v7448_v25 }
 0x647   : > { %3858 = vrot.lane.b32.xlu0 %v3800_v44, %s5514_s15  ;;  %3313 = vmatpush1.bf16.msra.mxu1 %v3234_v61  ;;  %v3254_v24 = vsel %vm1799_vm8, %v3240_v16, 0  ;;  %v3248_v28 = vsel %vm1799_vm8, %v3238_v34, 0  ;;  %v7761_v48 = vpack.c.bf16 %v7579_v30, %v7345_v8  ;;  %v8814_v54 = vunpack.i.l.bf16 %v7224_v13 }
 0x648   : > { %3888 = vrot.lane.b32.xlu1 %v3809_v23, %s5514_s15  ;;  %3272 = vmatpush1.bf16.msra.mxu0 %v3232_v33  ;;  %v7770_v44 = vunpack.i.l.bf16 %v5400_v55  ;;  %v3225_v61 = vpack.c.bf16 %v7434_v47, %v7563_v31  ;;  %v8815_v8 = vunpack.i.l.bf16 %v7454_v22  ;;  %v8816_v23 = vunpack.i.h.bf16 %v7414_v15 }
 0x649   : > { %4900 = vmatprep.subr.msk.bf16.mxu0 %vm1799_vm8, %v3239_v17  ;;  %4902 = vmatprep.subr.msk.bf16.mxu1 %vm1799_vm8, %v3241_v10  ;;  %v7768_v62 = vsel %vm366_vm0, %v5227_v18, %v8814_v54  ;;  %v3224_v16 = vpack.c.bf16 %v7443_v3, %v7583_v32  ;;  %v8817_v17 = vunpack.i.h.bf16 %v7422_v2  ;;  %v7799_v34 = vunpack.i.h.bf16 %v7681_v49  ;;  %v8818_v54 = vld [vmem:[#allocation42_spill] sm:$0xff] }
 0x64a   : > { %v3782_v33 = vsel %vm665_vm2, %v8816_v23, %v8815_v8  ;;  %v3231_v15 = vpack.c.bf16 %v7770_v44, %v7567_v63  ;;  %v5242_v23 = vunpack.i.h.bf16 %v7224_v13 }
 0x64b   : > { %3882 = vrot.lane.b32.xlu0 %v3450_v60, %s5514_s15  ;;  %3315 = vmatpush1.bf16.msra.mxu1 %v3254_v24  ;;  %v3555_v60 = vsel %vm665_vm2, %v7555_v57, %v7512_v26  ;;  %v7796_v10 = vsel %vm1169_vm3, %v8817_v17, %v7770_v44  ;;  %v3460_v24 = vpack.c.bf16 %v7654_v53, %v7654_v53  ;;  %v8821_v17 = vld [vmem:[#allocation37_spill] sm:$0xff] }
 0x64c   : > { %3522 = vrot.lane.b32.xlu1 %v7610_v59, %s5516_s23  ;;  %3274 = vmatpush1.bf16.msra.mxu0 %v3248_v28  ;;  %v3554_v59 = vsel %vm665_vm2, %v7532_v42, %v7555_v57  ;;  %v3442_v57 = vpack.c.bf16 %v7768_v62, %v7491_v38  ;;  %v7781_v42 = vpack.c.bf16 %v7567_v63, %v7434_v47  ;;  %v5342_v28 = vunpack.i.h.bf16 %v7496_v29 }
 0x64d   : > { %3347 = vmatprep.subr.bf16.mxu0 %v7735_v27  ;;  %3621 = vmatprep.subr.bf16.mxu1 %v3555_v60  ;;  %v3799_v2 = vpack.c.bf16 %v7327_v58, %v3782_v33  ;;  %v5402_v60 = vunpack.i.h.bf16 %v5400_v55  ;;  %v3443_v58 = vpack.c.bf16 %v8818_v54, %v7494_v19  ;;  %v8819_v55 = vunpack.i.h.bf16 %v7643_v52  ;;  %v8820_v52 = vld [vmem:[#allocation52_spill] sm:$0xff] }
 0x64e   : > { %4903 = vmatmul.mubr.msk.bf16.vlgmr.msra.gmra.mrb[48].mxu1 %vm1795_vm9, %v7740_v45  ;;  %v3237_v53 = vpack.c.bf16 %v5342_v28, %v7799_v34  ;;  %v3445_v33 = vpack.c.bf16 %v8820_v52, %v7542_v21  ;;  %v3811_v29 = vpack.c.bf16 %v7619_v11, %v7619_v11 }
 0x64f   : > { %3542 = vrot.lane.b32.xlu0 %v3458_v5, %s5516_s23  ;;  %4901 = vmatmul.mubr.msk.bf16.vlgmr.msra.gmra.mrb[48].mxu0 %vm1795_vm9, %v7740_v45  ;;  %v3230_v5 = vpack.c.bf16 %v7796_v10, %v7606_v20 }
 0x650   : > { %3622 = vmatpush1.bf16.msra.mxu1 %v3554_v59  ;;  %3524 = vrot.lane.b32.xlu1 %v3449_v9, %s5516_s23  ;;  %v7816_v59 = vsel %vm366_vm0, %v5391_v39, %v7799_v34  ;;  %v3243_v39 = vpack.c.bf16 %v5402_v60, %v5402_v60 }
 0x651   : > { %3348 = vmatpush1.bf16.msra.mxu0 %v7761_v48  ;;  %3379 = vmatprep.mubr.bf16.mxu0 %v8693_v41 }
 0x652   : > { %3349 = vmatprep.subr.bf16.mxu0 %v3225_v61  ;;  %3653 = vmatprep.mubr.bf16.mxu1 %v8693_v41  ;;  %v3207_v61 = vsel %vm1169_vm3, %v8819_v55, %v5402_v60  ;;  %v3556_v60 = vsel %vm665_vm2, %v7512_v26, %v8821_v17 }
 0x653   : > { %3510 = vrot.lane.b32.xlu0 %v3442_v57, %s5516_s23  ;;  %v3184_v57 = vsel %vm1169_vm3, %v5341_v40, %v5342_v28  ;;  %v3242_v8 = vpack.c.bf16 %v3207_v61, %v3207_v61  ;;  %v5226_v40 = vunpack.i.l.bf16 %v7220_v6  ;;  %v8824_v61 = vld [vmem:[#allocation32_spill] sm:$0xff] }
 0x654   : > { %3528 = vrot.lane.b32.xlu1 %v7781_v42, %s5516_s23  ;;  %v3236_v49 = vpack.c.bf16 %v3184_v57, %v7816_v59  ;;  %v5322_v26 = vunpack.i.h.bf16 %v8824_v61  ;;  %v8825_v6 = vld [vmem:[#allocation12_spill] sm:$0xff] }
 0x655   : > { %3350 = vmatpush1.bf16.msra.mxu0 %v3224_v16  ;;  %v7836_v16 = vpop.permute.xlu0 %3502  ;;  %v7844_v13 = vsel %vm366_vm0, %v5242_v23, %v5226_v40  ;;  %v3812_v23 = vpack.c.bf16 %v7796_v10, %v7796_v10 }
 0x656   : > { %3351 = vmatprep.subr.bf16.mxu0 %v3231_v15  ;;  %v3557_v11 = vsel %vm665_vm2, %v8821_v17, %v7836_v16  ;;  %v3462_v15 = vpack.c.bf16 %v3184_v57, %v3184_v57  ;;  %v5321_v57 = vunpack.i.l.bf16 %v8824_v61  ;;  %v5347_v17 = vunpack.i.h.bf16 %v7476_v35  ;;  %v5411_v61 = vld [vmem:[#allocation3 + $0x8] sm:$0xff] }
 0x657   : > { %3546 = vrot.lane.b32.xlu0 %v3460_v24, %s5516_s23  ;;  %v8822_v24 = vld [vmem:[#allocation30_spill] sm:$0xff] }
 0x658   : > { %3856 = vrot.lane.b32.xlu1 %v3799_v2, %s5514_s15  ;;  %v3440_v2 = vpack.c.bf16 %v7844_v13, %v8822_v24 }
 0x659   : > { %3352 = vmatpush1.bf16.msra.mxu0 %v3230_v5  ;;  %v7861_v5 = vsel %vm366_vm0, %v5226_v40, %v5227_v18  ;;  %v8826_v40 = vld [vmem:[#allocation18_spill] sm:$0xff] }
 0x65a   : > { %3353 = vmatprep.subr.bf16.mxu0 %v3237_v53  ;;  %v3802_v53 = vpack.c.bf16 %v7635_v43, %v8822_v24  ;;  %v3425_v43 = vsel %vm366_vm0, %v5321_v57, %v5322_v26  ;;  %v8829_v24 = vld [vmem:[#allocation43_spill] sm:$0xff] }
 0x65b   : > { %3512 = vrot.lane.b32.xlu0 %v3443_v58, %s5516_s23  ;;  %v8823_v58 = vld [vmem:[#allocation54_spill] sm:$0xff] }
 0x65c   : > { %3880 = vrot.lane.b32.xlu1 %v3449_v9, %s5514_s15  ;;  %v3260_v9 = vsel %vm1799_vm8, %v3242_v8, 0  ;;  %v3441_v55 = vpack.c.bf16 %v7861_v5, %v8823_v58  ;;  %v3803_v18 = vpack.c.bf16 %v8825_v6, %v8823_v58  ;;  %v3461_v8 = vpack.c.bf16 %v7698_v46, %v7698_v46  ;;  %v8830_v6 = vld [vmem:[#allocation53_spill] sm:$0xff] }
 0x65d   : > { %3354 = vmatpush1.bf16.msra.mxu0 %v3236_v49  ;;  %v3459_v49 = vpack.c.bf16 %v7688_v1, %v7688_v1  ;;  %v5377_v1 = vunpack.i.h.bf16 %v7498_v12 }
 0x65e   : > { %4904 = vmatprep.subr.msk.bf16.mxu0 %vm1799_vm8, %v3243_v39  ;;  %v3454_v39 = vpack.c.bf16 %v7691_v51, %v3425_v43 }
 0x65f   : > { %3516 = vrot.lane.b32.xlu0 %v3445_v33, %s5516_s23  ;;  %v3463_v33 = vpack.c.bf16 %v5342_v28, %v5342_v28  ;;  %v3423_v10 = vsel %vm366_vm0, %v5347_v17, %v5377_v1  ;;  %v5410_v28 = vld [vmem:[#allocation3] sm:$0xff]  ;;  %v3424_v35 = vsel %vm366_vm0, %v5377_v1, %v5321_v57  ;;  %v8832_v57 = vld [vmem:[#allocation26_spill] sm:$0xff]  ;;  %v8841_v1 = vld [vmem:[#allocation24_spill] sm:$0xff] }
 0x660   : > { %3892 = vrot.lane.b32.xlu1 %v3811_v29, %s5514_s15  ;;  %v5409_v29 = vld [vmem:[#allocation3 + $0x10] sm:$0xff]  ;;  %v3452_v12 = vpack.c.bf16 %v7702_v37, %v3423_v10  ;;  %v3453_v58 = vpack.c.bf16 %v7674_v14, %v3424_v35  ;;  %v8833_v14 = vld [vmem:[#allocation28_spill] sm:$0xff]  ;;  %v8845_v17 = vld [vmem:[#allocation38_spill] sm:$0xff]  ;;  %v8846_v10 = vunpack.i.h.bf16 %v7454_v22 }
 0x661   : > { %3356 = vmatpush1.bf16.msra.mxu0 %v3260_v9  ;;  %v4090_v51 = vpack.c.bf16 %v8826_v40, %v5409_v29  ;;  %v8827_v9 = vld [vmem:[#allocation35_spill] sm:$0xff]  ;;  %v8842_v29 = vld [vmem:[#allocation33_spill] sm:$0xff] }
 0x662   : > { %3662 = vmatprep.subr.bf16.mxu0 %v3557_v11  ;;  %v3444_v46 = vpack.c.bf16 %v8827_v9, %v7579_v30  ;;  %v8828_v11 = vld [vmem:[#allocation21_spill] sm:$0xff]  ;;  %v8843_v40 = vpack.c.bf16 %v8841_v1, %v8842_v29 }
 0x663   : > { %3550 = vrot.lane.b32.xlu0 %v3462_v15, %s5516_s23  ;;  %v4088_v15 = vpack.c.bf16 %v8828_v11, %v5410_v28  ;;  %v3801_v28 = vpack.c.bf16 %v7365_v56, %v8846_v10  ;;  %v8847_v11 = vld [vmem:[#allocation40_spill] sm:$0xff]  ;;  %v8851_v56 = vpack.c.bf16 %v7563_v31, %v7542_v21  ;;  %v4108_v31 = vpack.c.bf16 %v7600_v36, %v7600_v36  ;;  %v8853_v21 = vld [vmem:[#allocation39_spill] sm:$0xff] }
 0x664   : > { %4905 = vmatmul.mubr.msk.bf16.vlgmr.msra.gmra.mrb[52].mxu0 %vm1795_vm9, %v7740_v45  ;;  %3506 = vrot.lane.b32.xlu1 %v3440_v2, %s5516_s23  ;;  %v5336_v2 = vunpack.i.l.bf16 %v8829_v24  ;;  %v4101_v35 = vpack.c.bf16 %v8853_v21, %v7861_v5  ;;  %v3813_v5 = vpack.c.bf16 %v7770_v44, %v7770_v44 }
 0x665   : > { %3663 = vmatpush1.bf16.msra.mxu0 %v3556_v60  ;;  %3694 = vmatprep.mubr.bf16.mxu0 %v8693_v41 }
 0x666   : > { %v3426_v60 = vsel %vm366_vm0, %v5322_v26, %v5336_v2  ;;  %v8831_v26 = vld [vmem:[#allocation51_spill] sm:$0xff] }
 0x667   : > { %3862 = vrot.lane.b32.xlu0 %v3802_v53, %s5514_s15  ;;  %v3455_v53 = vpack.c.bf16 %v7708_v7, %v3426_v60  ;;  %v3795_v7 = vpack.c.bf16 %v8832_v57, %v8831_v26 }
 0x668   : > { %3508 = vrot.lane.b32.xlu1 %v3441_v55, %s5516_s23  ;;  %v5337_v55 = vunpack.i.h.bf16 %v8829_v24  ;;  %v8850_v24 = vld [vmem:[#allocation55_spill] sm:$0xff] }
 0x669   : > { %v4100_v22 = vpack.c.bf16 %v8850_v24, %v7844_v13  ;;  %v8852_v13 = vpack.c.bf16 %v7583_v32, %v7579_v30 }
 0x66a   : > { %v3457_v37 = vpack.c.bf16 %v7799_v34, %v5337_v55 }
 0x66b   : > { %3864 = vrot.lane.b32.xlu0 %v3803_v18, %s5514_s15  ;;  %v4089_v18 = vpack.c.bf16 %v8830_v6, %v5411_v61  ;;  %v8856_v61 = vld [vmem:[#allocation25_spill] sm:$0xff] }
 0x66c   : > { %3544 = vrot.lane.b32.xlu1 %v3459_v49, %s5516_s23  ;;  %v8834_v49 = vld [vmem:[#allocation23_spill] sm:$0xff] }
 0x66d   : > { %v8835_v43 = vpack.c.bf16 %v8833_v14, %v8834_v49  ;;  %v8858_v14 = vld [vmem:[#allocation47_spill] sm:$0xff]  ;;  %v8859_v49 = vld [vmem:[#allocation49_spill] sm:$0xff] }
 0x66f   : > { %3534 = vrot.lane.b32.xlu0 %v3454_v39, %s5516_s23  ;;  %v8836_v39 = vld [vmem:[#allocation46_spill] sm:$0xff] }
 0x670   : > { %3548 = vrot.lane.b32.xlu1 %v3461_v8, %s5516_s23  ;;  %v8837_v34 = vpack.c.bf16 %v8836_v39, %v7494_v19  ;;  %v8838_v8 = vld [vmem:[#allocation20_spill] sm:$0xff] }
 0x673   : > { %3894 = vrot.lane.b32.xlu0 %v3812_v23, %s5514_s15  ;;  %v8839_v23 = vld [vmem:[#allocation29_spill] sm:$0xff] }
 0x674   : > { %3552 = vrot.lane.b32.xlu1 %v3463_v33, %s5516_s23  ;;  %v8840_v33 = vpack.c.bf16 %v8838_v8, %v8839_v23  ;;  %v8861_v8 = vld [vmem:[#allocation17_spill] sm:$0xff] }
 0x677   : > { %4146 = vrot.lane.b32.xlu0 %v4090_v51, %s5517_s10  ;;  %v8844_v51 = vpack.c.bf16 %v7638_v0, %v7491_v38  ;;  %v8848_v38 = vld [vmem:[#allocation48_spill] sm:$0xff] }
 0x678   : > { %3514 = vrot.lane.b32.xlu1 %v3444_v46, %s5516_s23  ;;  %v3427_v46 = vsel %vm366_vm0, %v5336_v2, %v5337_v55  ;;  %v4102_v0 = vpack.c.bf16 %v8848_v38, %v7768_v62  ;;  %v4106_v62 = vpack.c.bf16 %v7401_v50, %v7401_v50  ;;  %v8854_v55 = vld [vmem:[#allocation19_spill] sm:$0xff] }
 0x679   : > { %v3456_v19 = vpack.c.bf16 %v7816_v59, %v3427_v46  ;;  %v7949_v59 = vpop.permute.xlu0 %3518 }
 0x67b   : > { %4142 = vrot.lane.b32.xlu0 %v4088_v15, %s5517_s10  ;;  %v8849_v15 = vld [vmem:[#allocation31_spill] sm:$0xff] }
 0x67c   : > { %3530 = vrot.lane.b32.xlu1 %v3452_v12, %s5516_s23  ;;  %v7965_v12 = vpop.permute.xlu1 %3504 }
 0x67f   : > { %3536 = vrot.lane.b32.xlu0 %v3455_v53, %s5516_s23 }
 0x680   : > { %3532 = vrot.lane.b32.xlu1 %v3453_v58, %s5516_s23  ;;  %v5412_v58 = vld [vmem:[#allocation3 + $0x20] sm:$0xff] }
 0x681   : > { %v4092_v30 = vpack.c.bf16 %v8854_v55, %v5412_v58 }
 0x683   : > { %3540 = vrot.lane.b32.xlu0 %v3457_v37, %s5516_s23  ;;  %v8855_v37 = vld [vmem:[#allocation27_spill] sm:$0xff] }
 0x684   : > { %4144 = vrot.lane.b32.xlu1 %v4089_v18, %s5517_s10  ;;  %v8857_v6 = vpack.c.bf16 %v8855_v37, %v8856_v61 }
 0x687   : > { %4158 = vrot.lane.b32.xlu0 %v8835_v43, %s5517_s10  ;;  %v8860_v43 = vpack.c.bf16 %v8859_v49, %v8832_v57  ;;  %v5414_v57 = vld [vmem:[#allocation3 + $0x28] sm:$0xff] }
 0x688   : > { %3848 = vrot.lane.b32.xlu1 %v3795_v7, %s5514_s15  ;;  %v4093_v29 = vpack.c.bf16 %v8831_v26, %v5414_v57 }
 0x68b   : > { %3868 = vrot.lane.b32.xlu0 %v8837_v34, %s5514_s15  ;;  %v5413_v34 = vld [vmem:[#allocation3 + $0x18] sm:$0xff] }
 0x68c   : > { %4156 = vrot.lane.b32.xlu1 %v8840_v33, %s5517_s10  ;;  %v4091_v23 = vpack.c.bf16 %v8861_v8, %v5413_v34 }
 0x68f   : > { %4154 = vrot.lane.b32.xlu0 %v8843_v40, %s5517_s10  ;;  %v8862_v40 = vpack.c.bf16 %v7448_v25, %v8818_v54  ;;  %v4110_v25 = vpack.c.bf16 %v7606_v20, %v7606_v20 }
 0x690   : > { %3866 = vrot.lane.b32.xlu1 %v8844_v51, %s5514_s15 }
 0x693   : > { %4170 = vrot.lane.b32.xlu0 %v8845_v17, %s5517_s10  ;;  %v8864_v17 = vld [vmem:[#allocation22_spill] sm:$0xff] }
 0x694   : > { %3538 = vrot.lane.b32.xlu1 %v3456_v19, %s5516_s23  ;;  %v8863_v19 = vld [vmem:[#allocation34_spill] sm:$0xff] }
 0x695   : > { %v8865_v10 = vpack.c.bf16 %v8863_v19, %v8864_v17 }
 0x697   : > { %4166 = vrot.lane.b32.xlu0 %v8847_v11, %s5517_s10 }
 0x698   : > { %3860 = vrot.lane.b32.xlu1 %v3801_v28, %s5514_s15  ;;  %v8866_v28 = vld [vmem:[#allocation41_spill] sm:$0xff] }
 0x69b   : > { %4182 = vrot.lane.b32.xlu0 %v4102_v0, %s5517_s10  ;;  %v8867_v0 = vpack.c.bf16 %v7443_v3, %v8827_v9 }
 0x69c   : > { %4168 = vrot.lane.b32.xlu1 %v8849_v15, %s5517_s10 }
 0x69f   : > { %4178 = vrot.lane.b32.xlu0 %v4100_v22, %s5517_s10  ;;  %v4109_v22 = vpack.c.bf16 %v7613_v4, %v7613_v4 }
 0x6a0   : > { %3872 = vrot.lane.b32.xlu1 %v8851_v56, %s5514_s15  ;;  %v7960_v2 = vpop.permute.xlu0 %3886 }
 0x6a3   : > { %4190 = vrot.lane.b32.xlu0 %v4106_v62, %s5517_s10  ;;  %v4111_v62 = vpack.c.bf16 %v7567_v63, %v7567_v63 }
 0x6a4   : > { %3870 = vrot.lane.b32.xlu1 %v8852_v13, %s5514_s15  ;;  %v7971_v60 = vpop.permute.xlu0 %3520 }
 0x6a5   : > { %v3564_v55 = vsel %vm665_vm2, %v7949_v59, %v7971_v60 }
 0x6a7   : > { %4194 = vrot.lane.b32.xlu0 %v4108_v31, %s5517_s10 }
 0x6a8   : > { %4180 = vrot.lane.b32.xlu1 %v4101_v35, %s5517_s10  ;;  %v7979_v50 = vpop.permute.xlu0 %3854  ;;  %v7981_v53 = vpop.permute.xlu1 %3850 }
 0x6ab   : > { %4150 = vrot.lane.b32.xlu0 %v4092_v30, %s5517_s10 }
 0x6ac   : > { %3884 = vrot.lane.b32.xlu1 %v7781_v42, %s5514_s15  ;;  %v7987_v32 = vpop.permute.xlu0 %3878  ;;  %v7989_v36 = vpop.permute.xlu1 %3874  ;;  %v4107_v42 = vpack.c.bf16 %v8858_v14, %v8858_v14 }
 0x6af   : > { %4160 = vrot.lane.b32.xlu0 %v8857_v6, %s5517_s10 }
 0x6b0   : > { %3896 = vrot.lane.b32.xlu1 %v3813_v5, %s5514_s15 }
 0x6b1   : > { %v7998_v18 = vpop.permute.xlu0 %3890 }
 0x6b2   : > { %v8000_v7 = vpop.permute.xlu1 %3852 }
 0x6b3   : > { %4164 = vrot.lane.b32.xlu0 %v8860_v43, %s5517_s10 }
 0x6b4   : > { %4192 = vrot.lane.b32.xlu1 %v4107_v42, %s5517_s10 }
 0x6b5   : > { %v8009_v44 = vpop.permute.xlu0 %3526 }
 0x6b6   : > { %v8011_v39 = vpop.permute.xlu1 %3876 }
 0x6b7   : > { %4174 = vrot.lane.b32.xlu0 %v7761_v48, %s5517_s10  ;;  %v4105_v48 = vpack.c.bf16 %v7434_v47, %v8820_v52  ;;  %v4433_v47 = vld [vmem:[%s8517_s7] sm:$0xff] }
 0x6b8   : > { %4148 = vrot.lane.b32.xlu1 %v4091_v23, %s5517_s10 }
 0x6b9   : > { %v8017_v33 = vpop.permute.xlu0 %3858 }
 0x6ba   : > { %v8019_v1 = vpop.permute.xlu1 %3888 }
 0x6bb   : > { %4184 = vrot.lane.b32.xlu0 %v8862_v40, %s5517_s10 }
 0x6bc   : > { %4152 = vrot.lane.b32.xlu1 %v4093_v29, %s5517_s10 }
 0x6bd   : > { %v8027_v51 = vpop.permute.xlu0 %3882 }
 0x6be   : > { %v3523_v46 = vpop.permute.xlu1 %3522 }
 0x6bf   : > { %4188 = vrot.lane.b32.xlu0 %v4105_v48, %s5517_s10  ;;  %v3565_v63 = vsel %vm665_vm2, %v7971_v60, %v3523_v46 }
 0x6c0   : > { %4162 = vrot.lane.b32.xlu1 %v8865_v10, %s5517_s10 }
 0x6c1   : > { %v3543_v26 = vpop.permute.xlu0 %3542 }
 0x6c2   : > { %v3525_v54 = vpop.permute.xlu1 %3524 }
 0x6c3   : > { %4198 = vrot.lane.b32.xlu0 %v4110_v25, %s5517_s10  ;;  %v3567_v59 = vsel %vm665_vm2, %v3525_v54, %v8009_v44  ;;  %v3566_v34 = vsel %vm665_vm2, %v3523_v46, %v3525_v54 }
 0x6c4   : > { %4172 = vrot.lane.b32.xlu1 %v8866_v28, %s5517_s10 }
 0x6c5   : > { %v3511_v52 = vpop.permute.xlu0 %3510 }
 0x6c6   : > { %v8044_v11 = vpop.permute.xlu1 %3528 }
 0x6c7   : > { %4436 = vperm.xlu0 %5042, %v4433_v47  }
 0x6c8   : > { %4176 = vrot.lane.b32.xlu1 %v7735_v27, %s5517_s10 }
 0x6c9   : > { %v8048_v38 = vpop.permute.xlu0 %3546 }
 0x6ca   : > { %v8050_v20 = vpop.permute.xlu1 %3856 }
 0x6cb   : > { %4625 = vperm.xlu0 %5042, %v4433_v47  }
 0x6cc   : > { %4186 = vrot.lane.b32.xlu1 %v8867_v0, %s5517_s10 }
 0x6cd   : > { %v3513_v15 = vpop.permute.xlu0 %3512 }
 0x6ce   : > { %v8056_v24 = vpop.permute.xlu1 %3880  ;;  %v3561_v49 = vsel %vm665_vm2, %v3511_v52, %v3513_v15 }
 0x6d0   : > { %4196 = vrot.lane.b32.xlu1 %v4109_v22, %s5517_s10 }
 0x6d1   : > { %v3517_v56 = vpop.permute.xlu0 %3516 }
 0x6d2   : > { %v8061_v27 = vpop.permute.xlu1 %3892 }
 0x6d4   : > { %4200 = vrot.lane.b32.xlu1 %v4111_v62, %s5517_s10 }
 0x6d5   : > { %v8066_v13 = vpop.permute.xlu0 %3550 }
 0x6d6   : > { %v3507_v3 = vpop.permute.xlu1 %3506 }
 0x6d8   : > { %4531 = vperm.xlu1 %5041, %v4433_v47  }
 0x6d9   : > { %v8068_v9 = vpop.permute.xlu0 %3862 }
 0x6da   : > { %v3509_v31 = vpop.permute.xlu1 %3508 }
 0x6db   : > { %v3560_v21 = vsel %vm665_vm2, %v3509_v31, %v3511_v52  ;;  %v3559_v4 = vsel %vm665_vm2, %v3507_v3, %v3509_v31 }
 0x6dc   : > { %4719 = vperm.xlu1 %5041, %v4433_v47   ;;  %3623 = vmatprep.subr.bf16.mxu1 %v3560_v21 }
 0x6dd   : > { %v8072_v35 = vpop.permute.xlu0 %3864  ;;  %3624 = vmatpush1.bf16.msra.mxu1 %v3559_v4 }
 0x6de   : > { %3625 = vmatprep.subr.bf16.mxu1 %v3565_v63  ;;  %v3545_v58 = vpop.permute.xlu1 %3544 }
 0x6df   : > { %v3574_v40 = vsel %vm665_vm2, %v3543_v26, %v3545_v58  ;;  %v3575_v19 = vsel %vm665_vm2, %v3545_v58, %v8048_v38  ;;  %v3558_v26 = vsel %vm665_vm2, %v7836_v16, %v7965_v12  ;;  %v3568_v16 = vsel %vm665_vm2, %v8009_v44, %v8044_v11  ;;  %v8868_v58 = vld [vmem:[#allocation56_spill] sm:$0xff] }
 0x6e0   : > { %v3604_v46 = vsel %vm1799_vm8, %v3574_v40, 0 }
 0x6e1   : > { %v3535_v30 = vpop.permute.xlu0 %3534  ;;  %3626 = vmatpush1.bf16.msra.mxu1 %v3564_v55  ;;  %v8869_v55 = vld [vmem:[#allocation50_spill] sm:$0xff] }
 0x6e2   : > { %v3549_v5 = vpop.permute.xlu1 %3548 }
 0x6e3   : > { %v3576_v3 = vsel %vm665_vm2, %v8048_v38, %v3549_v5  ;;  %v3577_v44 = vsel %vm665_vm2, %v3549_v5, %v8066_v13 }
 0x6e4   : > { %v3610_v4 = vsel %vm1799_vm8, %v3576_v3, 0 }
 0x6e5   : > { %v8079_v37 = vpop.permute.xlu0 %3894 }
 0x6e6   : > { %v3553_v61 = vpop.permute.xlu1 %3552 }
 0x6e7   : > { %v3578_v31 = vsel %vm665_vm2, %v8066_v13, %v3553_v61  ;;  %v8871_v13 = vld [vmem:[#allocation45_spill] sm:$0xff] }
 0x6e8   : > { %v3616_v38 = vsel %vm1799_vm8, %v3578_v31, 0 }
 0x6e9   : > { %v8081_v6 = vpop.permute.xlu0 %4146 }
 0x6ea   : > { %v3515_v14 = vpop.permute.xlu1 %3514 }
 0x6eb   : > { %v3562_v42 = vsel %vm665_vm2, %v3513_v15, %v3515_v14  ;;  %v3563_v47 = vsel %vm665_vm2, %v3515_v14, %v3517_v56  ;;  %v8870_v14 = vld [vmem:[#allocation44_spill] sm:$0xff] }
 0x6ec   : > { %3664 = vmatprep.subr.bf16.mxu0 %v3562_v42  ;;  %v3901_v5 = vsel %vm366_vm0, %v8871_v13, %v8870_v14  ;;  %v8872_v42 = vld [vmem:[#allocation36_spill] sm:$0xff] }
 0x6ed   : > { %v8085_v43 = vpop.permute.xlu0 %4142  ;;  %3665 = vmatpush1.bf16.msra.mxu0 %v3561_v49  ;;  %v3898_v49 = vsel %vm366_vm0, %v8872_v42, %v8869_v55 }
 0x6ee   : > { %3666 = vmatprep.subr.bf16.mxu0 %v3567_v59  ;;  %v3531_v60 = vpop.permute.xlu1 %3530  ;;  %v3900_v59 = vsel %vm366_vm0, %v8868_v58, %v8871_v13 }
 0x6f1   : > { %v3537_v8 = vpop.permute.xlu0 %3536  ;;  %3667 = vmatpush1.bf16.msra.mxu0 %v3566_v34  ;;  %v3904_v34 = vsel %vm366_vm0, %v8000_v7, %v7979_v50 }
 0x6f2   : > { %v3533_v23 = vpop.permute.xlu1 %3532 }
 0x6f3   : > { %v3569_v57 = vsel %vm665_vm2, %v3531_v60, %v3533_v23  ;;  %v3570_v29 = vsel %vm665_vm2, %v3533_v23, %v3535_v30 }
 0x6f4   : > { %3627 = vmatprep.subr.bf16.mxu1 %v3570_v29  ;;  %v3905_v29 = vsel %vm366_vm0, %v7979_v50, %v8050_v20 }
 0x6f5   : > { %v3541_v48 = vpop.permute.xlu0 %3540  ;;  %3628 = vmatpush1.bf16.msra.mxu1 %v3569_v57  ;;  %v3903_v57 = vsel %vm366_vm0, %v7981_v53, %v8000_v7  ;;  %v3908_v53 = vsel %vm366_vm0, %v8068_v9, %v8072_v35  ;;  %v3914_v7 = vsel %vm366_vm0, %v8011_v39, %v7987_v32  ;;  %v3918_v9 = vsel %vm366_vm0, %v7960_v2, %v8019_v1 }
 0x6f6   : > { %4906 = vmatprep.subr.msk.bf16.mxu1 %vm1799_vm8, %v3575_v19  ;;  %v8096_v17 = vpop.permute.xlu1 %4144  ;;  %v3919_v2 = vsel %vm366_vm0, %v8019_v1, %v7998_v18 }
 0x6f9   : > { %v8099_v10 = vpop.permute.xlu0 %4158  ;;  %3630 = vmatpush1.bf16.msra.mxu1 %v3604_v46 }
 0x6fa   : > { %3703 = vmatprep.subr.bf16.mxu1 %v7965_v12  ;;  %v8102_v25 = vpop.permute.xlu1 %3848 }
 0x6fc   : > { %4907 = vmatmul.mubr.msk.bf16.vlgmr.msra.gmra.mrb[52].mxu1 %vm1795_vm9, %v7740_v45 }
 0x6fd   : > { %v8109_v54 = vpop.permute.xlu0 %3868  ;;  %3704 = vmatpush1.bf16.msra.mxu1 %v3558_v26  ;;  %3735 = vmatprep.mubr.bf16.mxu1 %v8693_v41 }
 0x6fe   : > { %3705 = vmatprep.subr.bf16.mxu1 %v3517_v56  ;;  %v8112_v28 = vpop.permute.xlu1 %4156  ;;  %v3571_v56 = vsel %vm665_vm2, %v3535_v30, %v3537_v8  ;;  %v3899_v30 = vsel %vm366_vm0, %v8869_v55, %v8868_v58 }
 0x701   : > { %v8115_v52 = vpop.permute.xlu0 %4154  ;;  %3706 = vmatpush1.bf16.msra.mxu1 %v3563_v47 }
 0x702   : > { %3707 = vmatprep.subr.bf16.mxu1 %v8044_v11  ;;  %v3867_v0 = vpop.permute.xlu1 %3866 }
 0x703   : > { %v3910_v50 = vsel %vm366_vm0, %v3867_v0, %v8109_v54 }
 0x705   : > { %v8121_v12 = vpop.permute.xlu0 %4170  ;;  %3708 = vmatpush1.bf16.msra.mxu1 %v3568_v16  ;;  %v3921_v16 = vsel %vm366_vm0, %v8061_v27, %v8079_v37 }
 0x706   : > { %3709 = vmatprep.subr.bf16.mxu1 %v3541_v48  ;;  %v3539_v15 = vpop.permute.xlu1 %3538 }
 0x707   : > { %v3573_v22 = vsel %vm665_vm2, %v3539_v15, %v3541_v48  ;;  %v3572_v62 = vsel %vm665_vm2, %v3537_v8, %v3539_v15  ;;  %v3906_v8 = vsel %vm366_vm0, %v8050_v20, %v8017_v33  ;;  %v3909_v48 = vsel %vm366_vm0, %v8072_v35, %v3867_v0 }
 0x708   : > { %3668 = vmatprep.subr.bf16.mxu0 %v3572_v62  ;;  %v3916_v20 = vsel %vm366_vm0, %v8056_v24, %v8027_v51  ;;  %v3913_v35 = vsel %vm366_vm0, %v7989_v36, %v8011_v39  ;;  %v3920_v0 = vsel %vm366_vm0, %v7998_v18, %v8061_v27  ;;  %v4203_v27 = vsel %vm1169_vm3, %v8096_v17, %v8081_v6 }
 0x709   : > { %v8130_v21 = vpop.permute.xlu0 %4166  ;;  %3669 = vmatpush1.bf16.msra.mxu0 %v3571_v56  ;;  %3710 = vmatpush1.bf16.msra.mxu1 %v3573_v22  ;;  %v3954_v39 = vsel %vm1799_vm8, %v3920_v0, 0  ;;  %v3902_v56 = vsel %vm366_vm0, %v8870_v14, %v8102_v25 }
 0x70a   : > { %4908 = vmatprep.subr.msk.bf16.mxu0 %vm1799_vm8, %v3577_v44  ;;  %4910 = vmatprep.subr.msk.bf16.mxu1 %vm1799_vm8, %v3553_v61  ;;  %v8136_v11 = vpop.permute.xlu1 %3860  ;;  %v4202_v44 = vsel %vm1169_vm3, %v8085_v43, %v8096_v17  ;;  %v4207_v17 = vsel %vm1169_vm3, %v8115_v52, %v8112_v28 }
 0x70b   : > { %v3907_v43 = vsel %vm366_vm0, %v8017_v33, %v8136_v11 }
 0x70d   : > { %v8140_v63 = vpop.permute.xlu0 %4182  ;;  %3671 = vmatpush1.bf16.msra.mxu0 %v3610_v4  ;;  %3712 = vmatpush1.bf16.msra.mxu1 %v3616_v38 }
 0x70e   : > { %3965 = vmatprep.subr.bf16.mxu0 %v3899_v30  ;;  %4006 = vmatprep.subr.bf16.mxu1 %v3901_v5  ;;  %v8148_v61 = vpop.permute.xlu1 %4168 }
 0x70f   : > { %v4213_v30 = vsel %vm1169_vm3, %v8148_v61, %v8121_v12 }
 0x710   : > { %4909 = vmatmul.mubr.msk.bf16.vlgmr.msra.gmra.mrb[56].mxu0 %vm1795_vm9, %v7740_v45  ;;  %4911 = vmatmul.mubr.msk.bf16.vlgmr.msra.gmra.mrb[56].mxu1 %vm1795_vm9, %v7740_v45 }
 0x711   : > { %v8160_v60 = vpop.permute.xlu0 %4178  ;;  %3966 = vmatpush1.bf16.msra.mxu0 %v3898_v49  ;;  %4007 = vmatpush1.bf16.msra.mxu1 %v3900_v59 }
 0x712   : > { %3967 = vmatprep.subr.bf16.mxu0 %v3904_v34  ;;  %4008 = vmatprep.subr.bf16.mxu1 %v3906_v8  ;;  %v8168_v23 = vpop.permute.xlu1 %3872 }
 0x713   : > { %3997 = vmatprep.mubr.bf16.mxu0 %v8693_v41  ;;  %4038 = vmatprep.mubr.bf16.mxu1 %v8693_v41 }
 0x715   : > { %v8178_v40 = vpop.permute.xlu0 %4190  ;;  %3968 = vmatpush1.bf16.msra.mxu0 %v3903_v57  ;;  %4009 = vmatpush1.bf16.msra.mxu1 %v3905_v29 }
 0x716   : > { %3969 = vmatprep.subr.bf16.mxu0 %v3909_v48  ;;  %v8182_v19 = vpop.permute.xlu1 %3870 }
 0x717   : > { %v3911_v46 = vsel %vm366_vm0, %v8109_v54, %v8182_v19  ;;  %v3915_v54 = vsel %vm366_vm0, %v7987_v32, %v8056_v24  ;;  %v3948_v32 = vsel %vm1799_vm8, %v3918_v9, 0  ;;  %v3912_v33 = vsel %vm366_vm0, %v8182_v19, %v8168_v23 }
 0x718   : > { %4010 = vmatprep.subr.bf16.mxu1 %v3911_v46 }
 0x719   : > { %3970 = vmatpush1.bf16.msra.mxu0 %v3908_v53  ;;  %4011 = vmatpush1.bf16.msra.mxu1 %v3910_v50  ;;  %v8200_v47 = vpop.permute.xlu0 %4194 }
 0x71a   : > { %3971 = vmatprep.subr.bf16.mxu0 %v3914_v7  ;;  %4012 = vmatprep.subr.bf16.mxu1 %v3916_v20  ;;  %v8198_v26 = vpop.permute.xlu1 %4180 }
 0x71b   : > { %v4217_v42 = vsel %vm1169_vm3, %v8160_v60, %v8198_v26 }
 0x71d   : > { %3972 = vmatpush1.bf16.msra.mxu0 %v3913_v35  ;;  %4013 = vmatpush1.bf16.msra.mxu1 %v3915_v54  ;;  %v8224_v24 = vpop.permute.xlu0 %4150 }
 0x71e   : > { %4912 = vmatprep.subr.msk.bf16.mxu0 %vm1799_vm8, %v3919_v2  ;;  %4914 = vmatprep.subr.msk.bf16.mxu1 %vm1799_vm8, %v3921_v16  ;;  %v3885_v36 = vpop.permute.xlu1 %3884 }
 0x71f   : > { %v3917_v5 = vsel %vm366_vm0, %v8027_v51, %v3885_v36 }
 0x721   : > { %3974 = vmatpush1.bf16.msra.mxu0 %v3948_v32  ;;  %4015 = vmatpush1.bf16.msra.mxu1 %v3954_v39  ;;  %v3340_v15 = vpop.f32.mrb[48].mxu1  ;;  %v4161_v55 = vpop.permute.xlu0 %4160 }
 0x722   : > { %v3299_v22 = vpop.f32.mrb[48].mxu0  ;;  %4047 = vmatprep.subr.bf16.mxu0 %v8102_v25  ;;  %4269 = vmatprep.subr.bf16.mxu1 %v4203_v27  ;;  %v3897_v18 = vpop.permute.xlu1 %3896  ;;  %v4208_v25 = vsel %vm1169_vm3, %v8112_v28, %v8099_v10  ;;  %v4212_v28 = vsel %vm1169_vm3, %v8130_v21, %v8148_v61 }
 0x723   : > { %v3301_v1 = vpop.f32.mrb[49].mxu0  ;;  %4404 = vrot.lane.b32.xlu0 %v3299_v22, %s5519_s22  ;;  %v3342_v62 = vpop.f32.mrb[49].mxu1  ;;  %v3922_v21 = vsel %vm366_vm0, %v8079_v37, %v3897_v18 }
 0x724   : > { %4406 = vrot.lane.b32.xlu1 %v3301_v1, %s5519_s22  ;;  %4913 = vmatmul.mubr.msk.bf16.vlgmr.msra.gmra.mrb[60].mxu0 %vm1795_vm9, %v7740_v45  ;;  %v3303_v3 = vpop.f32.mrb[50].mxu0  ;;  %v3344_v31 = vpop.f32.mrb[50].mxu1  ;;  %v3960_v51 = vsel %vm1799_vm8, %v3922_v21, 0 }
 0x725   : > { %4915 = vmatmul.mubr.msk.bf16.vlgmr.msra.gmra.mrb[60].mxu1 %vm1795_vm9, %v7740_v45  ;;  %4048 = vmatpush1.bf16.msra.mxu0 %v3902_v56  ;;  %v3304_v4 = vpop.f32.mrb[51].mxu0  ;;  %v3345_v58 = vpop.f32.mrb[51].mxu1 }
 0x726   : > { %4270 = vmatpush1.bf16.msra.mxu1 %v4202_v44  ;;  %4049 = vmatprep.subr.bf16.mxu0 %v8136_v11  ;;  %v4193_v38 = vpop.permute.xlu1 %4192  ;;  %v4165_v52 = vpop.permute.xlu0 %4164  ;;  %v4218_v11 = vsel %vm1169_vm3, %v8198_v26, %v8140_v63 }
 0x727   : > { %4271 = vmatprep.subr.bf16.mxu1 %v4208_v25  ;;  %4408 = vrot.lane.b32.xlu0 %v3340_v15, %s5519_s22  ;;  %v4222_v61 = vsel %vm1169_vm3, %v8178_v40, %v4193_v38  ;;  %v4223_v49 = vsel %vm1169_vm3, %v4193_v38, %v8200_v47 }
 0x728   : > { %4410 = vrot.lane.b32.xlu1 %v3342_v62, %s5519_s22  ;;  %4079 = vmatprep.mubr.bf16.mxu0 %v8693_v41  ;;  %v4252_v60 = vsel %vm1799_vm8, %v4222_v61, 0 }
 0x729   : > { %4050 = vmatpush1.bf16.msra.mxu0 %v3907_v43  ;;  %4301 = vmatprep.mubr.bf16.mxu1 %v8693_v41 }
 0x72a   : > { %4272 = vmatpush1.bf16.msra.mxu1 %v4207_v17  ;;  %4051 = vmatprep.subr.bf16.mxu0 %v8168_v23  ;;  %v4149_v14 = vpop.permute.xlu1 %4148  ;;  %v4175_v34 = vpop.permute.xlu0 %4174 }
 0x72b   : > { %4273 = vmatprep.subr.bf16.mxu1 %v4213_v30  ;;  %v4205_v37 = vsel %vm1169_vm3, %v4149_v14, %v8224_v24  ;;  %v4204_v29 = vsel %vm1169_vm3, %v8081_v6, %v4149_v14  ;;  %v4209_v6 = vsel %vm1169_vm3, %v8099_v10, %v4161_v55 }
 0x72d   : > { %4052 = vmatpush1.bf16.msra.mxu0 %v3912_v33 }
 0x72e   : > { %4274 = vmatpush1.bf16.msra.mxu1 %v4212_v28  ;;  %4053 = vmatprep.subr.bf16.mxu0 %v3885_v36  ;;  %v4153_v13 = vpop.permute.xlu1 %4152  ;;  %v4185_v40 = vpop.permute.xlu0 %4184 }
 0x72f   : > { %4275 = vmatprep.subr.bf16.mxu1 %v4218_v11  ;;  %v4206_v48 = vsel %vm1169_vm3, %v8224_v24, %v4153_v13  ;;  %v4219_v0 = vsel %vm1169_vm3, %v8140_v63, %v4185_v40 }
 0x731   : > { %4054 = vmatpush1.bf16.msra.mxu0 %v3917_v5 }
 0x732   : > { %4276 = vmatpush1.bf16.msra.mxu1 %v4217_v42  ;;  %4916 = vmatprep.subr.msk.bf16.mxu0 %vm1799_vm8, %v3897_v18  ;;  %v4163_v59 = vpop.permute.xlu1 %4162  ;;  %v4189_v9 = vpop.permute.xlu0 %4188 }
 0x733   : > { %4918 = vmatprep.subr.msk.bf16.mxu1 %vm1799_vm8, %v4223_v49  ;;  %v4210_v46 = vsel %vm1169_vm3, %v4161_v55, %v4163_v59  ;;  %v4211_v7 = vsel %vm1169_vm3, %v4163_v59, %v4165_v52 }
 0x735   : > { %4056 = vmatpush1.bf16.msra.mxu0 %v3960_v51 }
 0x736   : > { %4278 = vmatpush1.bf16.msra.mxu1 %v4252_v60  ;;  %4310 = vmatprep.subr.bf16.mxu0 %v4205_v37  ;;  %v4173_v8 = vpop.permute.xlu1 %4172  ;;  %v4199_v16 = vpop.permute.xlu0 %4198 }
 0x737   : > { %v3381_v23 = vpop.f32.mrb[52].mxu0  ;;  %4351 = vmatprep.subr.bf16.mxu1 %v4153_v13  ;;  %v4215_v20 = vsel %vm1169_vm3, %v4173_v8, %v4175_v34  ;;  %v4214_v35 = vsel %vm1169_vm3, %v8121_v12, %v4173_v8 }
 0x738   : > { %v3383_v57 = vpop.f32.mrb[53].mxu0  ;;  %4412 = vrot.lane.b32.xlu0 %v3381_v23, %s5519_s22  ;;  %4917 = vmatmul.mubr.msk.bf16.vlgmr.msra.gmra.mrb[64].mxu0 %vm1795_vm9, %v7740_v45  ;;  %v4392_v23 = vld [vmem:[#allocation2] sm:$0xff] }
 0x739   : > { %4414 = vrot.lane.b32.xlu1 %v3383_v57, %s5519_s22  ;;  %4919 = vmatmul.mubr.msk.bf16.vlgmr.msra.gmra.mrb[64].mxu1 %vm1795_vm9, %v7740_v45  ;;  %v3385_v19 = vpop.f32.mrb[54].mxu0 }
 0x73a   : > { %4311 = vmatpush1.bf16.msra.mxu0 %v4204_v29  ;;  %4352 = vmatpush1.bf16.msra.mxu1 %v4206_v48  ;;  %v4177_v53 = vpop.permute.xlu1 %4176  ;;  %v3386_v50 = vpop.f32.mrb[55].mxu0  ;;  %v4393_v29 = vld [vmem:[#allocation2 + $0x8] sm:$0xff] }
 0x73b   : > { %4312 = vmatprep.subr.bf16.mxu0 %v4210_v46  ;;  %4353 = vmatprep.subr.bf16.mxu1 %v4165_v52  ;;  %v4216_v54 = vsel %vm1169_vm3, %v4175_v34, %v4177_v53 }
 0x73c   : > { %4342 = vmatprep.mubr.bf16.mxu0 %v8693_v41  ;;  %4383 = vmatprep.mubr.bf16.mxu1 %v8693_v41 }
 0x73e   : > { %4313 = vmatpush1.bf16.msra.mxu0 %v4209_v6  ;;  %4354 = vmatpush1.bf16.msra.mxu1 %v4211_v7  ;;  %v4187_v26 = vpop.permute.xlu1 %4186 }
 0x73f   : > { %4314 = vmatprep.subr.bf16.mxu0 %v4215_v20  ;;  %4355 = vmatprep.subr.bf16.mxu1 %v4177_v53  ;;  %v4220_v41 = vsel %vm1169_vm3, %v4185_v40, %v4187_v26  ;;  %v4221_v2 = vsel %vm1169_vm3, %v4187_v26, %v4189_v9  ;;  %v4394_v26 = vld [vmem:[#allocation2 + $0x10] sm:$0xff] }
 0x742   : > { %4315 = vmatpush1.bf16.msra.mxu0 %v4214_v35  ;;  %4356 = vmatpush1.bf16.msra.mxu1 %v4216_v54  ;;  %v4197_v10 = vpop.permute.xlu1 %4196 }
 0x743   : > { %4316 = vmatprep.subr.bf16.mxu0 %v4220_v41  ;;  %4357 = vmatprep.subr.bf16.mxu1 %v4189_v9  ;;  %v4224_v36 = vsel %vm1169_vm3, %v8200_v47, %v4197_v10  ;;  %v4225_v12 = vsel %vm1169_vm3, %v4197_v10, %v4199_v16  ;;  %v4395_v10 = vld [vmem:[#allocation2 + $0x18] sm:$0xff] }
 0x744   : > { %v4258_v63 = vsel %vm1799_vm8, %v4224_v36, 0 }
 0x746   : > { %4317 = vmatpush1.bf16.msra.mxu0 %v4219_v0  ;;  %4358 = vmatpush1.bf16.msra.mxu1 %v4221_v2  ;;  %v4201_v32 = vpop.permute.xlu1 %4200  ;;  %v4437_v14 = vpop.permute.xlu0 %4436 }
 0x747   : > { %4920 = vmatprep.subr.msk.bf16.mxu0 %vm1799_vm8, %v4225_v12  ;;  %v4226_v39 = vsel %vm1169_vm3, %v4199_v16, %v4201_v32  ;;  %4922 = vmatprep.subr.msk.bf16.mxu1 %vm1799_vm8, %v4201_v32 }
 0x748   : > { %v4264_v24 = vsel %vm1799_vm8, %v4226_v39, 0  ;;  %v4396_v39 = vld [vmem:[#allocation2 + $0x20] sm:$0xff] }
 0x74a   : > { %4319 = vmatpush1.bf16.msra.mxu0 %v4258_v63  ;;  %4360 = vmatpush1.bf16.msra.mxu1 %v4264_v24  ;;  %v8337_v49 = vpop.permute.xlu0 %4625 }
 0x74d   : > { %4921 = vmatmul.mubr.msk.bf16.vlgmr.msra.gmra.mrb[68].mxu0 %vm1795_vm9, %v7740_v45  ;;  %4923 = vmatmul.mubr.msk.bf16.vlgmr.msra.gmra.mrb[68].mxu1 %vm1795_vm9, %v7740_v45 }
 0x757   : > { %v8332_v33 = vpop.permute.xlu1 %4531 }
 0x75b   : > { %v8339_v59 = vpop.permute.xlu1 %4719 }
 0x795   : > { %v4405_v34 = vpop.permute.xlu0 %4404 }
 0x796   : > { %v4407_v51 = vpop.permute.xlu1 %4406  ;;  %v4427_v57 = vadd.f32 %v4405_v34, %v4392_v23 }
 0x797   : > { %v4416_v8 = vsel %vm324_vm4, %v4405_v34, %v4407_v51 }
 0x798   : > { %v4428_v19 = vadd.f32 %v4416_v8, %v4393_v29  ;;  %v4439_v54 = vadd.f32 %v4437_v14, %v4427_v57  ;;  %v4491_v8 = vld [vmem:[#allocation2 + $0x50] sm:$0xff] }
 0x799   : > { %v4409_v60 = vpop.permute.xlu0 %4408 }
 0x79a   : > { %v4411_v37 = vpop.permute.xlu1 %4410  ;;  %v4417_v46 = vsel %vm324_vm4, %v4407_v51, %v4409_v60  ;;  %v4440_v2 = vadd.f32 %v4437_v14, %v4428_v19  ;;  %v4445_v24 = vmax.f32 %v4439_v54, 0.0 }
 0x79b   : > { %v4418_v6 = vsel %vm324_vm4, %v4409_v60, %v4411_v37  ;;  %v4429_v41 = vadd.f32 %v4417_v46, %v4394_v26  ;;  %v4581_v26 = vld [vmem:[#allocation2 + $0x60] sm:$0xff] }
 0x79c   : > { %v4430_v36 = vadd.f32 %v4418_v6, %v4395_v10 }
 0x79d   : > { %v4441_v63 = vadd.f32 %v4437_v14, %v4429_v41  ;;  %v4582_v41 = vld [vmem:[#allocation2 + $0x68] sm:$0xff] }
 0x7aa   : > { %v4413_v40 = vpop.permute.xlu0 %4412 }
 0x7ab   : > { %v4415_v48 = vpop.permute.xlu1 %4414  ;;  %v4419_v12 = vsel %vm324_vm4, %v4411_v37, %v4413_v40 }
 0x7ac   : > { %v4420_v32 = vsel %vm324_vm4, %v4413_v40, %v4415_v48  ;;  %v4492_v48 = vld [vmem:[#allocation2 + $0x58] sm:$0xff] }
 0x7cf   : > { %v3655_v47 = vpop.f32.mrb[52].mxu1 }
 0x7d0   : > { %4499 = vrot.lane.b32.xlu0 %v3655_v47, %s5519_s22  ;;  %v3657_v27 = vpop.f32.mrb[53].mxu1  ;;  %v4431_v47 = vadd.f32 %v4419_v12, %v4396_v39  ;;  %v4583_v12 = vld [vmem:[#allocation2 + $0x70] sm:$0xff] }
 0x7d1   : > { %4501 = vrot.lane.b32.xlu1 %v3657_v27, %s5519_s22  ;;  %v3659_v15 = vpop.f32.mrb[54].mxu1  ;;  %v4397_v27 = vld [vmem:[#allocation2 + $0x28] sm:$0xff] }
 0x7d2   : > { %v3660_v22 = vpop.f32.mrb[55].mxu1  ;;  %v4446_v15 = vmax.f32 %v4440_v2, 0.0 }
 0x7d3   : > { %v4442_v22 = vadd.f32 %v4437_v14, %v4430_v36 }
 0x7e3   : > { %v3696_v18 = vpop.f32.mrb[56].mxu0  ;;  %v3737_v1 = vpop.f32.mrb[56].mxu1 }
 0x7e4   : > { %4503 = vrot.lane.b32.xlu0 %v3696_v18, %s5519_s22  ;;  %v3698_v62 = vpop.f32.mrb[57].mxu0  ;;  %v3739_v56 = vpop.f32.mrb[57].mxu1  ;;  %v4432_v18 = vadd.f32 %v4420_v32, %v4397_v27 }
 0x7e5   : > { %4505 = vrot.lane.b32.xlu1 %v3698_v62, %s5519_s22  ;;  %v3700_v3 = vpop.f32.mrb[58].mxu0  ;;  %v3741_v31 = vpop.f32.mrb[58].mxu1  ;;  %v4443_v62 = vadd.f32 %v4437_v14, %v4431_v47 }
 0x7e6   : > { %v3701_v44 = vpop.f32.mrb[59].mxu0  ;;  %v3742_v45 = vpop.f32.mrb[59].mxu1  ;;  %v4444_v3 = vadd.f32 %v4437_v14, %v4432_v18 }
 0x7e7   : > { %v4449_v31 = vmax.f32 %v4443_v62, 0.0  ;;  %v4487_v45 = vld [vmem:[#allocation2 + $0x30] sm:$0xff] }
 0x7e8   : > { %4507 = vrot.lane.b32.xlu0 %v3737_v1, %s5519_s22  ;;  %v4447_v1 = vmax.f32 %v4441_v63, 0.0  ;;  %v4450_v44 = vmax.f32 %v4444_v3, 0.0  ;;  %v4584_v63 = vld [vmem:[#allocation2 + $0x78] sm:$0xff]  ;;  %v4585_v3 = vld [vmem:[#allocation2 + $0x80] sm:$0xff] }
 0x7e9   : > { %4509 = vrot.lane.b32.xlu1 %v3739_v56, %s5519_s22  ;;  %v4448_v56 = vmax.f32 %v4442_v22, 0.0 }
 0x7f7   : > { %v3999_v4 = vpop.f32.mrb[60].mxu0 }
 0x7f8   : > { %4593 = vrot.lane.b32.xlu0 %v3999_v4, %s5519_s22  ;;  %v4001_v25 = vpop.f32.mrb[61].mxu0  ;;  %v4040_v38 = vpop.f32.mrb[60].mxu1 }
 0x7f9   : > { %4595 = vrot.lane.b32.xlu1 %v4001_v25, %s5519_s22  ;;  %v4003_v58 = vpop.f32.mrb[62].mxu0  ;;  %v4042_v55 = vpop.f32.mrb[61].mxu1 }
 0x7fa   : > { %v4004_v43 = vpop.f32.mrb[63].mxu0  ;;  %v4044_v17 = vpop.f32.mrb[62].mxu1  ;;  %v4488_v58 = vld [vmem:[#allocation2 + $0x38] sm:$0xff] }
 0x7fb   : > { %v4045_v30 = vpop.f32.mrb[63].mxu1 }
 0x7fc   : > { %4597 = vrot.lane.b32.xlu0 %v4040_v38, %s5519_s22 }
 0x7fd   : > { %4599 = vrot.lane.b32.xlu1 %v4042_v55, %s5519_s22 }
 0x80b   : > { %v4081_v28 = vpop.f32.mrb[64].mxu0 }
 0x80c   : > { %4601 = vrot.lane.b32.xlu0 %v4081_v28, %s5519_s22  ;;  %v4083_v52 = vpop.f32.mrb[65].mxu0  ;;  %v4303_v11 = vpop.f32.mrb[64].mxu1 }
 0x80d   : > { %4603 = vrot.lane.b32.xlu1 %v4083_v52, %s5519_s22  ;;  %v4085_v13 = vpop.f32.mrb[66].mxu0  ;;  %v4305_v5 = vpop.f32.mrb[65].mxu1 }
 0x80e   : > { %v4086_v42 = vpop.f32.mrb[67].mxu0  ;;  %v4307_v21 = vpop.f32.mrb[66].mxu1 }
 0x80f   : > { %v4308_v61 = vpop.f32.mrb[67].mxu1  ;;  %v4490_v21 = vld [vmem:[#allocation2 + $0x48] sm:$0xff] }
 0x810   : > { %4687 = vrot.lane.b32.xlu0 %v4303_v11, %s5519_s22  ;;  %v4489_v11 = vld [vmem:[#allocation2 + $0x40] sm:$0xff] }
 0x811   : > { %4689 = vrot.lane.b32.xlu1 %v4305_v5, %s5519_s22 }
 0x820   : > { %v4344_v53 = vpop.f32.mrb[68].mxu0  ;;  %v4385_v50 = vpop.f32.mrb[68].mxu1 }
 0x821   : > { %4691 = vrot.lane.b32.xlu0 %v4344_v53, %s5519_s22  ;;  %v4346_v7 = vpop.f32.mrb[69].mxu0  ;;  %v4387_v20 = vpop.f32.mrb[69].mxu1 }
 0x822   : > { %4693 = vrot.lane.b32.xlu1 %v4346_v7, %s5519_s22  ;;  %v4348_v9 = vpop.f32.mrb[70].mxu0  ;;  %v4389_v35 = vpop.f32.mrb[70].mxu1 }
 0x823   : > { %v4349_v0 = vpop.f32.mrb[71].mxu0  ;;  %v4390_v16 = vpop.f32.mrb[71].mxu1 }
 0x825   : > { %4695 = vrot.lane.b32.xlu0 %v4385_v50, %s5519_s22 }
 0x826   : > { %4697 = vrot.lane.b32.xlu1 %v4387_v20, %s5519_s22 }
 0x829   : > { %4457 = vrot.lane.b32.xlu0 %v4445_v24, %s5517_s10 }
 0x82a   : > { %4459 = vrot.lane.b32.xlu1 %v4446_v15, %s5517_s10 }
 0x82d   : > { %4461 = vrot.lane.b32.xlu0 %v4447_v1, %s5517_s10 }
 0x82e   : > { %4463 = vrot.lane.b32.xlu1 %v4448_v56, %s5517_s10 }
 0x831   : > { %4465 = vrot.lane.b32.xlu0 %v4449_v31, %s5517_s10 }
 0x832   : > { %4467 = vrot.lane.b32.xlu1 %v4450_v44, %s5517_s10 }
 0x842   : > { %v4500_v4 = vpop.permute.xlu0 %4499 }
 0x843   : > { %v4522_v25 = vadd.f32 %v4500_v4, %v4487_v45  ;;  %v4502_v38 = vpop.permute.xlu1 %4501 }
 0x844   : > { %v4511_v55 = vsel %vm324_vm4, %v4500_v4, %v4502_v38  ;;  %v4586_v4 = vld [vmem:[#allocation2 + $0x88] sm:$0xff] }
 0x845   : > { %v4534_v43 = vadd.f32 %v8332_v33, %v4522_v25  ;;  %v4523_v17 = vadd.f32 %v4511_v55, %v4488_v58  ;;  %v4675_v55 = vld [vmem:[#allocation2 + $0x90] sm:$0xff] }
 0x847   : > { %v4540_v30 = vmax.f32 %v4534_v43, 0.0  ;;  %v4535_v14 = vadd.f32 %v8332_v33, %v4523_v17 }
 0x849   : > { %v4541_v28 = vmax.f32 %v4535_v14, 0.0  ;;  %4552 = vrot.lane.b32.xlu0 %v4540_v30, %s5517_s10 }
 0x84b   : > { %4554 = vrot.lane.b32.xlu1 %v4541_v28, %s5517_s10 }
 0x856   : > { %v4504_v52 = vpop.permute.xlu0 %4503 }
 0x857   : > { %v4512_v13 = vsel %vm324_vm4, %v4502_v38, %v4504_v52  ;;  %v4506_v5 = vpop.permute.xlu1 %4505 }
 0x858   : > { %v4524_v42 = vadd.f32 %v4512_v13, %v4489_v11  ;;  %v4513_v61 = vsel %vm324_vm4, %v4504_v52, %v4506_v5  ;;  %v4676_v52 = vld [vmem:[#allocation2 + $0x98] sm:$0xff] }
 0x859   : > { %v4525_v34 = vadd.f32 %v4513_v61, %v4490_v21 }
 0x85a   : > { %v4536_v51 = vadd.f32 %v8332_v33, %v4524_v42  ;;  %v4508_v60 = vpop.permute.xlu0 %4507 }
 0x85b   : > { %v4537_v37 = vadd.f32 %v8332_v33, %v4525_v34  ;;  %v4514_v23 = vsel %vm324_vm4, %v4506_v5, %v4508_v60  ;;  %v4510_v57 = vpop.permute.xlu1 %4509 }
 0x85c   : > { %v4542_v29 = vmax.f32 %v4536_v51, 0.0  ;;  %v4526_v40 = vadd.f32 %v4514_v23, %v4491_v8  ;;  %v4515_v19 = vsel %vm324_vm4, %v4508_v60, %v4510_v57  ;;  %v4677_v51 = vld [vmem:[#allocation2 + $0xa0] sm:$0xff]  ;;  %v4678_v23 = vld [vmem:[#allocation2 + $0xa8] sm:$0xff] }
 0x85d   : > { %v4543_v46 = vmax.f32 %v4537_v37, 0.0  ;;  %v4527_v53 = vadd.f32 %v4515_v19, %v4492_v48 }
 0x85e   : > { %v4538_v50 = vadd.f32 %v8332_v33, %v4526_v40  ;;  %4556 = vrot.lane.b32.xlu0 %v4542_v29, %s5517_s10 }
 0x85f   : > { %v4539_v6 = vadd.f32 %v8332_v33, %v4527_v53  ;;  %4558 = vrot.lane.b32.xlu1 %v4543_v46, %s5517_s10  ;;  %v4679_v46 = vld [vmem:[#allocation2 + $0xb0] sm:$0xff] }
 0x860   : > { %v4544_v7 = vmax.f32 %v4538_v50, 0.0 }
 0x861   : > { %v4545_v20 = vmax.f32 %v4539_v6, 0.0 }
 0x862   : > { %4560 = vrot.lane.b32.xlu0 %v4544_v7, %s5517_s10 }
 0x863   : > { %4562 = vrot.lane.b32.xlu1 %v4545_v20, %s5517_s10  ;;  %v4680_v20 = vld [vmem:[#allocation2 + $0xb8] sm:$0xff] }
 0x86a   : > { %v4594_v9 = vpop.permute.xlu0 %4593 }
 0x86b   : > { %v4616_v35 = vadd.f32 %v4594_v9, %v4581_v26  ;;  %v4596_v54 = vpop.permute.xlu1 %4595 }
 0x86c   : > { %v4605_v10 = vsel %vm324_vm4, %v4594_v9, %v4596_v54 }
 0x86d   : > { %v4628_v0 = vadd.f32 %v8337_v49, %v4616_v35  ;;  %v4617_v16 = vadd.f32 %v4605_v10, %v4582_v41 }
 0x86e   : > { %v4598_v2 = vpop.permute.xlu0 %4597 }
 0x86f   : > { %v4634_v33 = vmax.f32 %v4628_v0, 0.0  ;;  %v4629_v36 = vadd.f32 %v8337_v49, %v4617_v16  ;;  %v4606_v32 = vsel %vm324_vm4, %v4596_v54, %v4598_v2  ;;  %v4600_v39 = vpop.permute.xlu1 %4599 }
 0x870   : > { %v4618_v24 = vadd.f32 %v4606_v32, %v4583_v12  ;;  %v4607_v47 = vsel %vm324_vm4, %v4598_v2, %v4600_v39 }
 0x871   : > { %v4635_v27 = vmax.f32 %v4629_v36, 0.0  ;;  %v4619_v15 = vadd.f32 %v4607_v47, %v4584_v63  ;;  %4646 = vrot.lane.b32.xlu0 %v4634_v33, %s5517_s10 }
 0x872   : > { %v4630_v22 = vadd.f32 %v8337_v49, %v4618_v24 }
 0x873   : > { %v4631_v18 = vadd.f32 %v8337_v49, %v4619_v15  ;;  %4648 = vrot.lane.b32.xlu1 %v4635_v27, %s5517_s10 }
 0x874   : > { %v4636_v1 = vmax.f32 %v4630_v22, 0.0 }
 0x875   : > { %v4637_v62 = vmax.f32 %v4631_v18, 0.0 }
 0x876   : > { %4650 = vrot.lane.b32.xlu0 %v4636_v1, %s5517_s10 }
 0x877   : > { %4652 = vrot.lane.b32.xlu1 %v4637_v62, %s5517_s10 }
 0x87e   : > { %v4602_v56 = vpop.permute.xlu0 %4601 }
 0x87f   : > { %v4608_v31 = vsel %vm324_vm4, %v4600_v39, %v4602_v56  ;;  %v4604_v44 = vpop.permute.xlu1 %4603 }
 0x880   : > { %v4620_v45 = vadd.f32 %v4608_v31, %v4585_v3  ;;  %v4609_v25 = vsel %vm324_vm4, %v4602_v56, %v4604_v44 }
 0x881   : > { %v4621_v38 = vadd.f32 %v4609_v25, %v4586_v4 }
 0x882   : > { %v4632_v58 = vadd.f32 %v8337_v49, %v4620_v45  ;;  %v4688_v43 = vpop.permute.xlu0 %4687 }
 0x883   : > { %v4633_v17 = vadd.f32 %v8337_v49, %v4621_v38  ;;  %v4710_v30 = vadd.f32 %v4688_v43, %v4675_v55  ;;  %v4690_v14 = vpop.permute.xlu1 %4689 }
 0x884   : > { %v4638_v28 = vmax.f32 %v4632_v58, 0.0  ;;  %v4699_v11 = vsel %vm324_vm4, %v4688_v43, %v4690_v14 }
 0x885   : > { %v4639_v13 = vmax.f32 %v4633_v17, 0.0  ;;  %v4722_v5 = vadd.f32 %v8339_v59, %v4710_v30  ;;  %v4711_v42 = vadd.f32 %v4699_v11, %v4676_v52 }
 0x886   : > { %4654 = vrot.lane.b32.xlu0 %v4638_v28, %s5517_s10 }
 0x887   : > { %v4728_v21 = vmax.f32 %v4722_v5, 0.0  ;;  %v4723_v61 = vadd.f32 %v8339_v59, %v4711_v42  ;;  %4656 = vrot.lane.b32.xlu1 %v4639_v13, %s5517_s10 }
 0x889   : > { %v4729_v34 = vmax.f32 %v4723_v61, 0.0 }
 0x88a   : > { %4740 = vrot.lane.b32.xlu0 %v4728_v21, %s5517_s10 }
 0x88b   : > { %4742 = vrot.lane.b32.xlu1 %v4729_v34, %s5517_s10 }
 0x893   : > { %v4692_v49 = vpop.permute.xlu0 %4691 }
 0x894   : > { %v4700_v60 = vsel %vm324_vm4, %v4690_v14, %v4692_v49  ;;  %v4694_v37 = vpop.permute.xlu1 %4693 }
 0x895   : > { %v4712_v8 = vadd.f32 %v4700_v60, %v4677_v51  ;;  %v4701_v57 = vsel %vm324_vm4, %v4692_v49, %v4694_v37 }
 0x896   : > { %v4713_v29 = vadd.f32 %v4701_v57, %v4678_v23 }
 0x897   : > { %v4724_v40 = vadd.f32 %v8339_v59, %v4712_v8  ;;  %v4696_v48 = vpop.permute.xlu0 %4695 }
 0x898   : > { %v4725_v19 = vadd.f32 %v8339_v59, %v4713_v29  ;;  %v4702_v53 = vsel %vm324_vm4, %v4694_v37, %v4696_v48  ;;  %v4698_v50 = vpop.permute.xlu1 %4697 }
 0x899   : > { %v4730_v6 = vmax.f32 %v4724_v40, 0.0  ;;  %v4714_v7 = vadd.f32 %v4702_v53, %v4679_v46  ;;  %v4703_v26 = vsel %vm324_vm4, %v4696_v48, %v4698_v50 }
 0x89a   : > { %v4731_v9 = vmax.f32 %v4725_v19, 0.0  ;;  %v4715_v35 = vadd.f32 %v4703_v26, %v4680_v20 }
 0x89b   : > { %v4726_v54 = vadd.f32 %v8339_v59, %v4714_v7  ;;  %v4458_v41 = vpop.permute.xlu0 %4457  ;;  %4744 = vrot.lane.b32.xlu0 %v4730_v6, %s5517_s10 }
 0x89c   : > { %v4727_v10 = vadd.f32 %v8339_v59, %v4715_v35  ;;  %4746 = vrot.lane.b32.xlu1 %v4731_v9, %s5517_s10  ;;  %v4460_v0 = vpop.permute.xlu1 %4459 }
 0x89d   : > { %v4732_v16 = vmax.f32 %v4726_v54, 0.0  ;;  %v4469_v2 = vsel %vm1169_vm3, %v4458_v41, %v4460_v0 }
 0x89e   : > { %v4733_v33 = vmax.f32 %v4727_v10, 0.0  ;;  %4480 = vst [vmem:[%s8408_s24] sm:$0xff] %v4469_v2 }
 0x89f   : > { %v4462_v36 = vpop.permute.xlu0 %4461  ;;  %4748 = vrot.lane.b32.xlu0 %v4732_v16, %s5517_s10 }
 0x8a0   : > { %v4470_v59 = vsel %vm1169_vm3, %v4460_v0, %v4462_v36  ;;  %4750 = vrot.lane.b32.xlu1 %v4733_v33, %s5517_s10  ;;  %v4464_v12 = vpop.permute.xlu1 %4463  ;;  %s4931_s10 = smul.u32 3072, %s5589_s9  ;;  %s4770_s9 = scalar_lea.sflag [#allocation6], %s5667_s12 }
 0x8a1   : > { %4481 = vst [vmem:[%s8408_s24 + $0x8] sm:$0xff] %v4470_v59  ;;  %v4471_v32 = vsel %vm1169_vm3, %v4462_v36, %v4464_v12 }
 0x8a2   : > { %4482 = vst [vmem:[%s8408_s24 + $0x10] sm:$0xff] %v4471_v32  ;;  %s8458_s20 = scalar_lea.hbm %s8518_s8, %s4931_s10 }
 0x8a3   : > { %v4466_v39 = vpop.permute.xlu0 %4465 }
 0x8a4   : > { %v4472_v24 = vsel %vm1169_vm3, %v4464_v12, %v4466_v39  ;;  %v4468_v63 = vpop.permute.xlu1 %4467 }
 0x8a5   : > { %4483 = vst [vmem:[%s8408_s24 + $0x18] sm:$0xff] %v4472_v24  ;;  %v4473_v47 = vsel %vm1169_vm3, %v4466_v39, %v4468_v63  ;;  %4486 = vst.msk [vmem:[%s8408_s24 + $0x28] sm:$0xff] %vm4485_vm10, %v4468_v63 }
 0x8a6   : > { %4484 = vst [vmem:[%s8408_s24 + $0x20] sm:$0xff] %v4473_v47 }
 0x8bb   : > { %v4553_v27 = vpop.permute.xlu0 %4552 }
 0x8bd   : > { %v4555_v15 = vpop.permute.xlu1 %4554 }
 0x8be   : > { %v4564_v22 = vsel %vm1169_vm3, %v4553_v27, %v4555_v15 }
 0x8bf   : > { %4575 = vst [vmem:[%s8408_s24 + $0x30] sm:$0xff] %v4564_v22 }
 0x8d0   : > { %v4557_v18 = vpop.permute.xlu0 %4556 }
 0x8d1   : > { %v4565_v1 = vsel %vm1169_vm3, %v4555_v15, %v4557_v18  ;;  %v4559_v62 = vpop.permute.xlu1 %4558 }
 0x8d2   : > { %4576 = vst [vmem:[%s8408_s24 + $0x38] sm:$0xff] %v4565_v1  ;;  %v4566_v56 = vsel %vm1169_vm3, %v4557_v18, %v4559_v62 }
 0x8d3   : > { %4577 = vst [vmem:[%s8408_s24 + $0x40] sm:$0xff] %v4566_v56 }
 0x8d4   : > { %v4561_v3 = vpop.permute.xlu0 %4560 }
 0x8d5   : > { %v4567_v31 = vsel %vm1169_vm3, %v4559_v62, %v4561_v3  ;;  %v4563_v44 = vpop.permute.xlu1 %4562 }
 0x8d6   : > { %4578 = vst [vmem:[%s8408_s24 + $0x48] sm:$0xff] %v4567_v31  ;;  %v4568_v45 = vsel %vm1169_vm3, %v4561_v3, %v4563_v44  ;;  %4580 = vst.msk [vmem:[%s8408_s24 + $0x58] sm:$0xff] %vm4485_vm10, %v4563_v44 }
 0x8d7   : > { %4579 = vst [vmem:[%s8408_s24 + $0x50] sm:$0xff] %v4568_v45 }
 0x8e3   : > { %v4647_v4 = vpop.permute.xlu0 %4646 }
 0x8e5   : > { %v4649_v25 = vpop.permute.xlu1 %4648 }
 0x8e6   : > { %v4658_v38 = vsel %vm1169_vm3, %v4647_v4, %v4649_v25 }
 0x8e7   : > { %4669 = vst [vmem:[%s8408_s24 + $0x60] sm:$0xff] %v4658_v38 }
 0x8e8   : > { %v4651_v58 = vpop.permute.xlu0 %4650 }
 0x8e9   : > { %v4659_v55 = vsel %vm1169_vm3, %v4649_v25, %v4651_v58  ;;  %v4653_v43 = vpop.permute.xlu1 %4652 }
 0x8ea   : > { %4670 = vst [vmem:[%s8408_s24 + $0x68] sm:$0xff] %v4659_v55  ;;  %v4660_v17 = vsel %vm1169_vm3, %v4651_v58, %v4653_v43 }
 0x8eb   : > { %4671 = vst [vmem:[%s8408_s24 + $0x70] sm:$0xff] %v4660_v17 }
 0x8f8   : > { %v4655_v30 = vpop.permute.xlu0 %4654 }
 0x8f9   : > { %v4661_v14 = vsel %vm1169_vm3, %v4653_v43, %v4655_v30  ;;  %v4657_v28 = vpop.permute.xlu1 %4656 }
 0x8fa   : > { %4672 = vst [vmem:[%s8408_s24 + $0x78] sm:$0xff] %v4661_v14  ;;  %v4662_v52 = vsel %vm1169_vm3, %v4655_v30, %v4657_v28  ;;  %4674 = vst.msk [vmem:[%s8408_s24 + $0x88] sm:$0xff] %vm4485_vm10, %v4657_v28 }
 0x8fb   : > { %4673 = vst [vmem:[%s8408_s24 + $0x80] sm:$0xff] %v4662_v52 }
 0x8fc   : > { %v4741_v11 = vpop.permute.xlu0 %4740 }
 0x8fd   : > { %v4743_v13 = vpop.permute.xlu1 %4742 }
 0x8fe   : > { %v4752_v5 = vsel %vm1169_vm3, %v4741_v11, %v4743_v13 }
 0x8ff   : > { %4763 = vst [vmem:[%s8408_s24 + $0x90] sm:$0xff] %v4752_v5 }
 0x90d   : > { %v4745_v42 = vpop.permute.xlu0 %4744 }
 0x90e   : > { %v4753_v21 = vsel %vm1169_vm3, %v4743_v13, %v4745_v42  ;;  %v4747_v61 = vpop.permute.xlu1 %4746 }
 0x90f   : > { %4764 = vst [vmem:[%s8408_s24 + $0x98] sm:$0xff] %v4753_v21  ;;  %v4754_v34 = vsel %vm1169_vm3, %v4745_v42, %v4747_v61 }
 0x910   : > { %4765 = vst [vmem:[%s8408_s24 + $0xa0] sm:$0xff] %v4754_v34 }
 0x911   : > { %v4749_v49 = vpop.permute.xlu0 %4748 }
 0x912   : > { %v4755_v51 = vsel %vm1169_vm3, %v4747_v61, %v4749_v49  ;;  %v4751_v60 = vpop.permute.xlu1 %4750 }
 0x913   : > { %4766 = vst [vmem:[%s8408_s24 + $0xa8] sm:$0xff] %v4755_v51  ;;  %v4756_v37 = vsel %vm1169_vm3, %v4749_v49, %v4751_v60  ;;  %4768 = vst.msk [vmem:[%s8408_s24 + $0xb8] sm:$0xff] %vm4485_vm10, %v4751_v60 }
 0x914   : > { %4767 = vst [vmem:[%s8408_s24 + $0xb0] sm:$0xff] %v4756_v37 }
 0x915   : > { %5458 = shalt.err (!%p5455_p4)
}
 0x916   : > { %s5459_s15 = scalar_lea.hbm %s8458_s20, 3072  ;;  %s5463_s24 = scalar_lea.hbm %s8518_s8, 6144 }
 0x917   : > { %p5460_p7 = scmp.ne.s32.totalorder %s8458_s20, %s5459_s15  ;;  %p5464_p0 = scmp.lt.u32.totalorder %s8458_s20, %s8518_s8 }
 0x918   : > { %p5465_p1 = scmp.lt.u32.totalorder %s5463_s24, %s5459_s15  ;;  %p5467_p6 = scmp.lt.u32.totalorder %s5459_s15, %s8458_s20 }
 0x919   : > { %p5461_p8 = pnand %p5460_p7, %p8873_p11 }
 0x91a   : > { %p5466_p3 = por %p5465_p1, %p5464_p0 }
 0x91b   : > { %p5462_p9 = pneg %p5461_p8 }
 0x91c   : > { %p5468_p12 = por %p5467_p6, %p5466_p3 }
 0x91e   : > { %p5469_p13 = pnand %p5468_p12, %p5462_p9 }
 0x920   : > { %5472 = shalt.err (!%p5469_p13)
}
 0x921   : > { %s5521_s18 = smov 768   ;;  %s5522_s25 = smov 48  }
 0x922   : > { %4934 = dma.vmem_to_hbm [thread:$0]  (%p8873_p11), %s8461_s26, 3072, %s8458_s20, %s4770_s9, %s5521_s18, %s5521_s18, %s5522_s25  }
 0x923 PF: > { %s4798_s14 = sand.u32 1, %s5499_s27   ;;  %p8874_p5 = scmp.ne.s32.totalorder %s8639_s17, 0 }
 0x924   : > { %p8875_p10 = scmp.ge.s32.totalorder %s5511_s30, 2  ;;  %s4799_s13 = scalar_lea.sflag [#allocation6], %s4798_s14 }
 0x926   : > { %p4941_p2 = pnand %p8875_p10, %p8874_p5 }
 0x928   : > { %5494 = dma.done.wait (!%p4941_p2), %s4799_s13, 3072  }
 0x929   : > { %5496 = vsyncadd (!%p4941_p2), %s4799_s13, 4294964224  ;;  %s8876_s19 = sld [smem:[#allocation10_spill]]  ;;  %p21_p4 = scmp.ge.s32.totalorder %s5593_s11, 4  }
 0x92a   : > { %s8877_s27 = smov %s5503_s28  ;;  %s8878_s28 = smov %s5507_s29 }
 0x92b   : > { %s8880_s30 = smov %s5593_s11  ;;  %23 = sbr.rel (!%p21_p4) target bundleno = 5 (0x5), region = 100 }
 0x92f   : > { %s8879_s29 = smov %s8876_s19 }
 0x932   :  { %4804 = vsyncpa [#allocation5], 1 }
 0x933   :  { %4806 = vsyncpa [#allocation5 + $0x1], 1 }
 0x934   :  { %4807 = vsyncpa [#allocation6], 1 }
 0x935   :  { %4809 = vsyncpa [#allocation6 + $0x1], 1 }

</bundles_post_ra>
